<compile_context>
chip_gen: v7x
topology: tpu7x:2x2x1
jax: 0.10.0
libtpu: 0.0.40
codegen_flags: <defaults>
</compile_context>

<pallas_src>
import jax
import jax.numpy as jnp
from jax.experimental import pallas as pl
from jax.experimental.pallas import tpu as pltpu

LN_EPS = 1e-5
MATMUL_DTYPE = jnp.bfloat16          # MXU input dtype; accumulation stays f32.


def _layernorm(x, gamma, beta):
    mu = jnp.mean(x, axis=-1, keepdims=True)
    xc = x - mu
    var = jnp.mean(xc * xc, axis=-1, keepdims=True)
    return xc * jax.lax.rsqrt(var + LN_EPS) * gamma + beta


def _gelu(x):
    # tanh approximation -> EUP (its own VLIW slot), essentially free next to
    # the MXU / VALU work.  See TODO above for exact-erf parity.
    return jax.nn.gelu(x, approximate=True)


# ---------------------------------------------------------------------------
# Kernel body
# ---------------------------------------------------------------------------
def coder_block_kernel(x_ref, wa_ref, w1_ref, w2_ref, dvec_ref, fvec_ref, o_ref):
    x = x_ref[...].astype(jnp.float32)

    dvec = dvec_ref[...]                     # (3, d_model): [ba, gamma1, beta1]
    fvec = fvec_ref[...]                     # (4, dim_ff):  [b1, b2, gamma2, beta2]
    ba, g1, be1 = dvec[0:1], dvec[1:2], dvec[2:3]
    b1, b2, g2, be2 = fvec[0:1], fvec[1:2], fvec[2:3], fvec[3:4]

    # self_no_attn: Linear(d_model -> d_model), bf16 MXU inputs, f32 accumulate.
    src2 = jnp.dot(x.astype(MATMUL_DTYPE), wa_ref[...],
                   preferred_element_type=jnp.float32) + ba
    src = x + src2                            # + dropout1(src2), dropout == id

    # norm1 (over d_model) -> linear1 (d_model -> dim_feedforward)
    h = _layernorm(src, g1, be1)
    h = jnp.dot(h.astype(MATMUL_DTYPE), w1_ref[...],
                preferred_element_type=jnp.float32) + b1

    a = _gelu(h)                              # dropout == id

    # linear2 (dim_feedforward -> dim_feedforward)
    src2 = jnp.dot(a.astype(MATMUL_DTYPE), w2_ref[...],
                   preferred_element_type=jnp.float32) + b2
    s = h + src2                              # + dropout2(src2), dropout == id

    # norm2 (over dim_feedforward)
    o_ref[...] = _layernorm(s, g2, be2).astype(o_ref.dtype)


# ---------------------------------------------------------------------------
# Sizing helpers
# ---------------------------------------------------------------------------
def _vmem_capacity_bytes():
    """Per-TensorCore VMEM capacity; conservative fallback if the query fails."""
    try:
        info = pltpu.get_tpu_info()
        cap = getattr(info, "vmem_capacity_bytes", None)
        if cap:
            return int(cap)
    except Exception:
        pass
    return 64 * 2**20        # v7x per-TC size: safe lower bound everywhere.


def _vmem_need_bytes(row_tile, d_model, dim_ff):
    w = (d_model * d_model + d_model * dim_ff + dim_ff * dim_ff) * 2       # bf16 weights
    v = (3 * d_model + 4 * dim_ff) * 4                                     # packed vectors
    io = 2 * row_tile * d_model * 4 + 2 * row_tile * dim_ff * 4            # double-buffered x / out
    tmp = 6 * row_tile * dim_ff * 4 + 3 * row_tile * d_model * 4           # f32 body temporaries
    return 2 * (w + v) + io + tmp            # x2 on weights: default double-buffering


def _round8(n):
    return max(8, ((n + 7) // 8) * 8)


def _pick_row_tile(n, d_model, dim_ff, vmem_cap):
    headroom = 8 * 2**20
    tile = 512 if vmem_cap >= 96 * 2**20 else 256      # v5e/v6e vs v7x
    # Small N: shrink so the grid still has >= 2 steps (both v7x TCs get work)
    # rather than padding everything into a single step.
    if n <= tile:
        tile = _round8((n + 1) // 2)
    # Shrink until the working set fits the per-core VMEM budget.
    while tile > 8 and _vmem_need_bytes(tile, d_model, dim_ff) > vmem_cap - headroom:
        tile = _round8(tile // 2)
    return tile


# ---------------------------------------------------------------------------
# Wrapper
# ---------------------------------------------------------------------------
def coder_block(x, params, *, row_tile=None, out_dtype=None):
    """x: (N, d_model) float32 rows.  Returns (N, dim_feedforward).

    out_dtype defaults to x.dtype; pass jnp.bfloat16 to halve output writeback
    if the consumer tolerates it.
    """
    N, d_model = x.shape
    dim_ff = params["w1"].shape[1]
    out_dtype = x.dtype if out_dtype is None else out_dtype

    vmem_cap = _vmem_capacity_bytes()
    if row_tile is None:
        row_tile = _pick_row_tile(N, d_model, dim_ff, vmem_cap)
    assert row_tile % 8 == 0, "row_tile must be a multiple of 8 (sublane)"

    # Pad the row dim so any seq*batch works with the chosen tile.
    n_pad = -N % row_tile
    x_p = jnp.pad(x, ((0, n_pad), (0, 0))) if n_pad else x
    n_rows = N + n_pad

    # Pack the 7 small per-feature vectors into two arrays (fewer operands,
    # fewer DMA descriptors, less sub-(8,128) VMEM padding).  In production
    # this concatenation should be hoisted / jitted once.
    dvec = jnp.concatenate([params["ba"], params["gamma1"], params["beta1"]], axis=0)
    fvec = jnp.concatenate([params["b1"], params["b2"],
                            params["gamma2"], params["beta2"]], axis=0)

    full = lambda i: (0, 0)
    weight_args = (params["wa"], params["w1"], params["w2"], dvec, fvec)
    weight_specs = [
        pl.BlockSpec((d_model, d_model), full),
        pl.BlockSpec((d_model, dim_ff), full),
        pl.BlockSpec((dim_ff, dim_ff), full),
        pl.BlockSpec((3, d_model), full),
        pl.BlockSpec((4, dim_ff), full),
    ]

    weight_bytes = sum(int(w.size) * w.dtype.itemsize for w in weight_args)
    cost = pl.CostEstimate(
        flops=2 * n_rows * (d_model * d_model + d_model * dim_ff + dim_ff * dim_ff),
        transcendentals=n_rows * dim_ff,                       # tanh in GELU
        bytes_accessed=(n_rows * d_model * x.dtype.itemsize
                        + n_rows * dim_ff * jnp.dtype(out_dtype).itemsize
                        + weight_bytes),
    )

    vmem_limit = int(min(max(32 * 2**20, _vmem_need_bytes(row_tile, d_model, dim_ff)),
                         vmem_cap - 8 * 2**20))

    out = pl.pallas_call(
        coder_block_kernel,
        out_shape=jax.ShapeDtypeStruct((n_rows, dim_ff), out_dtype),
        grid_spec=pltpu.PrefetchScalarGridSpec(
            num_scalar_prefetch=0,
            grid=(n_rows // row_tile,),
            in_specs=[pl.BlockSpec((row_tile, d_model), lambda i: (i, 0))]
                     + weight_specs,
            out_specs=pl.BlockSpec((row_tile, dim_ff), lambda i: (i, 0)),
        ),
        compiler_params=pltpu.CompilerParams(
            dimension_semantics=("parallel",),
            vmem_limit_bytes=vmem_limit),
        cost_estimate=cost,
    )(x_p, *weight_args)

    return out[:N] if n_pad else out


# ---------------------------------------------------------------------------
# Parameters & reference
# ---------------------------------------------------------------------------
def init_params(key, d_model, dim_ff):
    """Deterministic synthetic parameters.

    PyTorch nn.Linear stores weight as (out, in); we store the transposed
    (in, out) matrix so the kernel does x @ W + b.  Matmul weights are bf16
    (MXU input dtype); biases / LayerNorm params stay f32 as (1, C) rows.
    """
    ks = jax.random.split(key, 6)
    sd = d_model ** -0.5
    sf = dim_ff ** -0.5
    u = lambda k, shape, s: jax.random.uniform(k, shape, jnp.float32, -s, s)
    return {
        "wa": u(ks[0], (d_model, d_model), sd).astype(MATMUL_DTYPE),
        "ba": u(ks[1], (1, d_model), sd),
        "w1": u(ks[2], (d_model, dim_ff), sd).astype(MATMUL_DTYPE),
        "b1": u(ks[3], (1, dim_ff), sd),
        "w2": u(ks[4], (dim_ff, dim_ff), sf).astype(MATMUL_DTYPE),
        "b2": u(ks[5], (1, dim_ff), sf),
        "gamma1": jnp.ones((1, d_model), jnp.float32),
        "beta1": jnp.zeros((1, d_model), jnp.float32),
        "gamma2": jnp.ones((1, dim_ff), jnp.float32),
        "beta2": jnp.zeros((1, dim_ff), jnp.float32),
    }


def reference(x, p):
    """Pure-JAX reference of the same forward (bf16 matmuls, f32 elsewhere)."""
    f32 = jnp.float32
    src2 = jnp.dot(x.astype(MATMUL_DTYPE), p["wa"], preferred_element_type=f32) + p["ba"]
    src = x + src2
    h = _layernorm(src, p["gamma1"], p["beta1"])
    h = jnp.dot(h.astype(MATMUL_DTYPE), p["w1"], preferred_element_type=f32) + p["b1"]
    a = _gelu(h)
    src2 = jnp.dot(a.astype(MATMUL_DTYPE), p["w2"], preferred_element_type=f32) + p["b2"]
    s = h + src2
    return _layernorm(s, p["gamma2"], p["beta2"])


if __name__ == "__main__":
    # seq*batch = 288 is small enough that the adaptive row_tile shrinks to
    # give a 2-step grid (exercises the multi-step / megacore path).  Dims are
    # multiples of 128 so output stores are lane-dense.
    seq, batch, d_model, dim_ff = 36, 8, 128, 256
    key = jax.random.PRNGKey(0)
    kx, kp = jax.random.split(key)

    # PyTorch-style (seq, batch, d_model) input, flattened to rows.
    src = jax.random.normal(kx, (seq, batch, d_model), jnp.float32)
    x = src.reshape(seq * batch, d_model)

    params = init_params(kp, d_model, dim_ff)

    out = jax.block_until_ready(coder_block(x, params))
    ref = reference(x, params)

    assert out.shape == (seq * batch, dim_ff)
    err = float(jnp.max(jnp.abs(out - ref)))
    assert err < 2e-3, f"max abs err {err}"

    print("KERNEL_OK")
</pallas_src>

<mosaic_0001>
module attributes {stable_mosaic.version = 11 : i64} {
  func.func @coder_block_kernel(%arg0: i32, %arg1: memref<256x128xf32, #tpu.memory_space<vmem>>, %arg2: memref<128x128xbf16, #tpu.memory_space<vmem>>, %arg3: memref<128x256xbf16, #tpu.memory_space<vmem>>, %arg4: memref<256x256xbf16, #tpu.memory_space<vmem>>, %arg5: memref<3x128xf32, #tpu.memory_space<vmem>>, %arg6: memref<4x256xf32, #tpu.memory_space<vmem>>, %arg7: memref<256x256xf32, #tpu.memory_space<vmem>>) attributes {dimension_semantics = [#tpu.dimension_semantics<parallel>], iteration_bounds = array<i64: 2>, scalar_prefetch = 0 : i64, scratch_operands = 0 : i64, tpu.core_type = #tpu.core_type<tc>, window_params = [{transform_indices = @transform_0, window_bounds = array<i64: 256, 128>}, {pipeline_mode = #tpu.pipeline_mode<synchronous>, transform_indices = @transform_1, window_bounds = array<i64: 128, 128>}, {pipeline_mode = #tpu.pipeline_mode<synchronous>, transform_indices = @transform_2, window_bounds = array<i64: 128, 256>}, {pipeline_mode = #tpu.pipeline_mode<synchronous>, transform_indices = @transform_3, window_bounds = array<i64: 256, 256>}, {pipeline_mode = #tpu.pipeline_mode<synchronous>, transform_indices = @transform_4, window_bounds = array<i64: 3, 128>}, {pipeline_mode = #tpu.pipeline_mode<synchronous>, transform_indices = @transform_5, window_bounds = array<i64: 4, 256>}, {transform_indices = @transform_6, window_bounds = array<i64: 256, 256>}]} {
    %c0 = arith.constant 0 : index
    %c0_0 = arith.constant 0 : index
    %0 = vector.load %arg1[%c0, %c0_0] : memref<256x128xf32, #tpu.memory_space<vmem>>, vector<256x128xf32>
    %c0_1 = arith.constant 0 : index
    %c0_2 = arith.constant 0 : index
    %1 = vector.load %arg5[%c0_1, %c0_2] : memref<3x128xf32, #tpu.memory_space<vmem>>, vector<3x128xf32>
    %c0_3 = arith.constant 0 : index
    %c0_4 = arith.constant 0 : index
    %2 = vector.load %arg6[%c0_3, %c0_4] : memref<4x256xf32, #tpu.memory_space<vmem>>, vector<4x256xf32>
    %3 = vector.extract_strided_slice %1 {offsets = [0, 0], sizes = [1, 128], strides = [1, 1]} : vector<3x128xf32> to vector<1x128xf32>
    %4 = vector.extract_strided_slice %1 {offsets = [1, 0], sizes = [1, 128], strides = [1, 1]} : vector<3x128xf32> to vector<1x128xf32>
    %5 = vector.extract_strided_slice %1 {offsets = [2, 0], sizes = [1, 128], strides = [1, 1]} : vector<3x128xf32> to vector<1x128xf32>
    %6 = vector.extract_strided_slice %2 {offsets = [0, 0], sizes = [1, 256], strides = [1, 1]} : vector<4x256xf32> to vector<1x256xf32>
    %7 = vector.extract_strided_slice %2 {offsets = [1, 0], sizes = [1, 256], strides = [1, 1]} : vector<4x256xf32> to vector<1x256xf32>
    %8 = vector.extract_strided_slice %2 {offsets = [2, 0], sizes = [1, 256], strides = [1, 1]} : vector<4x256xf32> to vector<1x256xf32>
    %9 = vector.extract_strided_slice %2 {offsets = [3, 0], sizes = [1, 256], strides = [1, 1]} : vector<4x256xf32> to vector<1x256xf32>
    %10 = arith.truncf %0 : vector<256x128xf32> to vector<256x128xbf16>
    %c0_5 = arith.constant 0 : index
    %c0_6 = arith.constant 0 : index
    %11 = vector.load %arg2[%c0_5, %c0_6] : memref<128x128xbf16, #tpu.memory_space<vmem>>, vector<128x128xbf16>
    %cst = arith.constant dense<0.000000e+00> : vector<256x128xf32>
    %12 = tpu.matmul %10, %11, %cst {dimension_numbers = #tpu.dot_dimension_numbers<[1], [0], [0], [1], [0, 0, 1, 1], [], []>} : vector<256x128xbf16>, vector<128x128xbf16>, vector<256x128xf32> -> vector<256x128xf32>
    %13 = vector.broadcast %3 : vector<1x128xf32> to vector<256x128xf32>
    %14 = arith.addf %12, %13 : vector<256x128xf32>
    %15 = arith.addf %0, %14 : vector<256x128xf32>
    %cst_7 = arith.constant dense<0.000000e+00> : vector<256xf32>
    %16 = vector.multi_reduction <add>, %15, %cst_7 [1] : vector<256x128xf32> to vector<256xf32>
    %17 = vector.shape_cast %16 : vector<256xf32> to vector<256x1xf32>
    %cst_8 = arith.constant 1.280000e+02 : f32
    %18 = vector.broadcast %cst_8 : f32 to vector<256x1xf32>
    %19 = arith.divf %17, %18 : vector<256x1xf32>
    %20 = vector.broadcast %19 : vector<256x1xf32> to vector<256x128xf32>
    %21 = arith.subf %15, %20 : vector<256x128xf32>
    %22 = arith.mulf %21, %21 : vector<256x128xf32>
    %cst_9 = arith.constant dense<0.000000e+00> : vector<256xf32>
    %23 = vector.multi_reduction <add>, %22, %cst_9 [1] : vector<256x128xf32> to vector<256xf32>
    %24 = vector.shape_cast %23 : vector<256xf32> to vector<256x1xf32>
    %cst_10 = arith.constant 1.280000e+02 : f32
    %25 = vector.broadcast %cst_10 : f32 to vector<256x1xf32>
    %26 = arith.divf %24, %25 : vector<256x1xf32>
    %cst_11 = arith.constant 9.99999974E-6 : f32
    %27 = vector.broadcast %cst_11 : f32 to vector<256x1xf32>
    %28 = arith.addf %26, %27 : vector<256x1xf32>
    %29 = math.rsqrt %28 : vector<256x1xf32>
    %30 = vector.broadcast %29 : vector<256x1xf32> to vector<256x128xf32>
    %31 = arith.mulf %21, %30 : vector<256x128xf32>
    %32 = vector.broadcast %4 : vector<1x128xf32> to vector<256x128xf32>
    %33 = arith.mulf %31, %32 : vector<256x128xf32>
    %34 = vector.broadcast %5 : vector<1x128xf32> to vector<256x128xf32>
    %35 = arith.addf %33, %34 : vector<256x128xf32>
    %36 = arith.truncf %35 : vector<256x128xf32> to vector<256x128xbf16>
    %c0_12 = arith.constant 0 : index
    %c0_13 = arith.constant 0 : index
    %37 = vector.load %arg3[%c0_12, %c0_13] : memref<128x256xbf16, #tpu.memory_space<vmem>>, vector<128x256xbf16>
    %cst_14 = arith.constant dense<0.000000e+00> : vector<256x256xf32>
    %38 = tpu.matmul %36, %37, %cst_14 {dimension_numbers = #tpu.dot_dimension_numbers<[1], [0], [0], [1], [0, 0, 1, 1], [], []>} : vector<256x128xbf16>, vector<128x256xbf16>, vector<256x256xf32> -> vector<256x256xf32>
    %39 = vector.broadcast %6 : vector<1x256xf32> to vector<256x256xf32>
    %40 = arith.addf %38, %39 : vector<256x256xf32>
    %41 = arith.mulf %40, %40 : vector<256x256xf32>
    %42 = arith.mulf %40, %41 : vector<256x256xf32>
    %cst_15 = arith.constant 4.471500e-02 : f32
    %43 = vector.broadcast %cst_15 : f32 to vector<256x256xf32>
    %44 = arith.mulf %43, %42 : vector<256x256xf32>
    %45 = arith.addf %40, %44 : vector<256x256xf32>
    %cst_16 = arith.constant 0.797884583 : f32
    %46 = vector.broadcast %cst_16 : f32 to vector<256x256xf32>
    %47 = arith.mulf %46, %45 : vector<256x256xf32>
    %48 = math.tanh %47 : vector<256x256xf32>
    %cst_17 = arith.constant 1.000000e+00 : f32
    %49 = vector.broadcast %cst_17 : f32 to vector<256x256xf32>
    %50 = arith.addf %49, %48 : vector<256x256xf32>
    %cst_18 = arith.constant 5.000000e-01 : f32
    %51 = vector.broadcast %cst_18 : f32 to vector<256x256xf32>
    %52 = arith.mulf %51, %50 : vector<256x256xf32>
    %53 = arith.mulf %40, %52 : vector<256x256xf32>
    %54 = arith.truncf %53 : vector<256x256xf32> to vector<256x256xbf16>
    %c0_19 = arith.constant 0 : index
    %c0_20 = arith.constant 0 : index
    %55 = vector.load %arg4[%c0_19, %c0_20] : memref<256x256xbf16, #tpu.memory_space<vmem>>, vector<256x256xbf16>
    %cst_21 = arith.constant dense<0.000000e+00> : vector<256x256xf32>
    %56 = tpu.matmul %54, %55, %cst_21 {dimension_numbers = #tpu.dot_dimension_numbers<[1], [0], [0], [1], [0, 0, 1, 1], [], []>} : vector<256x256xbf16>, vector<256x256xbf16>, vector<256x256xf32> -> vector<256x256xf32>
    %57 = vector.broadcast %7 : vector<1x256xf32> to vector<256x256xf32>
    %58 = arith.addf %56, %57 : vector<256x256xf32>
    %59 = arith.addf %40, %58 : vector<256x256xf32>
    %cst_22 = arith.constant dense<0.000000e+00> : vector<256xf32>
    %60 = vector.multi_reduction <add>, %59, %cst_22 [1] : vector<256x256xf32> to vector<256xf32>
    %61 = vector.shape_cast %60 : vector<256xf32> to vector<256x1xf32>
    %cst_23 = arith.constant 2.560000e+02 : f32
    %62 = vector.broadcast %cst_23 : f32 to vector<256x1xf32>
    %63 = arith.divf %61, %62 : vector<256x1xf32>
    %64 = vector.broadcast %63 : vector<256x1xf32> to vector<256x256xf32>
    %65 = arith.subf %59, %64 : vector<256x256xf32>
    %66 = arith.mulf %65, %65 : vector<256x256xf32>
    %cst_24 = arith.constant dense<0.000000e+00> : vector<256xf32>
    %67 = vector.multi_reduction <add>, %66, %cst_24 [1] : vector<256x256xf32> to vector<256xf32>
    %68 = vector.shape_cast %67 : vector<256xf32> to vector<256x1xf32>
    %cst_25 = arith.constant 2.560000e+02 : f32
    %69 = vector.broadcast %cst_25 : f32 to vector<256x1xf32>
    %70 = arith.divf %68, %69 : vector<256x1xf32>
    %cst_26 = arith.constant 9.99999974E-6 : f32
    %71 = vector.broadcast %cst_26 : f32 to vector<256x1xf32>
    %72 = arith.addf %70, %71 : vector<256x1xf32>
    %73 = math.rsqrt %72 : vector<256x1xf32>
    %74 = vector.broadcast %73 : vector<256x1xf32> to vector<256x256xf32>
    %75 = arith.mulf %65, %74 : vector<256x256xf32>
    %76 = vector.broadcast %8 : vector<1x256xf32> to vector<256x256xf32>
    %77 = arith.mulf %75, %76 : vector<256x256xf32>
    %78 = vector.broadcast %9 : vector<1x256xf32> to vector<256x256xf32>
    %79 = arith.addf %77, %78 : vector<256x256xf32>
    %c0_27 = arith.constant 0 : index
    %c0_28 = arith.constant 0 : index
    %80 = vector.load %arg7[%c0_27, %c0_28] : memref<256x256xf32, #tpu.memory_space<vmem>>, vector<256x256xf32>
    tpu.vector_store %arg7[%c0_27, %c0_28], %79 {strides = array<i32>} : memref<256x256xf32, #tpu.memory_space<vmem>>, vector<256x256xf32>,
    return
  }
  func.func @transform_0(%arg0: i32) -> (i32, i32) {
    %c0_i32 = arith.constant 0 : i32
    %c0_i32_0 = arith.constant 0 : i32
    return %arg0, %c0_i32 : i32, i32
  }
  func.func @transform_1(%arg0: i32) -> (i32, i32) {
    %c0_i32 = arith.constant 0 : i32
    %c0_i32_0 = arith.constant 0 : i32
    %c0_i32_1 = arith.constant 0 : i32
    return %c0_i32, %c0_i32_0 : i32, i32
  }
  func.func @transform_2(%arg0: i32) -> (i32, i32) {
    %c0_i32 = arith.constant 0 : i32
    %c0_i32_0 = arith.constant 0 : i32
    %c0_i32_1 = arith.constant 0 : i32
    return %c0_i32, %c0_i32_0 : i32, i32
  }
  func.func @transform_3(%arg0: i32) -> (i32, i32) {
    %c0_i32 = arith.constant 0 : i32
    %c0_i32_0 = arith.constant 0 : i32
    %c0_i32_1 = arith.constant 0 : i32
    return %c0_i32, %c0_i32_0 : i32, i32
  }
  func.func @transform_4(%arg0: i32) -> (i32, i32) {
    %c0_i32 = arith.constant 0 : i32
    %c0_i32_0 = arith.constant 0 : i32
    %c0_i32_1 = arith.constant 0 : i32
    return %c0_i32, %c0_i32_0 : i32, i32
  }
  func.func @transform_5(%arg0: i32) -> (i32, i32) {
    %c0_i32 = arith.constant 0 : i32
    %c0_i32_0 = arith.constant 0 : i32
    %c0_i32_1 = arith.constant 0 : i32
    return %c0_i32, %c0_i32_0 : i32, i32
  }
  func.func @transform_6(%arg0: i32) -> (i32, i32) {
    %c0_i32 = arith.constant 0 : i32
    %c0_i32_0 = arith.constant 0 : i32
    return %arg0, %c0_i32 : i32, i32
  }
}

</mosaic_0001>

<bundles_post_ra>
// kernel: tpu_custom_call.1
= control target key start
LH: loop header
LB: loop body
LE: loop exit
PB: predicated region body
PF: predicated region fallthrough
CT: control target
= control target key end

     0   :  { %s6540_s0 = inlined_call_operand.hbm [shape: f32[512,128], index: 0, kind: input, shape index: {}]   ;;  %s6541_s1 = inlined_call_operand.hbm [shape: bf16[128,128], index: 1, kind: input, shape index: {}]   ;;  %s6542_s2 = inlined_call_operand.hbm [shape: bf16[128,256], index: 2, kind: input, shape index: {}]   ;;  %s6543_s3 = inlined_call_operand.hbm [shape: bf16[256,256], index: 3, kind: input, shape index: {}]   ;;  %s6544_s4 = inlined_call_operand.vmem [shape: f32[3,128], index: 4, kind: input, shape index: {}]   ;;  %s6545_s5 = inlined_call_operand.vmem [shape: f32[4,256], index: 5, kind: input, shape index: {}]   ;;  %s6546_s6 = inlined_call_operand.hbm [shape: f32[512,256], index: 6, kind: output, shape index: {}]  }
   0x1   :  { %6625 = sst [smem:[#allocation47_spill]] %s6541_s1 }
   0x2   :  { %11 = vsyncpa [#allocation3], 0 }
   0x3   :  { %13 = vsyncpa [#allocation3 + $0x1], 0 }
   0x4   :  { %14 = vsyncpa [#allocation6], 0 }
   0x5   :  { %15 = vsyncpa [#allocation9], 0 }
   0x6   :  { %16 = vsyncpa [#allocation4], 0 }
   0x7   :  { %18 = vsyncpa [#allocation4 + $0x1], 0  ;;  %s4153_s21 = smov 0   ;;  %s4155_s22 = smov 0  }
   0x8   :  { %s4157_s23 = smov 0   ;;  %s4159_s24 = smov 0  }
   0x9 LB: > { %s4174_s25 = sadd.s32 4294967295, %s4104_s24   ;;  %s3310_s26 = sadd.s32 4294967294, %s4104_s24   ;;  %s4104_s24 = sphi %s4159_s24, %s6792_s24   ;;  %s4100_s23 = sphi %s4157_s23, %s6791_s23   ;;  %s4096_s22 = sphi %s4155_s22, %s6790_s22   ;;  %s4092_s21 = sphi %s4153_s21, %s6789_s21  }
   0xa   : > { %p44_p0 = scmp.ne.s32.totalorder %s4096_s22, %s4092_s21  ;;  %p6547_p1 = scmp.eq.s32.totalorder %s4174_s25, 0 }
   0xb   : > { %p179_p3 = scmp.eq.s32.totalorder %s3310_s26, 1  ;;  %p3311_p5 = scmp.ge.s32.totalorder %s4104_s24, 1 }
   0xc   : > { %p4183_p4 = por %p6547_p1, %p44_p0  ;;  %p186_p7 = scmp.lt.s32.totalorder %s4104_s24, 3 }
   0xd   : > { %p4188_p6 = por %p179_p3, %p44_p0  ;;  %s4106_s30 = smov [#allocation5]  }
   0xe   : > { %s6626_s27 = scalar_select %p4183_p4, 1, 0 }
   0xf   : > { %s6627_s28 = scalar_select %p4188_p6, 1, 0 }
  0x10   : > { %p4193_p8 = pnand %p3311_p5, %p186_p7  ;;  %s198_s7 = sshll.u32 %s4106_s30, 4  ;;  %s4197_s7 = int_to_ptr.vmem [resolvable:$true] %s198_s7 }
  0x11   : > { %s4107_s9 = smov [#allocation7]   ;;  %s6630_s1 = sld [smem:[#allocation47_spill]] }
  0x12   : > { %s6628_s29 = scalar_select %p4193_p8, 1, 0 }
  0x13   : > { %p3510_p9 = pneg %p4193_p8  ;;  %s211_s10 = sshll.u32 %s4107_s9, 4  ;;  %s4208_s10 = int_to_ptr.vmem [resolvable:$true] %s211_s10 }
  0x15   : > { %p4204_p11 = pnand %p3510_p9, %p6547_p1 }
  0x17   : > { %s3916_s13 = scalar_lea.hbm %s6630_s1, 1024  ;;  %p4218_p13 = pneg %p4204_p11 }
  0x18   : > { %p3917_p12 = scmp.ne.s32.totalorder %s6630_s1, %s3916_s13  ;;  %p3923_p5 = scmp.lt.u32.totalorder %s3916_s13, %s6630_s1 }
  0x1a   : > { %p3919_p0 = pnand %p4218_p13, %p3917_p12 }
  0x1c   : > { %p3920_p3 = pneg %p3919_p0 }
  0x1e   : > { %p3925_p7 = pnand %p3923_p5, %p3920_p3 }
  0x20   : > { %3928 = shalt.err (!%p3925_p7)
}
  0x21   : > { %s3929_s19 = scalar_lea.vmem %s4197_s7, 1024  ;;  %p3937_p2 = scmp.lt.s32.totalorder %s4197_s7, %s4197_s7 }
  0x22   : > { %p3930_p9 = scmp.ne.s32.totalorder %s4197_s7, %s3929_s19  ;;  %p3938_p6 = scmp.lt.s32.totalorder %s3929_s19, %s3929_s19 }
  0x24   : > { %p3932_p10 = pnand %p3930_p9, %p4218_p13  ;;  %p3939_p12 = por %p3938_p6, %p3937_p2 }
  0x26   : > { %p3933_p1 = pneg %p3932_p10 }
  0x28   : > { %p3940_p0 = pnand %p3939_p12, %p3933_p1 }
  0x2a   : > { %3943 = shalt.err (!%p3940_p0)
}
  0x2b   : > { %s4108_s20 = smov 64   ;;  %s4109_s26 = smov 4  }
  0x2c   : > { %3513 = dma.hbm_to_vmem [thread:$0]  (!%p4204_p11), %s6630_s1, 1024, %s4197_s7, [#allocation6], %s4108_s20, %s4108_s20, %s4109_s26  }
  0x2d   : > { %s3944_s13 = scalar_lea.hbm %s6542_s2, 2048 }
  0x2e   : > { %p3945_p2 = scmp.ne.s32.totalorder %s6542_s2, %s3944_s13  ;;  %p3951_p10 = scmp.lt.u32.totalorder %s3944_s13, %s6542_s2 }
  0x30   : > { %p3947_p1 = pnand %p3945_p2, %p4218_p13 }
  0x32   : > { %p3948_p6 = pneg %p3947_p1 }
  0x34   : > { %p3953_p3 = pnand %p3951_p10, %p3948_p6 }
  0x36   : > { %3956 = shalt.err (!%p3953_p3)
}
  0x37   : > { %s3957_s7 = scalar_lea.vmem %s4208_s10, 2048  ;;  %p3965_p12 = scmp.lt.s32.totalorder %s4208_s10, %s4208_s10 }
  0x38   : > { %p3958_p5 = scmp.ne.s32.totalorder %s4208_s10, %s3957_s7  ;;  %p3966_p0 = scmp.lt.s32.totalorder %s3957_s7, %s3957_s7 }
  0x3a   : > { %p3960_p7 = pnand %p3958_p5, %p4218_p13  ;;  %p3967_p2 = por %p3966_p0, %p3965_p12 }
  0x3c   : > { %p3961_p9 = pneg %p3960_p7 }
  0x3e   : > { %p3968_p1 = pnand %p3967_p2, %p3961_p9 }
  0x40   : > { %3971 = shalt.err (!%p3968_p1)
}
  0x41   : > { %s4110_s19 = smov 128   ;;  %s4111_s20 = smov 8  }
  0x42   : > { %3516 = dma.hbm_to_vmem [thread:$0]  (!%p4204_p11), %s6542_s2, 2048, %s4208_s10, [#allocation6], %s4110_s19, %s4110_s19, %s4111_s20  }
  0x43   : > { %s4112_s9 = smov [#allocation8]   ;;  %s4266_s12 = sadd.s32 1, %s4104_s24  }
  0x44   : > { %s224_s11 = sshll.u32 %s4112_s9, 4  ;;  %s3972_s15 = scalar_lea.hbm %s6543_s3, 4096  ;;  %s225_s11 = int_to_ptr.vmem [resolvable:$true] %s224_s11 }
  0x45   : > { %p3973_p6 = scmp.ne.s32.totalorder %s6543_s3, %s3972_s15  ;;  %p3979_p5 = scmp.lt.u32.totalorder %s3972_s15, %s6543_s3 }
  0x47   : > { %p3975_p10 = pnand %p3973_p6, %p4218_p13 }
  0x49   : > { %p3976_p3 = pneg %p3975_p10 }
  0x4b   : > { %p3981_p7 = pnand %p3979_p5, %p3976_p3 }
  0x4d   : > { %3984 = shalt.err (!%p3981_p7)
}
  0x4e   : > { %s3985_s10 = scalar_lea.vmem %s225_s11, 4096  ;;  %p3993_p2 = scmp.lt.s32.totalorder %s225_s11, %s225_s11 }
  0x4f   : > { %p3986_p9 = scmp.ne.s32.totalorder %s225_s11, %s3985_s10  ;;  %p3994_p1 = scmp.lt.s32.totalorder %s3985_s10, %s3985_s10 }
  0x51   : > { %p3988_p12 = pnand %p3986_p9, %p4218_p13  ;;  %p3995_p4 = por %p3994_p1, %p3993_p2 }
  0x53   : > { %p3989_p0 = pneg %p3988_p12 }
  0x55   : > { %p3996_p8 = pnand %p3995_p4, %p3989_p0 }
  0x57   : > { %3999 = shalt.err (!%p3996_p8)
}
  0x58   : > { %3519 = dma.hbm_to_vmem [thread:$0]  (!%p4204_p11), %s6543_s3, 4096, %s225_s11, [#allocation9], %s4110_s19, %s4110_s19, %s4111_s20  }
  0x59   : > { %s28_s16 = ssub.s32 %s4104_s24, %s4266_s12  ;;  %s31_s8 = sadd.s32 1, %s4100_s23 }
  0x5a   : > { %p29_p4 = scmp.eq.s32.totalorder %s28_s16, 0  ;;  %p38_p8 = scmp.ne.s32.totalorder %s4100_s23, %s4096_s22 }
  0x5b   : > { %p39_p13 = scmp.eq.s32.totalorder %s4104_s24, 0  ;;  %p3531_p6 = scmp.lt.s32.totalorder %s4104_s24, 2 }
  0x5c   : > { %s4297_s30 = scalar_select %p29_p4, %s4100_s23, %s31_s8  }
  0x5d   : > { %p40_p10 = por %p39_p13, %p38_p8  ;;  %p6632_p3 = scmp.eq.s32.totalorder %s4174_s25, 1 }
  0x5e   : > { %s244_s13 = sand.u32 1, %s4100_s23   ;;  %s3387_s14 = sshll.u32 %s4104_s24, 12 }
  0x5f   : > { %p4301_p5 = por %p6632_p3, %p38_p8  ;;  %s3316_s15 = sshll.u32 %s244_s13, 8 }
  0x60   : > { %s4310_s11 = scalar_lea.hbm %s6540_s0, %s3387_s14  ;;  %s248_s7 = scalar_lea.vmem [#allocation2], %s3316_s15 }
  0x61   : > { %s255_s10 = sshll.u32 %s248_s7, 4  ;;  %p4312_p11 = pnand %p3531_p6, %p40_p10  ;;  %s4316_s10 = int_to_ptr.vmem [resolvable:$true] %s255_s10 }
  0x62   : > { %s4318_s26 = scalar_lea.sflag [#allocation3], %s244_s13  ;;  %s4000_s16 = scalar_lea.hbm %s4310_s11, 4096 }
  0x63   : > { %p4001_p7 = scmp.ne.s32.totalorder %s4310_s11, %s4000_s16  ;;  %p4002_p9 = pneg %p4312_p11 }
  0x64   : > { %s4005_s15 = scalar_lea.hbm %s6540_s0, 8192  ;;  %p4006_p2 = scmp.lt.u32.totalorder %s4310_s11, %s6540_s0 }
  0x65   : > { %p4003_p12 = pnand %p4002_p9, %p4001_p7  ;;  %p4007_p1 = scmp.lt.u32.totalorder %s4005_s15, %s4000_s16 }
  0x66   : > { %p4009_p8 = scmp.lt.u32.totalorder %s4000_s16, %s4310_s11 }
  0x67   : > { %p4004_p0 = pneg %p4003_p12  ;;  %p4008_p4 = por %p4007_p1, %p4006_p2 }
  0x69   : > { %p4010_p13 = por %p4009_p8, %p4008_p4 }
  0x6b   : > { %p4011_p6 = pnand %p4010_p13, %p4004_p0 }
  0x6d   : > { %4014 = shalt.err (!%p4011_p6)
}
  0x6e   : > { %s4015_s13 = scalar_lea.vmem %s4316_s10, 4096  ;;  %s4113_s7 = smov [#allocation2]  }
  0x6f   : > { %p4016_p10 = scmp.ne.s32.totalorder %s4316_s10, %s4015_s13  ;;  %s4020_s8 = sshll.u32 %s4113_s7, 4  ;;  %s4021_s8 = int_to_ptr.vmem [resolvable:$false] %s4020_s8 }
  0x70   : > { %s4022_s14 = scalar_lea.vmem %s4021_s8, 8192  ;;  %p4023_p12 = scmp.lt.s32.totalorder %s4316_s10, %s4021_s8 }
  0x71   : > { %p4018_p3 = pnand %p4016_p10, %p4002_p9  ;;  %p4024_p2 = scmp.lt.s32.totalorder %s4022_s14, %s4015_s13 }
  0x73   : > { %p4019_p7 = pneg %p4018_p3  ;;  %p4025_p1 = por %p4024_p2, %p4023_p12 }
  0x75   : > { %p4026_p4 = pnand %p4025_p1, %p4019_p7 }
  0x77   : > { %4029 = shalt.err (!%p4026_p4)
}
  0x78   : > { %3523 = dma.hbm_to_vmem [thread:$0]  (!%p4312_p11), %s4310_s11, 4096, %s4316_s10, %s4318_s26, %s4110_s19, %s4110_s19, %s4111_s20  }
  0x79   : > { %p6635_p9 = scmp.ne.s32.totalorder %s6628_s29, 0 }
  0x7b   : > { %267 = sbr.rel (%p6635_p9) target bundleno = 1711 (0x6af), region = 44 }
  0x82   : > { %s4352_s16 = sand.u32 1, %s4096_s22   ;;  %p6636_p0 = scmp.ne.s32.totalorder %s6626_s27, 0 }
  0x83   : > { %s3320_s15 = sshll.u32 %s4352_s16, 8  ;;  %s270_s17 = scalar_lea.sflag [#allocation3], %s4352_s16 }
  0x84   : > { %s4356_s18 = scalar_lea.vmem [#allocation2], %s3320_s15 }
  0x85   : > { %4075 = dma.done.wait (%p6636_p0), %s270_s17, 4096  }
  0x86   : > { %4077 = vsyncadd (%p6636_p0), %s270_s17, 4294963200  ;;  %p6637_p11 = scmp.eq.s32.totalorder %s4174_s25, 0 }
  0x88   : > { %4079 = dma.done.wait (%p6637_p11), [#allocation6], 3072   ;;  %p6638_p8 = pmov %p6637_p11 }
  0x8a   : > { %4081 = vsyncadd (%p6638_p8), [#allocation6], 4294964224  ;;  %p6639_p13 = pmov %p6638_p8 }
  0x8b   : > { %p6640_p6 = pmov %p6638_p8 }
  0x8c   : > { %4083 = dma.done.wait (%p6639_p13), [#allocation9], 4096  }
  0x8d   : > { %4085 = vsyncadd (%p6640_p6), [#allocation9], 4294963200  ;;  %v3578_v0 = vld [vmem:[#allocation5] sm:$0xff]   ;;  %v3579_v1 = vld [vmem:[#allocation5 + $0x8] sm:$0xff]   ;;  %v383_v56 = vlaneseq  ;;  %s3324_s13 = sshll.u32 %s4352_s16, 9  ;;  %s3389_s8 = sshll.u32 %s4174_s25, 13 }
  0x8e   : > { %3414 = vmatprep.subr.bf16.mxu0 %v3578_v0  ;;  %v3580_v2 = vld [vmem:[#allocation5 + $0x10] sm:$0xff]   ;;  %v3581_v3 = vld [vmem:[#allocation5 + $0x18] sm:$0xff]   ;;  %v4371_v4 = vld [vmem:[%s4356_s18] sm:$0xff]  ;;  %s6247_s7 = scalar_lea.vmem [#allocation10], %s3324_s13  ;;  %s3194_s25 = scalar_lea.sflag [#allocation4], %s4352_s16 }
  0x8f   : > { %3415 = vmatpush3.bf16.msra.mxu0 %v3578_v0  ;;  %v4374_v5 = vld [vmem:[%s4356_s18 + $0x8] sm:$0xff]  ;;  %v3582_v7 = vld [vmem:[#allocation5 + $0x20] sm:$0xff]   ;;  %v3584_v9 = vld [vmem:[#allocation5 + $0x30] sm:$0xff]   ;;  %v4498_v57 = vshrl.u32 %v383_v56, 7  ;;  %s3208_s14 = sshll.u32 %s6247_s7, 4  ;;  %s4115_s29 = smov [#allocation10]   ;;  %s6490_s14 = int_to_ptr.vmem [resolvable:$true] %s3208_s14 }
  0x90   : > { %3416 = vmatprep.subr.bf16.mxu0 %v3579_v1  ;;  %v351_v6 = vpack.c.bf16 %v4374_v5, %v4371_v4  ;;  %v3583_v8 = vld [vmem:[#allocation5 + $0x28] sm:$0xff]   ;;  %v3585_v10 = vld [vmem:[#allocation5 + $0x38] sm:$0xff]   ;;  %v4379_v11 = vld [vmem:[%s4356_s18 + $0x10] sm:$0xff]  ;;  %s4030_s27 = scalar_lea.vmem %s6490_s14, 8192  ;;  %s4034_s19 = sshll.u32 %s4115_s29, 4  ;;  %s4035_s19 = int_to_ptr.vmem [resolvable:$false] %s4034_s19 }
  0x91   : > { %v4382_v12 = vld [vmem:[%s4356_s18 + $0x18] sm:$0xff]  ;;  %v4385_v13 = vld [vmem:[%s4356_s18 + $0x20] sm:$0xff]  ;;  %v4388_v14 = vld [vmem:[%s4356_s18 + $0x28] sm:$0xff]  ;;  %6641 = vst [vmem:[#allocation15_spill] sm:$0xff] %v4498_v57  ;;  %v4501_v58 = vsub.s32 0, %v4498_v57  ;;  %p4031_p10 = scmp.ne.s32.totalorder %s6490_s14, %s4030_s27  ;;  %s4036_s20 = scalar_lea.vmem %s4035_s19, 16384 }
  0x92   : > { %3430 = vmatprep.mubr.bf16.mxu0 %v351_v6  ;;  %v352_v15 = vpack.c.bf16 %v4382_v12, %v4379_v11  ;;  %v353_v16 = vpack.c.bf16 %v4388_v14, %v4385_v13  ;;  %v4395_v17 = vld [vmem:[%s4356_s18 + $0x30] sm:$0xff]  ;;  %v4398_v18 = vld [vmem:[%s4356_s18 + $0x38] sm:$0xff]  ;;  %v4401_v19 = vld [vmem:[%s4356_s18 + $0x40] sm:$0xff]  ;;  %p4037_p12 = scmp.lt.s32.totalorder %s6490_s14, %s4035_s19  ;;  %p4038_p2 = scmp.lt.s32.totalorder %s4036_s20, %s4030_s27 }
  0x93   : > { %3417 = vmatpush3.bf16.msra.mxu0 %v3579_v1  ;;  %v4404_v20 = vld [vmem:[%s4356_s18 + $0x48] sm:$0xff]  ;;  %v354_v21 = vpack.c.bf16 %v4398_v18, %v4395_v17  ;;  %v4411_v23 = vld [vmem:[%s4356_s18 + $0x50] sm:$0xff]  ;;  %v4414_v24 = vld [vmem:[%s4356_s18 + $0x58] sm:$0xff]  ;;  %p4032_p3 = pnand %p4031_p10, %p4301_p5 }
  0x94   : > { %3418 = vmatprep.subr.bf16.mxu0 %v3580_v2  ;;  %v355_v22 = vpack.c.bf16 %v4404_v20, %v4401_v19  ;;  %v4417_v25 = vld [vmem:[%s4356_s18 + $0x60] sm:$0xff]  ;;  %v4420_v26 = vld [vmem:[%s4356_s18 + $0x68] sm:$0xff]  ;;  %v356_v27 = vpack.c.bf16 %v4414_v24, %v4411_v23  ;;  %v4427_v29 = vld [vmem:[%s4356_s18 + $0x70] sm:$0xff]  ;;  %p4039_p1 = por %p4038_p2, %p4037_p12 }
  0x95   : > { %v357_v28 = vpack.c.bf16 %v4420_v26, %v4417_v25  ;;  %v4430_v30 = vld [vmem:[%s4356_s18 + $0x78] sm:$0xff]  ;;  %v4433_v31 = vld [vmem:[%s4356_s18 + $0x80] sm:$0xff]  ;;  %v4436_v32 = vld [vmem:[%s4356_s18 + $0x88] sm:$0xff]  ;;  %p4033_p7 = pneg %p4032_p3 }
  0x96   : > { %v358_v33 = vpack.c.bf16 %v4430_v30, %v4427_v29  ;;  %v359_v34 = vpack.c.bf16 %v4436_v32, %v4433_v31  ;;  %v4443_v35 = vld [vmem:[%s4356_s18 + $0x90] sm:$0xff]  ;;  %v4446_v36 = vld [vmem:[%s4356_s18 + $0x98] sm:$0xff]  ;;  %v4449_v37 = vld [vmem:[%s4356_s18 + $0xa0] sm:$0xff] }
  0x97   : > { %3419 = vmatpush3.bf16.msra.mxu0 %v3580_v2  ;;  %v4452_v38 = vld [vmem:[%s4356_s18 + $0xa8] sm:$0xff]  ;;  %v360_v39 = vpack.c.bf16 %v4446_v36, %v4443_v35  ;;  %v4459_v41 = vld [vmem:[%s4356_s18 + $0xb0] sm:$0xff]  ;;  %v4462_v42 = vld [vmem:[%s4356_s18 + $0xb8] sm:$0xff]  ;;  %p4040_p4 = pnand %p4039_p1, %p4033_p7 }
  0x98   : > { %3420 = vmatprep.subr.bf16.mxu0 %v3581_v3  ;;  %v361_v40 = vpack.c.bf16 %v4452_v38, %v4449_v37  ;;  %v4465_v43 = vld [vmem:[%s4356_s18 + $0xc0] sm:$0xff]  ;;  %v4468_v44 = vld [vmem:[%s4356_s18 + $0xc8] sm:$0xff]  ;;  %v362_v45 = vpack.c.bf16 %v4462_v42, %v4459_v41  ;;  %v4475_v47 = vld [vmem:[%s4356_s18 + $0xd0] sm:$0xff] }
  0x99   : > { %v363_v46 = vpack.c.bf16 %v4468_v44, %v4465_v43  ;;  %v4478_v48 = vld [vmem:[%s4356_s18 + $0xd8] sm:$0xff]  ;;  %v4481_v49 = vld [vmem:[%s4356_s18 + $0xe0] sm:$0xff]  ;;  %v4484_v50 = vld [vmem:[%s4356_s18 + $0xe8] sm:$0xff] }
  0x9a   : > { %v364_v51 = vpack.c.bf16 %v4478_v48, %v4475_v47  ;;  %v365_v52 = vpack.c.bf16 %v4484_v50, %v4481_v49  ;;  %v4491_v53 = vld [vmem:[%s4356_s18 + $0xf0] sm:$0xff]  ;;  %v4494_v54 = vld [vmem:[%s4356_s18 + $0xf8] sm:$0xff]  ;;  %v4506_v59 = vld [vmem:[%s6544_s4] sm:$0x7]  ;;  %s6488_s18 = scalar_lea.hbm %s6546_s6, %s3389_s8 }
  0x9b   : > { %3421 = vmatpush3.bf16.msra.mxu0 %v3581_v3  ;;  %v366_v55 = vpack.c.bf16 %v4494_v54, %v4491_v53  ;;  %v4510_v60 = vrot.slane %v4506_v59, %v4501_v58 }
  0x9c   : > { %3422 = vmatprep.subr.bf16.mxu0 %v3582_v7 }
  0x9f   : > { %3423 = vmatpush3.bf16.msra.mxu0 %v3582_v7 }
  0xa0   : > { %3424 = vmatprep.subr.bf16.mxu0 %v3583_v8 }
  0xa3   : > { %3425 = vmatpush3.bf16.msra.mxu0 %v3583_v8 }
  0xa4   : > { %3426 = vmatprep.subr.bf16.mxu0 %v3584_v9 }
  0xa7   : > { %3427 = vmatpush3.bf16.msra.mxu0 %v3584_v9 }
  0xa8   : > { %3428 = vmatprep.subr.bf16.mxu0 %v3585_v10 }
  0xab   : > { %3429 = vmatpush3.bf16.msra.mxu0 %v3585_v10 }
  0xae   : > { %3431 = vmatmul.mubr.bf16.vlgmr.msra.gmra.mrb[0].mxu0 %v352_v15 }
  0xaf   : > { %3434 = vmatprep.mubr.bf16.mxu0 %v353_v16 }
  0xb6   : > { %3435 = vmatmul.mubr.bf16.gmra.mrb[4].mxu0 %v354_v21 }
  0xb7   : > { %3438 = vmatprep.mubr.bf16.mxu0 %v355_v22 }
  0xbe   : > { %3439 = vmatmul.mubr.bf16.gmra.mrb[8].mxu0 %v356_v27 }
  0xbf   : > { %3442 = vmatprep.mubr.bf16.mxu0 %v357_v28 }
  0xc6   : > { %3443 = vmatmul.mubr.bf16.gmra.mrb[12].mxu0 %v358_v33 }
  0xc7   : > { %3446 = vmatprep.mubr.bf16.mxu0 %v359_v34 }
  0xce   : > { %3447 = vmatmul.mubr.bf16.gmra.mrb[16].mxu0 %v360_v39 }
  0xcf   : > { %3450 = vmatprep.mubr.bf16.mxu0 %v361_v40 }
  0xd6   : > { %3451 = vmatmul.mubr.bf16.gmra.mrb[20].mxu0 %v362_v45 }
  0xd7   : > { %3454 = vmatprep.mubr.bf16.mxu0 %v363_v46 }
  0xde   : > { %3455 = vmatmul.mubr.bf16.gmra.mrb[24].mxu0 %v364_v51 }
  0xdf   : > { %3458 = vmatprep.mubr.bf16.mxu0 %v365_v52 }
  0xe6   : > { %3459 = vmatmul.mubr.bf16.gmra.mrb[28].mxu0 %v366_v55 }
 0x181   : > { %v3432_v61 = vpop.f32.mrb[0].mxu0 }
 0x182   : > { %v478_v62 = vadd.f32 %v3432_v61, %v4510_v60  ;;  %v469_v63 = vpop.f32.mrb[1].mxu0 }
 0x183   : > { %v470_v0 = vadd.f32 %v469_v63, %v4510_v60  ;;  %v3433_v1 = vpop.f32.mrb[2].mxu0 }
 0x184   : > { %v481_v2 = vadd.f32 %v3433_v1, %v4510_v60  ;;  %v472_v3 = vpop.f32.mrb[3].mxu0  ;;  %v4516_v6 = vadd.f32 %v478_v62, %v4379_v11 }
 0x185   : > { %v473_v7 = vadd.f32 %v472_v3, %v4510_v60  ;;  %v4520_v8 = vadd.f32 %v470_v0, %v4371_v4 }
 0x186   : > { %632 = vadd.xlane.f32.xlu1 %v4516_v6  ;;  %v4525_v9 = vadd.f32 %v481_v2, %v4382_v12 }
 0x187   : > { %628 = vadd.xlane.f32.xlu0 %v4520_v8  ;;  %v4528_v15 = vadd.f32 %v473_v7, %v4374_v5 }
 0x189   : > { %v3436_v10 = vpop.f32.mrb[4].mxu0 }
 0x18a   : > { %634 = vadd.xlane.f32.xlu1 %v4525_v9  ;;  %v485_v11 = vpop.f32.mrb[5].mxu0  ;;  %v494_v16 = vadd.f32 %v3436_v10, %v4510_v60 }
 0x18b   : > { %v486_v21 = vadd.f32 %v485_v11, %v4510_v60  ;;  %v3437_v4 = vpop.f32.mrb[6].mxu0  ;;  %630 = vadd.xlane.f32.xlu0 %v4528_v15 }
 0x18c   : > { %v488_v22 = vpop.f32.mrb[7].mxu0  ;;  %v497_v27 = vadd.f32 %v3437_v4, %v4510_v60  ;;  %v4544_v33 = vadd.f32 %v494_v16, %v4395_v17 }
 0x18d   : > { %v489_v12 = vadd.f32 %v488_v22, %v4510_v60  ;;  %v4537_v28 = vadd.f32 %v486_v21, %v4385_v13 }
 0x18e   : > { %v4548_v39 = vadd.f32 %v497_v27, %v4398_v18 }
 0x18f   : > { %636 = vadd.xlane.f32.xlu0 %v4537_v28  ;;  %v4541_v5 = vadd.f32 %v489_v12, %v4388_v14 }
 0x191   : > { %v3440_v34 = vpop.f32.mrb[8].mxu0  ;;  %638 = vadd.xlane.f32.xlu1 %v4541_v5 }
 0x192   : > { %v501_v40 = vpop.f32.mrb[9].mxu0  ;;  %v510_v45 = vadd.f32 %v3440_v34, %v4510_v60 }
 0x193   : > { %v502_v13 = vadd.f32 %v501_v40, %v4510_v60  ;;  %v3441_v46 = vpop.f32.mrb[10].mxu0  ;;  %640 = vadd.xlane.f32.xlu0 %v4544_v33 }
 0x194   : > { %v504_v51 = vpop.f32.mrb[11].mxu0  ;;  %v513_v14 = vadd.f32 %v3441_v46, %v4510_v60  ;;  %v4564_v55 = vadd.f32 %v510_v45, %v4411_v23 }
 0x195   : > { %v505_v17 = vadd.f32 %v504_v51, %v4510_v60  ;;  %642 = vadd.xlane.f32.xlu1 %v4548_v39  ;;  %v4557_v52 = vadd.f32 %v502_v13, %v4401_v19 }
 0x196   : > { %v4568_v61 = vadd.f32 %v513_v14, %v4414_v24 }
 0x197   : > { %644 = vadd.xlane.f32.xlu0 %v4557_v52  ;;  %v4561_v18 = vadd.f32 %v505_v17, %v4404_v20 }
 0x199   : > { %v3444_v56 = vpop.f32.mrb[12].mxu0  ;;  %646 = vadd.xlane.f32.xlu1 %v4561_v18 }
 0x19a   : > { %v517_v62 = vpop.f32.mrb[13].mxu0  ;;  %v526_v63 = vadd.f32 %v3444_v56, %v4510_v60 }
 0x19b   : > { %v518_v19 = vadd.f32 %v517_v62, %v4510_v60  ;;  %v3445_v0 = vpop.f32.mrb[14].mxu0  ;;  %648 = vadd.xlane.f32.xlu0 %v4564_v55 }
 0x19c   : > { %v520_v1 = vpop.f32.mrb[15].mxu0  ;;  %v529_v20 = vadd.f32 %v3445_v0, %v4510_v60  ;;  %v4584_v3 = vadd.f32 %v526_v63, %v4427_v29 }
 0x19d   : > { %v521_v23 = vadd.f32 %v520_v1, %v4510_v60  ;;  %650 = vadd.xlane.f32.xlu1 %v4568_v61  ;;  %v4577_v2 = vadd.f32 %v518_v19, %v4417_v25 }
 0x19e   : > { %v4588_v10 = vadd.f32 %v529_v20, %v4430_v30 }
 0x19f   : > { %652 = vadd.xlane.f32.xlu0 %v4577_v2  ;;  %v4581_v24 = vadd.f32 %v521_v23, %v4420_v26 }
 0x1a1   : > { %v3448_v7 = vpop.f32.mrb[16].mxu0  ;;  %654 = vadd.xlane.f32.xlu1 %v4581_v24 }
 0x1a2   : > { %v533_v11 = vpop.f32.mrb[17].mxu0  ;;  %v542_v16 = vadd.f32 %v3448_v7, %v4510_v60 }
 0x1a3   : > { %v534_v25 = vadd.f32 %v533_v11, %v4510_v60  ;;  %v3449_v21 = vpop.f32.mrb[18].mxu0  ;;  %656 = vadd.xlane.f32.xlu0 %v4584_v3 }
 0x1a4   : > { %v536_v4 = vpop.f32.mrb[19].mxu0  ;;  %v545_v26 = vadd.f32 %v3449_v21, %v4510_v60  ;;  %v4604_v27 = vadd.f32 %v542_v16, %v4443_v35  ;;  %v3586_v21 = vld [vmem:[#allocation7 + $0x4] ss:$8 sps:$4 sm:$0xff]  }
 0x1a5   : > { %v537_v29 = vadd.f32 %v536_v4, %v4510_v60  ;;  %658 = vadd.xlane.f32.xlu1 %v4588_v10  ;;  %v4597_v22 = vadd.f32 %v534_v25, %v4433_v31  ;;  %v3588_v4 = vld [vmem:[#allocation7] ss:$8 sps:$4 sm:$0xff]   ;;  %1184 = vmatprep.subr.bf16.mxu1 %v3586_v21 }
 0x1a6   : > { %v4608_v12 = vadd.f32 %v545_v26, %v4446_v36  ;;  %v3589_v26 = vld [vmem:[#allocation7 + $0x14] ss:$8 sps:$4 sm:$0xff]   ;;  %1185 = vmatpush1.bf16.msra.mxu1 %v3588_v4 }
 0x1a7   : > { %660 = vadd.xlane.f32.xlu0 %v4597_v22  ;;  %v4601_v30 = vadd.f32 %v537_v29, %v4436_v32  ;;  %1186 = vmatprep.subr.bf16.mxu1 %v3589_v26 }
 0x1a9   : > { %662 = vadd.xlane.f32.xlu1 %v4601_v30  ;;  %v3452_v34 = vpop.f32.mrb[20].mxu0 }
 0x1aa   : > { %v558_v40 = vadd.f32 %v3452_v34, %v4510_v60  ;;  %v549_v45 = vpop.f32.mrb[21].mxu0 }
 0x1ab   : > { %664 = vadd.xlane.f32.xlu0 %v4604_v27  ;;  %v550_v31 = vadd.f32 %v549_v45, %v4510_v60  ;;  %v3453_v13 = vpop.f32.mrb[22].mxu0 }
 0x1ac   : > { %v561_v32 = vadd.f32 %v3453_v13, %v4510_v60  ;;  %v552_v46 = vpop.f32.mrb[23].mxu0  ;;  %v4665_v26 = vadd.f32 %v558_v40, %v4459_v41 }
 0x1ad   : > { %666 = vadd.xlane.f32.xlu1 %v4608_v12  ;;  %v553_v35 = vadd.f32 %v552_v46, %v4510_v60 }
 0x1b1   : > { %v3456_v51 = vpop.f32.mrb[24].mxu0 }
 0x1b2   : > { %v4617_v36 = vadd.f32 %v3456_v51, %v4510_v60  ;;  %v565_v14 = vpop.f32.mrb[25].mxu0 }
 0x1b3   : > { %v566_v17 = vadd.f32 %v565_v14, %v4510_v60  ;;  %v3457_v56 = vpop.f32.mrb[26].mxu0 }
 0x1b4   : > { %v4621_v62 = vadd.f32 %v3457_v56, %v4510_v60  ;;  %v568_v63 = vpop.f32.mrb[27].mxu0 }
 0x1b5   : > { %v4624_v19 = vadd.f32 %v568_v63, %v4510_v60  ;;  %v4644_v63 = vadd.f32 %v550_v31, %v4449_v37  ;;  %v4658_v37 = vadd.f32 %v553_v35, %v4452_v38  ;;  %v3591_v38 = vld [vmem:[#allocation7 + $0x10] ss:$8 sps:$4 sm:$0xff]   ;;  %v4674_v35 = vadd.f32 %v561_v32, %v4462_v42 }
 0x1b6   : > { %1187 = vmatpush1.bf16.msra.mxu1 %v3591_v38  ;;  %v3603_v38 = vld [vmem:[#allocation7 + $0x50] ss:$8 sps:$4 sm:$0xff]  }
 0x1b9   : > { %v3460_v0 = vpop.f32.mrb[28].mxu0 }
 0x1ba   : > { %v4627_v1 = vadd.f32 %v3460_v0, %v4510_v60  ;;  %v581_v20 = vpop.f32.mrb[29].mxu0 }
 0x1bb   : > { %v4630_v23 = vadd.f32 %v581_v20, %v4510_v60  ;;  %v3461_v7 = vpop.f32.mrb[30].mxu0 }
 0x1bc   : > { %v4633_v11 = vadd.f32 %v3461_v7, %v4510_v60  ;;  %v584_v16 = vpop.f32.mrb[31].mxu0 }
 0x1bd   : > { %v4636_v25 = vadd.f32 %v584_v16, %v4510_v60 }
 0x213   : > { %v633_v29 = vpop.xlane.xlu1 %632 }
 0x214   : > { %v629_v34 = vpop.xlane.xlu0 %628  ;;  %v695_v51 = vmul.f32 0.0078125, %v633_v29 }
 0x215   : > { %v693_v45 = vmul.f32 0.0078125, %v629_v34 }
 0x217   : > { %v4639_v13 = vsub.f32 %v4520_v8, %v693_v45  ;;  %v635_v60 = vpop.xlane.xlu1 %634  ;;  %v4652_v8 = vsub.f32 %v4516_v6, %v695_v51  ;;  %v3592_v51 = vld [vmem:[#allocation7 + $0x24] ss:$8 sps:$4 sm:$0xff]  }
 0x218   : > { %v631_v46 = vpop.xlane.xlu0 %630  ;;  %v696_v20 = vmul.f32 0.0078125, %v635_v60  ;;  %1188 = vmatprep.subr.bf16.mxu1 %v3592_v51  ;;  %v4723_v51 = vadd.f32 %v4630_v23, %v4481_v49  ;;  %v4733_v23 = vadd.f32 %v4636_v25, %v4484_v50  ;;  %v4746_v25 = vadd.f32 %v4627_v1, %v4491_v53 }
 0x219   : > { %v694_v14 = vmul.f32 0.0078125, %v631_v46  ;;  %v757_v56 = vmul.f32 %v4639_v13, %v4639_v13  ;;  %v759_v4 = vmul.f32 %v4652_v8, %v4652_v8 }
 0x21b   : > { %789 = vadd.xlane.f32.xlu0 %v757_v56  ;;  %v4647_v0 = vsub.f32 %v4528_v15, %v694_v14  ;;  %v4661_v15 = vsub.f32 %v4525_v9, %v696_v20  ;;  %v3594_v14 = vld [vmem:[#allocation7 + $0x20] ss:$8 sps:$4 sm:$0xff]   ;;  %v3597_v20 = vld [vmem:[#allocation7 + $0x30] ss:$8 sps:$4 sm:$0xff]  }
 0x21c   : > { %v637_v16 = vpop.xlane.xlu0 %636  ;;  %1189 = vmatpush1.bf16.msra.mxu1 %v3594_v14  ;;  %v3606_v14 = vld [vmem:[#allocation7 + $0x60] ss:$8 sps:$4 sm:$0xff]  }
 0x21d   : > { %v758_v7 = vmul.f32 %v4647_v0, %v4647_v0  ;;  %v697_v21 = vmul.f32 0.0078125, %v637_v16  ;;  %v760_v29 = vmul.f32 %v4661_v15, %v4661_v15 }
 0x21e   : > { %v639_v31 = vpop.xlane.xlu1 %638 }
 0x21f   : > { %668 = vadd.xlane.f32.xlu0 %v4644_v63  ;;  %791 = vadd.xlane.f32.xlu1 %v758_v7  ;;  %v698_v6 = vmul.f32 0.0078125, %v639_v31  ;;  %v4670_v34 = vsub.f32 %v4537_v28, %v697_v21  ;;  %v4683_v28 = vadd.f32 %v566_v17, %v4465_v43  ;;  %v4693_v17 = vadd.f32 %v4624_v19, %v4468_v44  ;;  %v3600_v31 = vld [vmem:[#allocation7 + $0x40] ss:$8 sps:$4 sm:$0xff]  }
 0x220   : > { %v641_v45 = vpop.xlane.xlu0 %640  ;;  %v4705_v44 = vadd.f32 %v4617_v36, %v4475_v47  ;;  %v3604_v36 = vld [vmem:[#allocation7 + $0x64] ss:$8 sps:$4 sm:$0xff]  }
 0x221   : > { %v699_v9 = vmul.f32 0.0078125, %v641_v45  ;;  %v761_v46 = vmul.f32 %v4670_v34, %v4670_v34  ;;  %v4679_v41 = vsub.f32 %v4541_v5, %v698_v6  ;;  %v3595_v5 = vld [vmem:[#allocation7 + $0x34] ss:$8 sps:$4 sm:$0xff]  }
 0x222   : > { %v643_v40 = vpop.xlane.xlu1 %642  ;;  %1190 = vmatprep.subr.bf16.mxu1 %v3595_v5  ;;  %v3601_v45 = vld [vmem:[#allocation7 + $0x54] ss:$8 sps:$4 sm:$0xff]   ;;  %v3609_v5 = vld [vmem:[#allocation7 + $0x70] ss:$8 sps:$4 sm:$0xff]  }
 0x223   : > { %793 = vadd.xlane.f32.xlu0 %v759_v4  ;;  %670 = vadd.xlane.f32.xlu1 %v4658_v37  ;;  %v700_v42 = vmul.f32 0.0078125, %v643_v40  ;;  %v762_v32 = vmul.f32 %v4679_v41, %v4679_v41  ;;  %v4688_v60 = vsub.f32 %v4544_v33, %v699_v9  ;;  %v3598_v4 = vld [vmem:[#allocation7 + $0x44] ss:$8 sps:$4 sm:$0xff]   ;;  %v4713_v40 = vadd.f32 %v4621_v62, %v4478_v48 }
 0x224   : > { %v645_v56 = vpop.xlane.xlu0 %644  ;;  %1191 = vmatpush1.bf16.msra.mxu1 %v3597_v20 }
 0x225   : > { %v701_v43 = vmul.f32 0.0078125, %v645_v56  ;;  %v763_v16 = vmul.f32 %v4688_v60, %v4688_v60  ;;  %v4698_v21 = vsub.f32 %v4548_v39, %v700_v42  ;;  %1192 = vmatprep.subr.bf16.mxu1 %v3598_v4 }
 0x226   : > { %v647_v7 = vpop.xlane.xlu1 %646 }
 0x227   : > { %672 = vadd.xlane.f32.xlu0 %v4665_v26  ;;  %795 = vadd.xlane.f32.xlu1 %v760_v29  ;;  %v702_v6 = vmul.f32 0.0078125, %v647_v7  ;;  %v764_v29 = vmul.f32 %v4698_v21, %v4698_v21  ;;  %v4708_v19 = vsub.f32 %v4557_v52, %v701_v43 }
 0x228   : > { %v649_v33 = vpop.xlane.xlu0 %648  ;;  %1193 = vmatpush1.bf16.msra.mxu1 %v3600_v31 }
 0x229   : > { %1194 = vmatprep.subr.bf16.mxu1 %v3601_v45  ;;  %v765_v47 = vmul.f32 %v4708_v19, %v4708_v19  ;;  %v4718_v52 = vsub.f32 %v4561_v18, %v702_v6  ;;  %v4757_v45 = vadd.f32 %v4633_v11, %v4494_v54 }
 0x22a   : > { %v651_v39 = vpop.xlane.xlu1 %650 }
 0x22b   : > { %674 = vadd.xlane.f32.xlu1 %v4674_v35  ;;  %797 = vadd.xlane.f32.xlu0 %v761_v46  ;;  %v703_v46 = vmul.f32 0.0078125, %v649_v33  ;;  %v704_v48 = vmul.f32 0.0078125, %v651_v39  ;;  %v766_v62 = vmul.f32 %v4718_v52, %v4718_v52  ;;  %v4114_v33 = vmov 0  }
 0x22c   : > { %v653_v9 = vpop.xlane.xlu0 %652  ;;  %1195 = vmatpush1.bf16.msra.mxu1 %v3603_v38  ;;  %1216 = vmatprep.mubr.bf16.mxu1 %v4114_v33 }
 0x22d   : > { %1196 = vmatprep.subr.bf16.mxu1 %v3604_v36  ;;  %v4728_v42 = vsub.f32 %v4564_v55, %v703_v46  ;;  %v705_v49 = vmul.f32 0.0078125, %v653_v9  ;;  %v4738_v7 = vsub.f32 %v4568_v61, %v704_v48 }
 0x22e   : > { %v655_v56 = vpop.xlane.xlu1 %654 }
 0x22f   : > { %799 = vadd.xlane.f32.xlu1 %v762_v32  ;;  %676 = vadd.xlane.f32.xlu0 %v4683_v28  ;;  %v3607_v32 = vld [vmem:[#allocation7 + $0x74] ss:$8 sps:$4 sm:$0xff]   ;;  %v767_v20 = vmul.f32 %v4728_v42, %v4728_v42  ;;  %v706_v43 = vmul.f32 0.0078125, %v655_v56  ;;  %v768_v50 = vmul.f32 %v4738_v7, %v4738_v7  ;;  %v4749_v61 = vsub.f32 %v4577_v2, %v705_v49 }
 0x230   : > { %1197 = vmatpush1.bf16.msra.mxu1 %v3606_v14  ;;  %v657_v18 = vpop.xlane.xlu0 %656 }
 0x231   : > { %1198 = vmatprep.subr.bf16.mxu1 %v3607_v32  ;;  %v707_v4 = vmul.f32 0.0078125, %v657_v18  ;;  %v769_v53 = vmul.f32 %v4749_v61, %v4749_v61 }
 0x232   : > { %v659_v55 = vpop.xlane.xlu1 %658 }
 0x233   : > { %678 = vadd.xlane.f32.xlu1 %v4693_v17  ;;  %801 = vadd.xlane.f32.xlu0 %v763_v16  ;;  %v708_v31 = vmul.f32 0.0078125, %v659_v55  ;;  %v4762_v1 = vsub.f32 %v4584_v3, %v707_v4 }
 0x234   : > { %1199 = vmatpush1.bf16.msra.mxu1 %v3609_v5  ;;  %v661_v16 = vpop.xlane.xlu0 %660 }
 0x235   : > { %v709_v39 = vmul.f32 0.0078125, %v661_v16  ;;  %v771_v54 = vmul.f32 %v4762_v1, %v4762_v1 }
 0x236   : > { %v663_v6 = vpop.xlane.xlu1 %662 }
 0x237   : > { %803 = vadd.xlane.f32.xlu1 %v764_v29  ;;  %680 = vadd.xlane.f32.xlu0 %v4705_v44  ;;  %v4753_v29 = vsub.f32 %v4581_v24, %v706_v43  ;;  %v4768_v24 = vsub.f32 %v4588_v10, %v708_v31  ;;  %v710_v9 = vmul.f32 0.0078125, %v663_v6  ;;  %v4773_v11 = vsub.f32 %v4597_v22, %v709_v39 }
 0x238   : > { %v665_v2 = vpop.xlane.xlu0 %664 }
 0x239   : > { %v770_v38 = vmul.f32 %v4753_v29, %v4753_v29  ;;  %v711_v46 = vmul.f32 0.0078125, %v665_v2  ;;  %v773_v14 = vmul.f32 %v4773_v11, %v4773_v11  ;;  %v4780_v10 = vsub.f32 %v4601_v30, %v710_v9 }
 0x23a   : > { %v667_v3 = vpop.xlane.xlu1 %666  ;;  %v4803_v9 = vsub.s32 1, %v4498_v57 }
 0x23b   : > { %682 = vadd.xlane.f32.xlu1 %v4713_v40  ;;  %805 = vadd.xlane.f32.xlu0 %v765_v47  ;;  %v772_v47 = vmul.f32 %v4768_v24, %v4768_v24  ;;  %v712_v36 = vmul.f32 0.0078125, %v667_v3  ;;  %v4783_v56 = vsub.f32 %v4604_v27, %v711_v46  ;;  %v774_v22 = vmul.f32 %v4780_v10, %v4780_v10 }
 0x23d   : > { %v775_v48 = vmul.f32 %v4783_v56, %v4783_v56 }
 0x23f   : > { %807 = vadd.xlane.f32.xlu1 %v766_v62  ;;  %684 = vadd.xlane.f32.xlu0 %v4723_v51  ;;  %v4790_v62 = vsub.f32 %v4608_v12, %v712_v36 }
 0x241   : > { %v776_v30 = vmul.f32 %v4790_v62, %v4790_v62 }
 0x243   : > { %686 = vadd.xlane.f32.xlu1 %v4733_v23  ;;  %809 = vadd.xlane.f32.xlu0 %v767_v20 }
 0x247   : > { %811 = vadd.xlane.f32.xlu1 %v768_v50  ;;  %688 = vadd.xlane.f32.xlu0 %v4746_v25 }
 0x24b   : > { %690 = vadd.xlane.f32.xlu1 %v4757_v45  ;;  %813 = vadd.xlane.f32.xlu0 %v769_v53 }
 0x24f   : > { %815 = vadd.xlane.f32.xlu1 %v770_v38  ;;  %817 = vadd.xlane.f32.xlu0 %v771_v54 }
 0x253   : > { %819 = vadd.xlane.f32.xlu1 %v772_v47  ;;  %821 = vadd.xlane.f32.xlu0 %v773_v14 }
 0x257   : > { %823 = vadd.xlane.f32.xlu1 %v774_v22  ;;  %825 = vadd.xlane.f32.xlu0 %v775_v48  ;;  %v4813_v48 = vrot.slane %v4506_v59, %v4803_v9 }
 0x25b   : > { %827 = vadd.xlane.f32.xlu1 %v776_v30  ;;  %v4816_v30 = vsub.s32 2, %v4498_v57 }
 0x25d   : > { %6642 = vst [vmem:[#allocation16_spill] sm:$0xff] %v4816_v30 }
 0x2a8   : > { %v790_v18 = vpop.xlane.xlu0 %789 }
 0x2a9   : > { %v853_v27 = vmul.f32 0.0078125, %v790_v18 }
 0x2ab   : > { %v885_v32 = vadd.f32 1e-05, %v853_v27 }
 0x2ac   : > { %v792_v5 = vpop.xlane.xlu1 %791  ;;  %v669_v49 = vpop.xlane.xlu0 %668 }
 0x2ad   : > { %3658 = vrsqrt.f32 %v885_v32  ;;  %v854_v20 = vmul.f32 0.0078125, %v792_v5  ;;  %v713_v55 = vmul.f32 0.0078125, %v669_v49 }
 0x2af   : > { %v886_v43 = vadd.f32 1e-05, %v854_v20  ;;  %v4795_v16 = vsub.f32 %v4644_v63, %v713_v55 }
 0x2b0   : > { %v671_v12 = vpop.xlane.xlu1 %670  ;;  %v794_v4 = vpop.xlane.xlu0 %793 }
 0x2b1   : > { %3660 = vrsqrt.f32 %v886_v43  ;;  %v714_v50 = vmul.f32 0.0078125, %v671_v12  ;;  %v855_v31 = vmul.f32 0.0078125, %v794_v4  ;;  %v777_v6 = vmul.f32 %v4795_v16, %v4795_v16 }
 0x2b2   : > { %v4827_v12 = vrot.slane %v4506_v59, %v4816_v30 }
 0x2b3   : > { %v887_v39 = vadd.f32 1e-05, %v855_v31  ;;  %829 = vadd.xlane.f32.xlu0 %v777_v6  ;;  %v4800_v53 = vsub.f32 %v4658_v37, %v714_v50 }
 0x2b4   : > { %v796_v2 = vpop.xlane.xlu1 %795  ;;  %v673_v38 = vpop.xlane.xlu0 %672 }
 0x2b5   : > { %3662 = vrsqrt.f32 %v887_v39  ;;  %v856_v63 = vmul.f32 0.0078125, %v796_v2  ;;  %v715_v46 = vmul.f32 0.0078125, %v673_v38  ;;  %v778_v54 = vmul.f32 %v4800_v53, %v4800_v53 }
 0x2b7   : > { %v3659_v3 = vpop.eup %3658  ;;  %v888_v47 = vadd.f32 1e-05, %v856_v63  ;;  %831 = vadd.xlane.f32.xlu1 %v778_v54  ;;  %v4808_v36 = vsub.f32 %v4665_v26, %v715_v46 }
 0x2b8   : > { %v675_v14 = vpop.xlane.xlu1 %674  ;;  %v798_v37 = vpop.xlane.xlu0 %797  ;;  %v949_v22 = vmul.f32 %v3659_v3, %v4639_v13 }
 0x2b9   : > { %3664 = vrsqrt.f32 %v888_v47  ;;  %v716_v18 = vmul.f32 0.0078125, %v675_v14  ;;  %v857_v27 = vmul.f32 0.0078125, %v798_v37  ;;  %v779_v32 = vmul.f32 %v4808_v36, %v4808_v36 }
 0x2ba   : > { %v985_v43 = vmul.f32 %v4813_v48, %v949_v22 }
 0x2bb   : > { %v3661_v5 = vpop.eup %3660  ;;  %v889_v26 = vadd.f32 1e-05, %v857_v27  ;;  %833 = vadd.xlane.f32.xlu0 %v779_v32  ;;  %v4821_v49 = vsub.f32 %v4674_v35, %v716_v18 }
 0x2bc   : > { %v800_v13 = vpop.xlane.xlu1 %799  ;;  %v677_v20 = vpop.xlane.xlu0 %676  ;;  %v950_v55 = vmul.f32 %v3661_v5, %v4647_v0  ;;  %v1021_v63 = vadd.f32 %v4827_v12, %v985_v43 }
 0x2bd   : > { %3666 = vrsqrt.f32 %v889_v26  ;;  %v858_v4 = vmul.f32 0.0078125, %v800_v13  ;;  %v717_v50 = vmul.f32 0.0078125, %v677_v20  ;;  %v780_v31 = vmul.f32 %v4821_v49, %v4821_v49 }
 0x2be   : > { %v986_v6 = vmul.f32 %v4813_v48, %v950_v55 }
 0x2bf   : > { %v3663_v35 = vpop.eup %3662  ;;  %v890_v39 = vadd.f32 1e-05, %v858_v4  ;;  %v4833_v2 = vsub.f32 %v4683_v28, %v717_v50  ;;  %835 = vadd.xlane.f32.xlu1 %v780_v31 }
 0x2c0   : > { %v679_v0 = vpop.xlane.xlu1 %678  ;;  %v802_v38 = vpop.xlane.xlu0 %801  ;;  %v1022_v59 = vadd.f32 %v4827_v12, %v986_v6  ;;  %v951_v46 = vmul.f32 %v3663_v35, %v4652_v8 }
 0x2c1   : > { %3668 = vrsqrt.f32 %v890_v39  ;;  %v718_v54 = vmul.f32 0.0078125, %v679_v0  ;;  %v859_v3 = vmul.f32 0.0078125, %v802_v38  ;;  %v781_v47 = vmul.f32 %v4833_v2, %v4833_v2 }
 0x2c2   : > { %v1053_v14 = vpack.c.bf16 %v1022_v59, %v1021_v63  ;;  %v987_v8 = vmul.f32 %v4813_v48, %v951_v46 }
 0x2c3   : > { %v3665_v37 = vpop.eup %3664  ;;  %v4841_v28 = vsub.f32 %v4693_v17, %v718_v54  ;;  %v891_v22 = vadd.f32 1e-05, %v859_v3  ;;  %837 = vadd.xlane.f32.xlu0 %v781_v47 }
 0x2c4   : > { %v804_v18 = vpop.xlane.xlu1 %803  ;;  %1217 = vmatmul.mubr.bf16.vlgmr.msra.gmra.mrb[0].mxu1 %v1053_v14  ;;  %v681_v27 = vpop.xlane.xlu0 %680  ;;  %v952_v32 = vmul.f32 %v3665_v37, %v4661_v15  ;;  %v1023_v50 = vadd.f32 %v4827_v12, %v987_v8 }
 0x2c5   : > { %3670 = vrsqrt.f32 %v891_v22  ;;  %v860_v5 = vmul.f32 0.0078125, %v804_v18  ;;  %v719_v26 = vmul.f32 0.0078125, %v681_v27  ;;  %v782_v13 = vmul.f32 %v4841_v28, %v4841_v28  ;;  %1226 = vmatprep.mubr.bf16.mxu1 %v4114_v33 }
 0x2c6   : > { %v988_v17 = vmul.f32 %v4813_v48, %v952_v32 }
 0x2c7   : > { %v3667_v20 = vpop.eup %3666  ;;  %v892_v55 = vadd.f32 1e-05, %v860_v5  ;;  %v4850_v43 = vsub.f32 %v4705_v44, %v719_v26  ;;  %839 = vadd.xlane.f32.xlu1 %v782_v13 }
 0x2c8   : > { %v683_v4 = vpop.xlane.xlu1 %682  ;;  %v806_v15 = vpop.xlane.xlu0 %805  ;;  %v1024_v31 = vadd.f32 %v4827_v12, %v988_v17  ;;  %v953_v6 = vmul.f32 %v3667_v20, %v4670_v34 }
 0x2c9   : > { %3672 = vrsqrt.f32 %v892_v55  ;;  %v720_v35 = vmul.f32 0.0078125, %v683_v4  ;;  %v861_v39 = vmul.f32 0.0078125, %v806_v15  ;;  %v783_v0 = vmul.f32 %v4850_v43, %v4850_v43 }
 0x2ca   : > { %v1054_v38 = vpack.c.bf16 %v1024_v31, %v1023_v50  ;;  %v989_v34 = vmul.f32 %v4813_v48, %v953_v6 }
 0x2cb   : > { %v3669_v63 = vpop.eup %3668  ;;  %v4858_v44 = vsub.f32 %v4713_v40, %v720_v35  ;;  %v893_v59 = vadd.f32 1e-05, %v861_v39  ;;  %841 = vadd.xlane.f32.xlu0 %v783_v0 }
 0x2cc   : > { %v808_v46 = vpop.xlane.xlu1 %807  ;;  %1227 = vmatmul.mubr.bf16.gmra.mrb[4].mxu1 %v1054_v38  ;;  %v685_v54 = vpop.xlane.xlu0 %684  ;;  %v954_v3 = vmul.f32 %v3669_v63, %v4679_v41  ;;  %v1025_v8 = vadd.f32 %v4827_v12, %v989_v34 }
 0x2cd   : > { %3674 = vrsqrt.f32 %v893_v59  ;;  %v862_v47 = vmul.f32 0.0078125, %v808_v46  ;;  %v721_v14 = vmul.f32 0.0078125, %v685_v54  ;;  %v784_v37 = vmul.f32 %v4858_v44, %v4858_v44  ;;  %1236 = vmatprep.mubr.bf16.mxu1 %v4114_v33 }
 0x2ce   : > { %v990_v40 = vmul.f32 %v4813_v48, %v954_v3 }
 0x2cf   : > { %v3671_v22 = vpop.eup %3670  ;;  %v894_v18 = vadd.f32 1e-05, %v862_v47  ;;  %v4867_v27 = vsub.f32 %v4723_v51, %v721_v14  ;;  %843 = vadd.xlane.f32.xlu1 %v784_v37 }
 0x2d0   : > { %v687_v32 = vpop.xlane.xlu1 %686  ;;  %v810_v41 = vpop.xlane.xlu0 %809  ;;  %v1026_v5 = vadd.f32 %v4827_v12, %v990_v40  ;;  %v955_v26 = vmul.f32 %v3671_v22, %v4688_v60 }
 0x2d1   : > { %3676 = vrsqrt.f32 %v894_v18  ;;  %v722_v13 = vmul.f32 0.0078125, %v687_v32  ;;  %v863_v17 = vmul.f32 0.0078125, %v810_v41  ;;  %v785_v20 = vmul.f32 %v4867_v27, %v4867_v27 }
 0x2d2   : > { %v1055_v55 = vpack.c.bf16 %v1026_v5, %v1025_v8  ;;  %v991_v60 = vmul.f32 %v4813_v48, %v955_v26 }
 0x2d3   : > { %v3673_v4 = vpop.eup %3672  ;;  %v4875_v51 = vsub.f32 %v4733_v23, %v722_v13  ;;  %v895_v15 = vadd.f32 1e-05, %v863_v17  ;;  %845 = vadd.xlane.f32.xlu0 %v785_v20 }
 0x2d4   : > { %v812_v50 = vpop.xlane.xlu1 %811  ;;  %1237 = vmatmul.mubr.bf16.gmra.mrb[8].mxu1 %v1055_v55  ;;  %v689_v31 = vpop.xlane.xlu0 %688  ;;  %v956_v6 = vmul.f32 %v3673_v4, %v4698_v21  ;;  %v1027_v54 = vadd.f32 %v4827_v12, %v991_v60 }
 0x2d5   : > { %3678 = vrsqrt.f32 %v895_v15  ;;  %v864_v35 = vmul.f32 0.0078125, %v812_v50  ;;  %v723_v39 = vmul.f32 0.0078125, %v689_v31  ;;  %v786_v0 = vmul.f32 %v4875_v51, %v4875_v51  ;;  %1246 = vmatprep.mubr.bf16.mxu1 %v4114_v33 }
 0x2d6   : > { %v992_v23 = vmul.f32 %v4813_v48, %v956_v6 }
 0x2d7   : > { %v3675_v38 = vpop.eup %3674  ;;  %v896_v63 = vadd.f32 1e-05, %v864_v35  ;;  %v4884_v59 = vsub.f32 %v4746_v25, %v723_v39  ;;  %847 = vadd.xlane.f32.xlu1 %v786_v0 }
 0x2d8   : > { %v691_v46 = vpop.xlane.xlu1 %690  ;;  %v814_v21 = vpop.xlane.xlu0 %813  ;;  %v1028_v3 = vadd.f32 %v4827_v12, %v992_v23  ;;  %v957_v34 = vmul.f32 %v3675_v38, %v4708_v19 }
 0x2d9   : > { %3680 = vrsqrt.f32 %v896_v63  ;;  %v724_v47 = vmul.f32 0.0078125, %v691_v46  ;;  %v865_v14 = vmul.f32 0.0078125, %v814_v21  ;;  %v787_v37 = vmul.f32 %v4884_v59, %v4884_v59 }
 0x2da   : > { %v1056_v40 = vpack.c.bf16 %v1028_v3, %v1027_v54  ;;  %v993_v19 = vmul.f32 %v4813_v48, %v957_v34 }
 0x2db   : > { %v3677_v22 = vpop.eup %3676  ;;  %v4892_v25 = vsub.f32 %v4757_v45, %v724_v47  ;;  %v897_v18 = vadd.f32 1e-05, %v865_v14  ;;  %849 = vadd.xlane.f32.xlu0 %v787_v37 }
 0x2dc   : > { %v816_v32 = vpop.xlane.xlu1 %815  ;;  %1247 = vmatmul.mubr.bf16.gmra.mrb[12].mxu1 %v1056_v40  ;;  %v818_v41 = vpop.xlane.xlu0 %817  ;;  %v958_v8 = vmul.f32 %v3677_v22, %v4718_v52  ;;  %v1029_v52 = vadd.f32 %v4827_v12, %v993_v19 }
 0x2dd   : > { %3682 = vrsqrt.f32 %v897_v18  ;;  %v866_v5 = vmul.f32 0.0078125, %v816_v32  ;;  %v867_v26 = vmul.f32 0.0078125, %v818_v41  ;;  %v788_v13 = vmul.f32 %v4892_v25, %v4892_v25  ;;  %1256 = vmatprep.mubr.bf16.mxu1 %v4114_v33 }
 0x2de   : > { %v994_v45 = vmul.f32 %v4813_v48, %v958_v8 }
 0x2df   : > { %v3679_v17 = vpop.eup %3678  ;;  %v898_v20 = vadd.f32 1e-05, %v866_v5  ;;  %v899_v55 = vadd.f32 1e-05, %v867_v26  ;;  %851 = vadd.xlane.f32.xlu1 %v788_v13 }
 0x2e0   : > { %v820_v4 = vpop.xlane.xlu1 %819  ;;  %v822_v15 = vpop.xlane.xlu0 %821  ;;  %v1030_v50 = vadd.f32 %v4827_v12, %v994_v45  ;;  %v959_v31 = vmul.f32 %v3679_v17, %v4728_v42 }
 0x2e1   : > { %3684 = vrsqrt.f32 %v898_v20  ;;  %v868_v6 = vmul.f32 0.0078125, %v820_v4  ;;  %v869_v0 = vmul.f32 0.0078125, %v822_v15 }
 0x2e2   : > { %v1057_v60 = vpack.c.bf16 %v1030_v50, %v1029_v52  ;;  %3686 = vrsqrt.f32 %v899_v55  ;;  %v995_v63 = vmul.f32 %v4813_v48, %v959_v31  ;;  %v3610_v31 = vld [vmem:[#allocation8] ss:$8 sps:$4 sm:$0xff]  }
 0x2e3   : > { %v3681_v35 = vpop.eup %3680  ;;  %v900_v39 = vadd.f32 1e-05, %v868_v6  ;;  %v901_v54 = vadd.f32 1e-05, %v869_v0  ;;  %v3612_v6 = vld [vmem:[#allocation8 + $0x4] ss:$8 sps:$4 sm:$0xff]  }
 0x2e4   : > { %v824_v23 = vpop.xlane.xlu1 %823  ;;  %1257 = vmatmul.mubr.bf16.gmra.mrb[16].mxu1 %v1057_v60  ;;  %v960_v38 = vmul.f32 %v3681_v35, %v4738_v7  ;;  %v826_v34 = vpop.xlane.xlu0 %825  ;;  %v1031_v14 = vadd.f32 %v4827_v12, %v995_v63  ;;  %2195 = vmatprep.subr.bf16.mxu0 %v3612_v6  ;;  %v3613_v63 = vld [vmem:[#allocation8 + $0x10] ss:$8 sps:$4 sm:$0xff]  }
 0x2e5   : > { %3688 = vrsqrt.f32 %v900_v39  ;;  %v870_v46 = vmul.f32 0.0078125, %v824_v23  ;;  %1266 = vmatprep.mubr.bf16.mxu1 %v4114_v33  ;;  %v871_v32 = vmul.f32 0.0078125, %v826_v34  ;;  %3462 = vmatprep.subr.bf16.mxu1 %v3612_v6  ;;  %v3649_v6 = vld [vmem:[#allocation8 + $0xd0] ss:$8 sps:$4 sm:$0xff]  }
 0x2e6   : > { %v996_v21 = vmul.f32 %v4813_v48, %v960_v38  ;;  %2196 = vmatpush1.bf16.msra.mxu0 %v3610_v31  ;;  %3478 = vmatpush1.bf16.msra.mxu1 %v3610_v31  ;;  %v3651_v31 = vld [vmem:[#allocation8 + $0xd4] ss:$8 sps:$4 sm:$0xff]  }
 0x2e7   : > { %v3683_v42 = vpop.eup %3682  ;;  %v902_v3 = vadd.f32 1e-05, %v870_v46  ;;  %v903_v45 = vadd.f32 1e-05, %v871_v32  ;;  %v3615_v46 = vld [vmem:[#allocation8 + $0x14] ss:$8 sps:$4 sm:$0xff]  }
 0x2e8   : > { %v828_v47 = vpop.xlane.xlu1 %827  ;;  %v1032_v37 = vadd.f32 %v4827_v12, %v996_v21  ;;  %v961_v40 = vmul.f32 %v3683_v42, %v4749_v61  ;;  %2197 = vmatprep.subr.bf16.mxu0 %v3615_v46  ;;  %3463 = vmatprep.subr.bf16.mxu1 %v3615_v46  ;;  %v3627_v32 = vld [vmem:[#allocation8 + $0x54] ss:$8 sps:$4 sm:$0xff]  }
 0x2e9   : > { %3690 = vrsqrt.f32 %v902_v3  ;;  %v872_v7 = vmul.f32 0.0078125, %v828_v47 }
 0x2ea   : > { %v1058_v22 = vpack.c.bf16 %v1032_v37, %v1031_v14  ;;  %3692 = vrsqrt.f32 %v901_v54  ;;  %v997_v8 = vmul.f32 %v4813_v48, %v961_v40  ;;  %2198 = vmatpush1.bf16.msra.mxu0 %v3613_v63  ;;  %3479 = vmatpush1.bf16.msra.mxu1 %v3613_v63  ;;  %v3621_v40 = vld [vmem:[#allocation8 + $0x34] ss:$8 sps:$4 sm:$0xff]  }
 0x2eb   : > { %v3685_v18 = vpop.eup %3684  ;;  %v904_v5 = vadd.f32 1e-05, %v872_v7  ;;  %v3624_v7 = vld [vmem:[#allocation8 + $0x44] ss:$8 sps:$4 sm:$0xff]  }
 0x2ec   : > { %1267 = vmatmul.mubr.bf16.gmra.mrb[20].mxu1 %v1058_v22  ;;  %v962_v41 = vmul.f32 %v3685_v18, %v4753_v29  ;;  %v3687_v19 = vpop.eup %3686  ;;  %v1033_v61 = vadd.f32 %v4827_v12, %v997_v8  ;;  %v3625_v8 = vld [vmem:[#allocation8 + $0x50] ss:$8 sps:$4 sm:$0xff]  }
 0x2ed   : > { %1276 = vmatprep.mubr.bf16.mxu1 %v4114_v33  ;;  %v963_v20 = vmul.f32 %v3687_v19, %v4762_v1  ;;  %3694 = vrsqrt.f32 %v904_v5  ;;  %v3630_v19 = vld [vmem:[#allocation8 + $0x64] ss:$8 sps:$4 sm:$0xff]   ;;  %v3628_v5 = vld [vmem:[#allocation8 + $0x60] ss:$8 sps:$4 sm:$0xff]  }
 0x2ee   : > { %v998_v26 = vmul.f32 %v4813_v48, %v962_v41  ;;  %3696 = vrsqrt.f32 %v903_v45  ;;  %v3636_v45 = vld [vmem:[#allocation8 + $0x84] ss:$8 sps:$4 sm:$0xff]  }
 0x2ef   : > { %v3689_v13 = vpop.eup %3688  ;;  %v999_v52 = vmul.f32 %v4813_v48, %v963_v20  ;;  %v3637_v20 = vld [vmem:[#allocation8 + $0x90] ss:$8 sps:$4 sm:$0xff]  }
 0x2f0   : > { %v1034_v17 = vadd.f32 %v4827_v12, %v998_v26  ;;  %v964_v55 = vmul.f32 %v3689_v13, %v4768_v24  ;;  %v3633_v26 = vld [vmem:[#allocation8 + $0x74] ss:$8 sps:$4 sm:$0xff]   ;;  %v3631_v13 = vld [vmem:[#allocation8 + $0x70] ss:$8 sps:$4 sm:$0xff]  }
 0x2f1   : > { %v1035_v24 = vadd.f32 %v4827_v12, %v999_v52  ;;  %v3648_v52 = vld [vmem:[#allocation8 + $0xc4] ss:$8 sps:$4 sm:$0xff]  }
 0x2f2   : > { %v1059_v29 = vpack.c.bf16 %v1034_v17, %v1033_v61  ;;  %v1000_v4 = vmul.f32 %v4813_v48, %v964_v55  ;;  %v3634_v61 = vld [vmem:[#allocation8 + $0x80] ss:$8 sps:$4 sm:$0xff]   ;;  %v3639_v17 = vld [vmem:[#allocation8 + $0x94] ss:$8 sps:$4 sm:$0xff]   ;;  %v3642_v55 = vld [vmem:[#allocation8 + $0xa4] ss:$8 sps:$4 sm:$0xff]  }
 0x2f3   : > { %v3691_v15 = vpop.eup %3690 }
 0x2f4   : > { %1277 = vmatmul.mubr.bf16.gmra.mrb[24].mxu1 %v1059_v29  ;;  %v3693_v50 = vpop.eup %3692  ;;  %v1036_v60 = vadd.f32 %v4827_v12, %v1000_v4  ;;  %v966_v1 = vmul.f32 %v3691_v15, %v4780_v10  ;;  %v3618_v10 = vld [vmem:[#allocation8 + $0x24] ss:$8 sps:$4 sm:$0xff]   ;;  %v3640_v29 = vld [vmem:[#allocation8 + $0xa0] ss:$8 sps:$4 sm:$0xff]   ;;  %v3645_v4 = vld [vmem:[#allocation8 + $0xb4] ss:$8 sps:$4 sm:$0xff]  }
 0x2f5   : > { %1286 = vmatprep.mubr.bf16.mxu1 %v4114_v33  ;;  %v965_v35 = vmul.f32 %v3693_v50, %v4773_v11  ;;  %v3616_v11 = vld [vmem:[#allocation8 + $0x20] ss:$8 sps:$4 sm:$0xff]   ;;  %2199 = vmatprep.subr.bf16.mxu0 %v3618_v10  ;;  %v3643_v15 = vld [vmem:[#allocation8 + $0xb0] ss:$8 sps:$4 sm:$0xff]  }
 0x2f6   : > { %v1060_v39 = vpack.c.bf16 %v1036_v60, %v1035_v24  ;;  %v1002_v0 = vmul.f32 %v4813_v48, %v966_v1  ;;  %3464 = vmatprep.subr.bf16.mxu1 %v3618_v10  ;;  %2200 = vmatpush1.bf16.msra.mxu0 %v3616_v11  ;;  %v3646_v50 = vld [vmem:[#allocation8 + $0xc0] ss:$8 sps:$4 sm:$0xff]   ;;  %v3654_v60 = vld [vmem:[#allocation8 + $0xe4] ss:$8 sps:$4 sm:$0xff]   ;;  %v3657_v24 = vld [vmem:[#allocation8 + $0xf4] ss:$8 sps:$4 sm:$0xff]  }
 0x2f7   : > { %v3695_v23 = vpop.eup %3694  ;;  %v1001_v38 = vmul.f32 %v4813_v48, %v965_v35  ;;  %3480 = vmatpush1.bf16.msra.mxu1 %v3616_v11  ;;  %2201 = vmatprep.subr.bf16.mxu0 %v3621_v40  ;;  %v3652_v1 = vld [vmem:[#allocation8 + $0xe0] ss:$8 sps:$4 sm:$0xff]   ;;  %v3655_v35 = vld [vmem:[#allocation8 + $0xf0] ss:$8 sps:$4 sm:$0xff]  }
 0x2f8   : > { %v3697_v21 = vpop.eup %3696  ;;  %v1038_v42 = vadd.f32 %v4827_v12, %v1002_v0  ;;  %v968_v54 = vmul.f32 %v3695_v23, %v4790_v62  ;;  %v3619_v62 = vld [vmem:[#allocation8 + $0x30] ss:$8 sps:$4 sm:$0xff]   ;;  %3465 = vmatprep.subr.bf16.mxu1 %v3621_v40 }
 0x2f9   : > { %v1037_v3 = vadd.f32 %v4827_v12, %v1001_v38  ;;  %v967_v34 = vmul.f32 %v3697_v21, %v4783_v56  ;;  %v3622_v56 = vld [vmem:[#allocation8 + $0x40] ss:$8 sps:$4 sm:$0xff]  }
 0x2fa   : > { %v1004_v14 = vmul.f32 %v4813_v48, %v968_v54  ;;  %2202 = vmatpush1.bf16.msra.mxu0 %v3619_v62 }
 0x2fb   : > { %v1061_v47 = vpack.c.bf16 %v1038_v42, %v1037_v3  ;;  %v1003_v37 = vmul.f32 %v4813_v48, %v967_v34  ;;  %3481 = vmatpush1.bf16.msra.mxu1 %v3619_v62  ;;  %2203 = vmatprep.subr.bf16.mxu0 %v3624_v7 }
 0x2fc   : > { %1287 = vmatmul.mubr.bf16.gmra.mrb[28].mxu1 %v1060_v39  ;;  %v1040_v22 = vadd.f32 %v4827_v12, %v1004_v14  ;;  %3466 = vmatprep.subr.bf16.mxu1 %v3624_v7 }
 0x2fd   : > { %1296 = vmatprep.mubr.bf16.mxu1 %v4114_v33  ;;  %v1039_v18 = vadd.f32 %v4827_v12, %v1003_v37 }
 0x2fe   : > { %2204 = vmatpush1.bf16.msra.mxu0 %v3622_v56 }
 0x2ff   : > { %v1062_v41 = vpack.c.bf16 %v1040_v22, %v1039_v18  ;;  %3482 = vmatpush1.bf16.msra.mxu1 %v3622_v56  ;;  %2205 = vmatprep.subr.bf16.mxu0 %v3627_v32 }
 0x300   : > { %3467 = vmatprep.subr.bf16.mxu1 %v3627_v32 }
 0x302   : > { %2206 = vmatpush1.bf16.msra.mxu0 %v3625_v8 }
 0x303   : > { %3483 = vmatpush1.bf16.msra.mxu1 %v3625_v8  ;;  %2207 = vmatprep.subr.bf16.mxu0 %v3630_v19 }
 0x304   : > { %1297 = vmatmul.mubr.bf16.gmra.mrb[32].mxu1 %v1061_v47  ;;  %3468 = vmatprep.subr.bf16.mxu1 %v3630_v19 }
 0x305   : > { %1306 = vmatprep.mubr.bf16.mxu1 %v4114_v33 }
 0x306   : > { %2208 = vmatpush1.bf16.msra.mxu0 %v3628_v5 }
 0x307   : > { %3484 = vmatpush1.bf16.msra.mxu1 %v3628_v5  ;;  %2209 = vmatprep.subr.bf16.mxu0 %v3633_v26 }
 0x308   : > { %3469 = vmatprep.subr.bf16.mxu1 %v3633_v26 }
 0x30a   : > { %2210 = vmatpush1.bf16.msra.mxu0 %v3631_v13 }
 0x30b   : > { %3485 = vmatpush1.bf16.msra.mxu1 %v3631_v13  ;;  %2211 = vmatprep.subr.bf16.mxu0 %v3636_v45 }
 0x30c   : > { %1307 = vmatmul.mubr.bf16.gmra.mrb[36].mxu1 %v1062_v41  ;;  %3470 = vmatprep.subr.bf16.mxu1 %v3636_v45 }
 0x30d   : > { %1316 = vmatprep.mubr.bf16.mxu1 %v4114_v33 }
 0x30e   : > { %2212 = vmatpush1.bf16.msra.mxu0 %v3634_v61 }
 0x30f   : > { %3486 = vmatpush1.bf16.msra.mxu1 %v3634_v61  ;;  %2213 = vmatprep.subr.bf16.mxu0 %v3639_v17 }
 0x310   : > { %3471 = vmatprep.subr.bf16.mxu1 %v3639_v17 }
 0x312   : > { %2214 = vmatpush1.bf16.msra.mxu0 %v3637_v20 }
 0x313   : > { %3487 = vmatpush1.bf16.msra.mxu1 %v3637_v20  ;;  %2215 = vmatprep.subr.bf16.mxu0 %v3642_v55 }
 0x314   : > { %3472 = vmatprep.subr.bf16.mxu1 %v3642_v55 }
 0x316   : > { %2216 = vmatpush1.bf16.msra.mxu0 %v3640_v29 }
 0x317   : > { %3488 = vmatpush1.bf16.msra.mxu1 %v3640_v29  ;;  %2217 = vmatprep.subr.bf16.mxu0 %v3645_v4 }
 0x318   : > { %3473 = vmatprep.subr.bf16.mxu1 %v3645_v4 }
 0x31a   : > { %2218 = vmatpush1.bf16.msra.mxu0 %v3643_v15 }
 0x31b   : > { %3489 = vmatpush1.bf16.msra.mxu1 %v3643_v15  ;;  %2219 = vmatprep.subr.bf16.mxu0 %v3648_v52 }
 0x31c   : > { %3474 = vmatprep.subr.bf16.mxu1 %v3648_v52 }
 0x31e   : > { %2220 = vmatpush1.bf16.msra.mxu0 %v3646_v50 }
 0x31f   : > { %3490 = vmatpush1.bf16.msra.mxu1 %v3646_v50  ;;  %2221 = vmatprep.subr.bf16.mxu0 %v3651_v31 }
 0x320   : > { %3475 = vmatprep.subr.bf16.mxu1 %v3651_v31 }
 0x322   : > { %2222 = vmatpush1.bf16.msra.mxu0 %v3649_v6 }
 0x323   : > { %3491 = vmatpush1.bf16.msra.mxu1 %v3649_v6  ;;  %2223 = vmatprep.subr.bf16.mxu0 %v3654_v60 }
 0x324   : > { %3476 = vmatprep.subr.bf16.mxu1 %v3654_v60 }
 0x326   : > { %2224 = vmatpush1.bf16.msra.mxu0 %v3652_v1 }
 0x327   : > { %3492 = vmatpush1.bf16.msra.mxu1 %v3652_v1  ;;  %2225 = vmatprep.subr.bf16.mxu0 %v3657_v24 }
 0x328   : > { %3477 = vmatprep.subr.bf16.mxu1 %v3657_v24 }
 0x32a   : > { %2226 = vmatpush1.bf16.msra.mxu0 %v3655_v35 }
 0x32b   : > { %3493 = vmatpush1.bf16.msra.mxu1 %v3655_v35 }
 0x340   : > { %v830_v39 = vpop.xlane.xlu0 %829 }
 0x341   : > { %v873_v0 = vmul.f32 0.0078125, %v830_v39 }
 0x343   : > { %v905_v23 = vadd.f32 1e-05, %v873_v0 }
 0x344   : > { %v832_v38 = vpop.xlane.xlu1 %831 }
 0x345   : > { %3698 = vrsqrt.f32 %v905_v23  ;;  %v874_v63 = vmul.f32 0.0078125, %v832_v38 }
 0x347   : > { %v906_v46 = vadd.f32 1e-05, %v874_v63 }
 0x348   : > { %v834_v21 = vpop.xlane.xlu0 %833 }
 0x349   : > { %3700 = vrsqrt.f32 %v906_v46  ;;  %v875_v10 = vmul.f32 0.0078125, %v834_v21 }
 0x34b   : > { %v907_v42 = vadd.f32 1e-05, %v875_v10 }
 0x34c   : > { %v836_v54 = vpop.xlane.xlu1 %835 }
 0x34d   : > { %3702 = vrsqrt.f32 %v907_v42  ;;  %v876_v11 = vmul.f32 0.0078125, %v836_v54 }
 0x34f   : > { %v3699_v3 = vpop.eup %3698  ;;  %v908_v34 = vadd.f32 1e-05, %v876_v11 }
 0x350   : > { %v838_v47 = vpop.xlane.xlu0 %837  ;;  %v969_v14 = vmul.f32 %v3699_v3, %v4795_v16 }
 0x351   : > { %3704 = vrsqrt.f32 %v908_v34  ;;  %v877_v37 = vmul.f32 0.0078125, %v838_v47 }
 0x352   : > { %v1005_v56 = vmul.f32 %v4813_v48, %v969_v14 }
 0x353   : > { %v3701_v62 = vpop.eup %3700  ;;  %v909_v40 = vadd.f32 1e-05, %v877_v37 }
 0x354   : > { %v840_v7 = vpop.xlane.xlu1 %839  ;;  %v970_v22 = vmul.f32 %v3701_v62, %v4800_v53  ;;  %v1041_v5 = vadd.f32 %v4827_v12, %v1005_v56 }
 0x355   : > { %3706 = vrsqrt.f32 %v909_v40  ;;  %v878_v18 = vmul.f32 0.0078125, %v840_v7 }
 0x356   : > { %v1006_v32 = vmul.f32 %v4813_v48, %v970_v22 }
 0x357   : > { %v3703_v41 = vpop.eup %3702  ;;  %v910_v8 = vadd.f32 1e-05, %v878_v18 }
 0x358   : > { %v842_v19 = vpop.xlane.xlu0 %841  ;;  %v1042_v16 = vadd.f32 %v4827_v12, %v1006_v32  ;;  %v971_v26 = vmul.f32 %v3703_v41, %v4808_v36 }
 0x359   : > { %3708 = vrsqrt.f32 %v910_v8  ;;  %v879_v13 = vmul.f32 0.0078125, %v842_v19 }
 0x35a   : > { %v1063_v45 = vpack.c.bf16 %v1042_v16, %v1041_v5  ;;  %v1007_v55 = vmul.f32 %v4813_v48, %v971_v26 }
 0x35b   : > { %v3705_v61 = vpop.eup %3704  ;;  %v911_v53 = vadd.f32 1e-05, %v879_v13 }
 0x35c   : > { %v844_v17 = vpop.xlane.xlu1 %843  ;;  %1317 = vmatmul.mubr.bf16.gmra.mrb[40].mxu1 %v1063_v45  ;;  %v972_v20 = vmul.f32 %v3705_v61, %v4821_v49  ;;  %v1043_v50 = vadd.f32 %v4827_v12, %v1007_v55  ;;  %v1092_v55 = vsub.s32 4, %v4498_v57 }
 0x35d   : > { %3710 = vrsqrt.f32 %v911_v53  ;;  %v880_v29 = vmul.f32 0.0078125, %v844_v17  ;;  %1326 = vmatprep.mubr.bf16.mxu1 %v4114_v33 }
 0x35e   : > { %v1008_v4 = vmul.f32 %v4813_v48, %v972_v20 }
 0x35f   : > { %v3707_v15 = vpop.eup %3706  ;;  %v912_v52 = vadd.f32 1e-05, %v880_v29 }
 0x360   : > { %v846_v36 = vpop.xlane.xlu0 %845  ;;  %v1044_v31 = vadd.f32 %v4827_v12, %v1008_v4  ;;  %v973_v6 = vmul.f32 %v3707_v15, %v4833_v2 }
 0x361   : > { %3712 = vrsqrt.f32 %v912_v52  ;;  %v881_v60 = vmul.f32 0.0078125, %v846_v36 }
 0x362   : > { %v1064_v49 = vpack.c.bf16 %v1044_v31, %v1043_v50  ;;  %v1009_v0 = vmul.f32 %v4813_v48, %v973_v6 }
 0x363   : > { %v3709_v1 = vpop.eup %3708  ;;  %v913_v24 = vadd.f32 1e-05, %v881_v60 }
 0x364   : > { %v848_v35 = vpop.xlane.xlu1 %847  ;;  %1327 = vmatmul.mubr.bf16.gmra.mrb[44].mxu1 %v1064_v49  ;;  %v974_v39 = vmul.f32 %v3709_v1, %v4841_v28  ;;  %v1045_v21 = vadd.f32 %v4827_v12, %v1009_v0 }
 0x365   : > { %3714 = vrsqrt.f32 %v913_v24  ;;  %v882_v23 = vmul.f32 0.0078125, %v848_v35  ;;  %1336 = vmatprep.mubr.bf16.mxu1 %v4114_v33 }
 0x366   : > { %v1010_v38 = vmul.f32 %v4813_v48, %v974_v39 }
 0x367   : > { %v3711_v63 = vpop.eup %3710  ;;  %v914_v46 = vadd.f32 1e-05, %v882_v23 }
 0x368   : > { %v850_v2 = vpop.xlane.xlu0 %849  ;;  %v1046_v10 = vadd.f32 %v4827_v12, %v1010_v38  ;;  %v975_v42 = vmul.f32 %v3711_v63, %v4850_v43 }
 0x369   : > { %3716 = vrsqrt.f32 %v914_v46  ;;  %v883_v54 = vmul.f32 0.0078125, %v850_v2 }
 0x36a   : > { %v1065_v28 = vpack.c.bf16 %v1046_v10, %v1045_v21  ;;  %v1011_v14 = vmul.f32 %v4813_v48, %v975_v42 }
 0x36b   : > { %v3713_v11 = vpop.eup %3712  ;;  %v915_v3 = vadd.f32 1e-05, %v883_v54 }
 0x36c   : > { %v852_v34 = vpop.xlane.xlu1 %851  ;;  %1337 = vmatmul.mubr.bf16.gmra.mrb[48].mxu1 %v1065_v28  ;;  %v976_v47 = vmul.f32 %v3713_v11, %v4858_v44  ;;  %v1047_v43 = vadd.f32 %v4827_v12, %v1011_v14 }
 0x36d   : > { %3718 = vrsqrt.f32 %v915_v3  ;;  %v884_v37 = vmul.f32 0.0078125, %v852_v34  ;;  %1346 = vmatprep.mubr.bf16.mxu1 %v4114_v33 }
 0x36e   : > { %v1012_v62 = vmul.f32 %v4813_v48, %v976_v47 }
 0x36f   : > { %v3715_v40 = vpop.eup %3714  ;;  %v916_v7 = vadd.f32 1e-05, %v884_v37 }
 0x370   : > { %v1048_v22 = vadd.f32 %v4827_v12, %v1012_v62  ;;  %v977_v56 = vmul.f32 %v3715_v40, %v4867_v27 }
 0x371   : > { %3720 = vrsqrt.f32 %v916_v7 }
 0x372   : > { %v1066_v18 = vpack.c.bf16 %v1048_v22, %v1047_v43  ;;  %v1013_v41 = vmul.f32 %v4813_v48, %v977_v56 }
 0x373   : > { %v3717_v32 = vpop.eup %3716 }
 0x374   : > { %1347 = vmatmul.mubr.bf16.gmra.mrb[52].mxu1 %v1066_v18  ;;  %v978_v44 = vmul.f32 %v3717_v32, %v4875_v51  ;;  %v1049_v5 = vadd.f32 %v4827_v12, %v1013_v41 }
 0x375   : > { %1356 = vmatprep.mubr.bf16.mxu1 %v4114_v33 }
 0x376   : > { %v1014_v8 = vmul.f32 %v4813_v48, %v978_v44 }
 0x377   : > { %v3719_v19 = vpop.eup %3718 }
 0x378   : > { %v1050_v16 = vadd.f32 %v4827_v12, %v1014_v8  ;;  %v979_v26 = vmul.f32 %v3719_v19, %v4884_v59  ;;  %v350_v59 = vld [vmem:[%s6545_s5] sm:$0xff] }
 0x379   : > { %v1093_v29 = vrot.slane %v350_v59, %v1092_v55 }
 0x37a   : > { %v1067_v27 = vpack.c.bf16 %v1050_v16, %v1049_v5  ;;  %v1015_v51 = vmul.f32 %v4813_v48, %v979_v26 }
 0x37b   : > { %v3721_v13 = vpop.eup %3720 }
 0x37c   : > { %1357 = vmatmul.mubr.bf16.gmra.mrb[56].mxu1 %v1067_v27  ;;  %v980_v45 = vmul.f32 %v3721_v13, %v4892_v25  ;;  %v1051_v53 = vadd.f32 %v4827_v12, %v1015_v51  ;;  %v1089_v25 = vrot.slane %v350_v59, %v4501_v58 }
 0x37d   : > { %1366 = vmatprep.mubr.bf16.mxu1 %v4114_v33  ;;  %v4988_v33 = vrot.slane %v1093_v29, %v4501_v58 }
 0x37e   : > { %v1016_v61 = vmul.f32 %v4813_v48, %v980_v45  ;;  %v4985_v4 = vrot.slane %v1089_v25, %v4501_v58 }
 0x380   : > { %v1052_v17 = vadd.f32 %v4827_v12, %v1016_v61 }
 0x382   : > { %v1068_v20 = vpack.c.bf16 %v1052_v17, %v1051_v53 }
 0x384   : > { %1367 = vmatmul.mubr.bf16.gmra.mrb[60].mxu1 %v1068_v20 }
 0x397   : > { %v1218_v48 = vpop.f32.mrb[0].mxu1 }
 0x398   : > { %v4991_v12 = vadd.f32 %v1218_v48, %v4985_v4  ;;  %v1220_v15 = vpop.f32.mrb[1].mxu1 }
 0x399   : > { %v4994_v52 = vadd.f32 %v1220_v15, %v4988_v33  ;;  %v1222_v36 = vpop.f32.mrb[2].mxu1 }
 0x39a   : > { %v1377_v50 = vmul.f32 %v4991_v12, %v4991_v12  ;;  %v4999_v31 = vadd.f32 %v1222_v36, %v4985_v4  ;;  %v1224_v6 = vpop.f32.mrb[3].mxu1 }
 0x39b   : > { %v1378_v58 = vmul.f32 %v4994_v52, %v4994_v52  ;;  %v5004_v60 = vadd.f32 %v1224_v6, %v4988_v33 }
 0x39c   : > { %v1441_v49 = vmul.f32 %v1377_v50, %v4991_v12  ;;  %v1379_v1 = vmul.f32 %v4999_v31, %v4999_v31 }
 0x39d   : > { %v1442_v24 = vmul.f32 %v1378_v58, %v4994_v52  ;;  %v1380_v35 = vmul.f32 %v5004_v60, %v5004_v60 }
 0x39e   : > { %v1505_v39 = vmul.f32 0.044715, %v1441_v49  ;;  %v1443_v0 = vmul.f32 %v1379_v1, %v4999_v31 }
 0x39f   : > { %v1506_v23 = vmul.f32 0.044715, %v1442_v24  ;;  %v1444_v38 = vmul.f32 %v1380_v35, %v5004_v60  ;;  %v1228_v63 = vpop.f32.mrb[4].mxu1 }
 0x3a0   : > { %v1569_v46 = vadd.f32 %v1505_v39, %v4991_v12  ;;  %v1507_v2 = vmul.f32 0.044715, %v1443_v0  ;;  %v5016_v21 = vadd.f32 %v1228_v63, %v4985_v4  ;;  %v1230_v10 = vpop.f32.mrb[5].mxu1 }
 0x3a1   : > { %v1508_v42 = vmul.f32 0.044715, %v1444_v38  ;;  %v5019_v54 = vadd.f32 %v1230_v10, %v4988_v33  ;;  %v1232_v28 = vpop.f32.mrb[6].mxu1  ;;  %v1570_v11 = vadd.f32 %v1506_v23, %v4994_v52 }
 0x3a2   : > { %v1633_v3 = vmul.f32 0.7978846, %v1569_v46  ;;  %v1571_v34 = vadd.f32 %v1507_v2, %v4999_v31  ;;  %v1381_v47 = vmul.f32 %v5016_v21, %v5016_v21  ;;  %v5026_v14 = vadd.f32 %v1232_v28, %v4985_v4  ;;  %v1234_v37 = vpop.f32.mrb[7].mxu1 }
 0x3a3   : > { %v1382_v62 = vmul.f32 %v5019_v54, %v5019_v54  ;;  %v5031_v40 = vadd.f32 %v1234_v37, %v4988_v33  ;;  %v1572_v7 = vadd.f32 %v1508_v42, %v5004_v60  ;;  %v1634_v43 = vmul.f32 0.7978846, %v1570_v11 }
 0x3a4   : > { %6643 = vst [vmem:[#allocation17_spill] sm:$0xff] %v5026_v14  ;;  %3722 = vtanh.f32 %v1633_v3  ;;  %v1635_v22 = vmul.f32 0.7978846, %v1571_v34  ;;  %v1445_v56 = vmul.f32 %v1381_v47, %v5016_v21  ;;  %v1383_v18 = vmul.f32 %v5026_v14, %v5026_v14 }
 0x3a5   : > { %6644 = vst [vmem:[#allocation18_spill] sm:$0xff] %v5031_v40  ;;  %v1446_v32 = vmul.f32 %v1382_v62, %v5019_v54  ;;  %v1384_v44 = vmul.f32 %v5031_v40, %v5031_v40  ;;  %v1636_v41 = vmul.f32 0.7978846, %v1572_v7  ;;  %3724 = vtanh.f32 %v1634_v43 }
 0x3a6   : > { %3726 = vtanh.f32 %v1635_v22  ;;  %v1509_v8 = vmul.f32 0.044715, %v1445_v56  ;;  %v1447_v19 = vmul.f32 %v1383_v18, %v5026_v14 }
 0x3a7   : > { %v1510_v5 = vmul.f32 0.044715, %v1446_v32  ;;  %v1448_v16 = vmul.f32 %v1384_v44, %v5031_v40  ;;  %v1238_v26 = vpop.f32.mrb[8].mxu1  ;;  %3728 = vtanh.f32 %v1636_v41 }
 0x3a8   : > { %v1511_v27 = vmul.f32 0.044715, %v1447_v19  ;;  %v5043_v13 = vadd.f32 %v1238_v26, %v4985_v4  ;;  %v1240_v45 = vpop.f32.mrb[9].mxu1  ;;  %v1573_v51 = vadd.f32 %v1509_v8, %v5016_v21 }
 0x3a9   : > { %v1512_v61 = vmul.f32 0.044715, %v1448_v16  ;;  %v5047_v53 = vadd.f32 %v1240_v45, %v4988_v33  ;;  %v1242_v17 = vpop.f32.mrb[10].mxu1  ;;  %v1574_v20 = vadd.f32 %v1510_v5, %v5019_v54 }
 0x3aa   : > { %6645 = vst [vmem:[#allocation19_spill] sm:$0xff] %v5043_v13  ;;  %v1385_v59 = vmul.f32 %v5043_v13, %v5043_v13  ;;  %v5053_v55 = vadd.f32 %v1242_v17, %v4985_v4  ;;  %v1244_v25 = vpop.f32.mrb[11].mxu1  ;;  %v1575_v29 = vadd.f32 %v1511_v27, %v5026_v14  ;;  %v1637_v48 = vmul.f32 0.7978846, %v1573_v51 }
 0x3ab   : > { %6646 = vst [vmem:[#allocation20_spill] sm:$0xff] %v5047_v53  ;;  %v1386_v15 = vmul.f32 %v5047_v53, %v5047_v53  ;;  %v5059_v36 = vadd.f32 %v1244_v25, %v4988_v33  ;;  %v1576_v50 = vadd.f32 %v1512_v61, %v5031_v40  ;;  %v1638_v6 = vmul.f32 0.7978846, %v1574_v20 }
 0x3ac   : > { %6647 = vst [vmem:[#allocation21_spill] sm:$0xff] %v5053_v55  ;;  %v1449_v58 = vmul.f32 %v1385_v59, %v5043_v13  ;;  %v1387_v49 = vmul.f32 %v5053_v55, %v5053_v55  ;;  %v1639_v1 = vmul.f32 0.7978846, %v1575_v29  ;;  %3730 = vtanh.f32 %v1637_v48 }
 0x3ad   : > { %6648 = vst [vmem:[#allocation22_spill] sm:$0xff] %v5059_v36  ;;  %v1450_v24 = vmul.f32 %v1386_v15, %v5047_v53  ;;  %v1388_v35 = vmul.f32 %v5059_v36, %v5059_v36  ;;  %v1640_v39 = vmul.f32 0.7978846, %v1576_v50  ;;  %3732 = vtanh.f32 %v1638_v6 }
 0x3ae   : > { %v3723_v0 = vpop.eup %3722  ;;  %v1513_v23 = vmul.f32 0.044715, %v1449_v58  ;;  %v1451_v38 = vmul.f32 %v1387_v49, %v5053_v55  ;;  %3734 = vtanh.f32 %v1639_v1 }
 0x3af   : > { %v3725_v63 = vpop.eup %3724  ;;  %v1761_v46 = vadd.f32 1.0, %v3723_v0  ;;  %v1514_v2 = vmul.f32 0.044715, %v1450_v24  ;;  %v1452_v10 = vmul.f32 %v1388_v35, %v5059_v36  ;;  %v1248_v42 = vpop.f32.mrb[12].mxu1  ;;  %3736 = vtanh.f32 %v1640_v39 }
 0x3b0   : > { %v3727_v28 = vpop.eup %3726  ;;  %v5070_v11 = vmul.f32 0.044715, %v1451_v38  ;;  %v5073_v3 = vadd.f32 %v1248_v42, %v4985_v4  ;;  %v1250_v34 = vpop.f32.mrb[13].mxu1  ;;  %v1762_v47 = vadd.f32 1.0, %v3725_v63  ;;  %v5076_v37 = vadd.f32 %v1513_v23, %v5043_v13 }
 0x3b1   : > { %v3729_v62 = vpop.eup %3728  ;;  %v1825_v7 = vmul.f32 0.5, %v1761_v46  ;;  %v1763_v43 = vadd.f32 1.0, %v3727_v28  ;;  %v1516_v22 = vmul.f32 0.044715, %v1452_v10  ;;  %v5079_v56 = vadd.f32 %v1250_v34, %v4988_v33  ;;  %v1252_v18 = vpop.f32.mrb[14].mxu1 }
 0x3b2   : > { %6649 = vst [vmem:[#allocation23_spill] sm:$0xff] %v5073_v3  ;;  %v1389_v32 = vmul.f32 %v5073_v3, %v5073_v3  ;;  %v5084_v44 = vadd.f32 %v1252_v18, %v4985_v4  ;;  %v1254_v41 = vpop.f32.mrb[15].mxu1  ;;  %v1764_v8 = vadd.f32 1.0, %v3729_v62  ;;  %v1826_v19 = vmul.f32 0.5, %v1762_v47 }
 0x3b3   : > { %6650 = vst [vmem:[#allocation24_spill] sm:$0xff] %v5079_v56  ;;  %v1889_v5 = vmul.f32 %v1825_v7, %v4991_v12  ;;  %v1827_v16 = vmul.f32 0.5, %v1763_v43  ;;  %v1390_v26 = vmul.f32 %v5079_v56, %v5079_v56  ;;  %v5090_v27 = vadd.f32 %v1254_v41, %v4988_v33 }
 0x3b4   : > { %6651 = vst [vmem:[#allocation25_spill] sm:$0xff] %v5084_v44  ;;  %v1453_v45 = vmul.f32 %v1389_v32, %v5073_v3  ;;  %v1391_v51 = vmul.f32 %v5084_v44, %v5084_v44  ;;  %v1828_v61 = vmul.f32 0.5, %v1764_v8  ;;  %v1890_v17 = vmul.f32 %v1826_v19, %v4994_v52 }
 0x3b5   : > { %6652 = vst [vmem:[#allocation26_spill] sm:$0xff] %v5090_v27  ;;  %v1891_v20 = vmul.f32 %v1827_v16, %v4999_v31  ;;  %v1454_v59 = vmul.f32 %v1390_v26, %v5079_v56  ;;  %v1392_v25 = vmul.f32 %v5090_v27, %v5090_v27  ;;  %v1578_v29 = vadd.f32 %v1514_v2, %v5047_v53 }
 0x3b6   : > { %v3731_v48 = vpop.eup %3730  ;;  %v5101_v15 = vmul.f32 0.044715, %v1453_v45  ;;  %v1455_v50 = vmul.f32 %v1391_v51, %v5084_v44  ;;  %v1892_v6 = vmul.f32 %v1828_v61, %v5004_v60  ;;  %v1580_v58 = vadd.f32 %v1516_v22, %v5059_v36 }
 0x3b7   : > { %v3733_v49 = vpop.eup %3732  ;;  %v1518_v1 = vmul.f32 0.044715, %v1454_v59  ;;  %v1456_v24 = vmul.f32 %v1392_v25, %v5090_v27  ;;  %v1258_v35 = vpop.f32.mrb[16].mxu1  ;;  %v1953_v39 = vpack.c.bf16 %v1891_v20, %v1889_v5  ;;  %v1765_v0 = vadd.f32 1.0, %v3731_v48 }
 0x3b8   : > { %v3735_v23 = vpop.eup %3734  ;;  %v5107_v38 = vmul.f32 0.044715, %v1455_v50  ;;  %v5110_v63 = vadd.f32 %v1258_v35, %v4985_v4  ;;  %v1260_v46 = vpop.f32.mrb[17].mxu1  ;;  %v1954_v2 = vpack.c.bf16 %v1892_v6, %v1890_v17  ;;  %v1766_v10 = vadd.f32 1.0, %v3733_v49 }
 0x3b9   : > { %v3737_v42 = vpop.eup %3736  ;;  %v1520_v28 = vmul.f32 0.044715, %v1456_v24  ;;  %v5113_v34 = vadd.f32 %v1260_v46, %v4988_v33  ;;  %v1262_v47 = vpop.f32.mrb[18].mxu1  ;;  %v1767_v62 = vadd.f32 1.0, %v3735_v23  ;;  %v1829_v7 = vmul.f32 0.5, %v1765_v0 }
 0x3ba   : > { %v1393_v43 = vmul.f32 %v5110_v63, %v5110_v63  ;;  %v5118_v22 = vadd.f32 %v1262_v47, %v4985_v4  ;;  %v1264_v18 = vpop.f32.mrb[19].mxu1  ;;  %2227 = vmatprep.mubr.bf16.mxu0 %v1954_v2  ;;  %v1768_v32 = vadd.f32 1.0, %v3737_v42  ;;  %v1830_v41 = vmul.f32 0.5, %v1766_v10 }
 0x3bb   : > { %v1394_v8 = vmul.f32 %v5113_v34, %v5113_v34  ;;  %v5123_v19 = vadd.f32 %v1264_v18, %v4988_v33  ;;  %2228 = vmatmul.mubr.bf16.vlgmr.msra.gmra.mrb[32].mxu0 %v1953_v39  ;;  %v1831_v5 = vmul.f32 0.5, %v1767_v62  ;;  %v1893_v16 = vmul.f32 %v1829_v7, %v5016_v21 }
 0x3bc   : > { %v1457_v26 = vmul.f32 %v1393_v43, %v5110_v63  ;;  %v1395_v45 = vmul.f32 %v5118_v22, %v5118_v22  ;;  %v1832_v51 = vmul.f32 0.5, %v1768_v32  ;;  %v1894_v61 = vmul.f32 %v1830_v41, %v5019_v54 }
 0x3bd   : > { %v1458_v17 = vmul.f32 %v1394_v8, %v5113_v34  ;;  %v1396_v20 = vmul.f32 %v5123_v19, %v5123_v19  ;;  %v1895_v59 = vmul.f32 %v1831_v5, %v5026_v14  ;;  %v1642_v25 = vmul.f32 0.7978846, %v1578_v29 }
 0x3be   : > { %v5134_v48 = vmul.f32 0.044715, %v1457_v26  ;;  %v1459_v50 = vmul.f32 %v1395_v45, %v5118_v22  ;;  %v1896_v6 = vmul.f32 %v1832_v51, %v5031_v40  ;;  %v1644_v49 = vmul.f32 0.7978846, %v1580_v58 }
 0x3bf   : > { %v1522_v24 = vmul.f32 0.044715, %v1458_v17  ;;  %v1460_v35 = vmul.f32 %v1396_v20, %v5123_v19  ;;  %v1268_v39 = vpop.f32.mrb[20].mxu1  ;;  %v1955_v0 = vpack.c.bf16 %v1895_v59, %v1893_v16  ;;  %3738 = vtanh.f32 %v1642_v25 }
 0x3c0   : > { %v5139_v23 = vmul.f32 0.044715, %v1459_v50  ;;  %v5142_v46 = vadd.f32 %v1268_v39, %v4985_v4  ;;  %v1270_v2 = vpop.f32.mrb[21].mxu1  ;;  %v1956_v29 = vpack.c.bf16 %v1896_v6, %v1894_v61  ;;  %3740 = vtanh.f32 %v1644_v49 }
 0x3c1   : > { %v1524_v10 = vmul.f32 0.044715, %v1460_v35  ;;  %v5145_v42 = vadd.f32 %v1270_v2, %v4988_v33  ;;  %v1272_v47 = vpop.f32.mrb[22].mxu1  ;;  %v1579_v58 = vadd.f32 %v5070_v11, %v5053_v55  ;;  %v1641_v62 = vmul.f32 0.7978846, %v5076_v37 }
 0x3c2   : > { %v1397_v7 = vmul.f32 %v5142_v46, %v5142_v46  ;;  %v5153_v43 = vadd.f32 %v1272_v47, %v4985_v4  ;;  %v1274_v18 = vpop.f32.mrb[23].mxu1  ;;  %2237 = vmatprep.mubr.bf16.mxu0 %v1956_v29  ;;  %v1582_v32 = vadd.f32 %v1518_v1, %v5079_v56  ;;  %v1584_v41 = vadd.f32 %v1520_v28, %v5090_v27 }
 0x3c3   : > { %v1398_v8 = vmul.f32 %v5145_v42, %v5145_v42  ;;  %v5160_v5 = vadd.f32 %v1274_v18, %v4988_v33  ;;  %2238 = vmatmul.mubr.bf16.gmra.mrb[36].mxu0 %v1955_v0  ;;  %v1643_v11 = vmul.f32 0.7978846, %v1579_v58  ;;  %3742 = vtanh.f32 %v1641_v62 }
 0x3c4   : > { %v1461_v37 = vmul.f32 %v1397_v7, %v5142_v46  ;;  %v1399_v16 = vmul.f32 %v5153_v43, %v5153_v43  ;;  %v1646_v26 = vmul.f32 0.7978846, %v1582_v32  ;;  %v1648_v45 = vmul.f32 0.7978846, %v1584_v41 }
 0x3c5   : > { %v1462_v1 = vmul.f32 %v1398_v8, %v5145_v42  ;;  %v1400_v28 = vmul.f32 %v5160_v5, %v5160_v5  ;;  %3744 = vtanh.f32 %v1643_v11  ;;  %v1581_v51 = vadd.f32 %v5101_v15, %v5073_v3 }
 0x3c6   : > { %v5170_v61 = vmul.f32 0.044715, %v1461_v37  ;;  %v1463_v17 = vmul.f32 %v1399_v16, %v5153_v43  ;;  %3746 = vtanh.f32 %v1646_v26  ;;  %v1583_v20 = vadd.f32 %v5107_v38, %v5084_v44 }
 0x3c7   : > { %v5175_v59 = vmul.f32 0.044715, %v1462_v1  ;;  %v1278_v25 = vpop.f32.mrb[24].mxu1  ;;  %3748 = vtanh.f32 %v1648_v45  ;;  %v1645_v50 = vmul.f32 0.7978846, %v1581_v51  ;;  %v1464_v6 = vmul.f32 %v1400_v28, %v5160_v5 }
 0x3c8   : > { %v5179_v49 = vadd.f32 %v1278_v25, %v4985_v4  ;;  %v1280_v35 = vpop.f32.mrb[25].mxu1  ;;  %v1647_v15 = vmul.f32 0.7978846, %v1583_v20  ;;  %v1586_v39 = vadd.f32 %v1522_v24, %v5113_v34  ;;  %v5182_v2 = vmul.f32 0.044715, %v1463_v17 }
 0x3c9   : > { %v3739_v0 = vpop.eup %3738  ;;  %v5185_v29 = vadd.f32 %v1280_v35, %v4988_v33  ;;  %v1282_v38 = vpop.f32.mrb[26].mxu1  ;;  %3750 = vtanh.f32 %v1645_v50  ;;  %v1588_v47 = vadd.f32 %v1524_v10, %v5123_v19  ;;  %v5204_v17 = vmul.f32 0.044715, %v1464_v6 }
 0x3ca   : > { %v3741_v58 = vpop.eup %3740  ;;  %v1401_v62 = vmul.f32 %v5179_v49, %v5179_v49  ;;  %v5191_v7 = vadd.f32 %v1282_v38, %v4985_v4  ;;  %v1284_v18 = vpop.f32.mrb[27].mxu1  ;;  %v1770_v32 = vadd.f32 1.0, %v3739_v0  ;;  %3752 = vtanh.f32 %v1647_v15 }
 0x3cb   : > { %v1402_v24 = vmul.f32 %v5185_v29, %v5185_v29  ;;  %v5196_v41 = vadd.f32 %v1284_v18, %v4988_v33  ;;  %v1772_v8 = vadd.f32 1.0, %v3741_v58  ;;  %v1650_v11 = vmul.f32 0.7978846, %v1586_v39 }
 0x3cc   : > { %v1465_v10 = vmul.f32 %v1401_v62, %v5179_v49  ;;  %v1403_v37 = vmul.f32 %v5191_v7, %v5191_v7  ;;  %v1834_v16 = vmul.f32 0.5, %v1770_v32  ;;  %v1652_v26 = vmul.f32 0.7978846, %v1588_v47 }
 0x3cd   : > { %6653 = vst [vmem:[#allocation27_spill] sm:$0xff] %v5196_v41  ;;  %v3743_v45 = vpop.eup %3742  ;;  %v1466_v1 = vmul.f32 %v1402_v24, %v5185_v29  ;;  %v1404_v28 = vmul.f32 %v5196_v41, %v5196_v41  ;;  %v1836_v51 = vmul.f32 0.5, %v1772_v8  ;;  %3754 = vtanh.f32 %v1650_v11 }
 0x3ce   : > { %v5206_v20 = vmul.f32 0.044715, %v1465_v10  ;;  %v1769_v25 = vadd.f32 1.0, %v3743_v45  ;;  %v1467_v35 = vmul.f32 %v1403_v37, %v5191_v7  ;;  %v1898_v15 = vmul.f32 %v1834_v16, %v5047_v53 }
 0x3cf   : > { %v3745_v50 = vpop.eup %3744  ;;  %v1900_v39 = vmul.f32 %v1836_v51, %v5059_v36  ;;  %v1288_v0 = vpop.f32.mrb[28].mxu1  ;;  %3756 = vtanh.f32 %v1652_v26  ;;  %v5211_v47 = vmul.f32 0.044715, %v1466_v1  ;;  %v1468_v24 = vmul.f32 %v1404_v28, %v5196_v41 }
 0x3d0   : > { %v3747_v38 = vpop.eup %3746  ;;  %v1771_v58 = vadd.f32 1.0, %v3745_v50  ;;  %v1833_v62 = vmul.f32 0.5, %v1769_v25  ;;  %v5214_v6 = vadd.f32 %v1288_v0, %v4985_v4  ;;  %v1290_v18 = vpop.f32.mrb[29].mxu1 }
 0x3d1   : > { %v3749_v32 = vpop.eup %3748  ;;  %v1958_v8 = vpack.c.bf16 %v1900_v39, %v1898_v15  ;;  %v5218_v11 = vadd.f32 %v1290_v18, %v4988_v33  ;;  %v1292_v10 = vpop.f32.mrb[30].mxu1  ;;  %v1774_v37 = vadd.f32 1.0, %v3747_v38  ;;  %v5240_v36 = vmul.f32 0.044715, %v1468_v24 }
 0x3d2   : > { %6654 = vst [vmem:[#allocation28_spill] sm:$0xff] %v5214_v6  ;;  %v1835_v16 = vmul.f32 0.5, %v1771_v58  ;;  %v1897_v26 = vmul.f32 %v1833_v62, %v5043_v13  ;;  %v1405_v45 = vmul.f32 %v5214_v6, %v5214_v6  ;;  %v5224_v1 = vadd.f32 %v1292_v10, %v4985_v4  ;;  %v1294_v51 = vpop.f32.mrb[31].mxu1 }
 0x3d3   : > { %6655 = vst [vmem:[#allocation29_spill] sm:$0xff] %v5218_v11  ;;  %v3751_v25 = vpop.eup %3750  ;;  %2247 = vmatprep.mubr.bf16.mxu0 %v1958_v8  ;;  %v1406_v28 = vmul.f32 %v5218_v11, %v5218_v11  ;;  %v5229_v50 = vadd.f32 %v1294_v51, %v4988_v33  ;;  %v1776_v15 = vadd.f32 1.0, %v3749_v32  ;;  %v1838_v39 = vmul.f32 0.5, %v1774_v37 }
 0x3d4   : > { %6656 = vst [vmem:[#allocation30_spill] sm:$0xff] %v5224_v1  ;;  %v3753_v0 = vpop.eup %3752  ;;  %v1899_v38 = vmul.f32 %v1835_v16, %v5053_v55  ;;  %v1469_v58 = vmul.f32 %v1405_v45, %v5214_v6  ;;  %v1407_v62 = vmul.f32 %v5224_v1, %v5224_v1  ;;  %v1773_v18 = vadd.f32 1.0, %v3751_v25 }
 0x3d5   : > { %6657 = vst [vmem:[#allocation31_spill] sm:$0xff] %v5229_v50  ;;  %v5235_v10 = vmul.f32 0.044715, %v1467_v35  ;;  %v1470_v8 = vmul.f32 %v1406_v28, %v5218_v11  ;;  %v1408_v30 = vmul.f32 %v5229_v50, %v5229_v50  ;;  %v1840_v51 = vmul.f32 0.5, %v1776_v15 }
 0x3d6   : > { %v1957_v32 = vpack.c.bf16 %v1899_v38, %v1897_v26  ;;  %v1471_v37 = vmul.f32 %v1407_v62, %v5224_v1  ;;  %v1775_v16 = vadd.f32 1.0, %v3753_v0  ;;  %v5243_v45 = vmul.f32 0.044715, %v1469_v58 }
 0x3d7   : > { %v3755_v55 = vpop.eup %3754  ;;  %v5245_v53 = vmul.f32 0.044715, %v1470_v8  ;;  %v1902_v35 = vmul.f32 %v1838_v39, %v5079_v56  ;;  %v1904_v25 = vmul.f32 %v1840_v51, %v5090_v27  ;;  %v1298_v28 = vpop.f32.mrb[32].mxu1  ;;  %v1837_v13 = vmul.f32 0.5, %v1773_v18 }
 0x3d8   : > { %2248 = vmatmul.mubr.bf16.gmra.mrb[40].mxu0 %v1957_v32  ;;  %v1839_v40 = vmul.f32 0.5, %v1775_v16  ;;  %v5250_v24 = vadd.f32 %v1298_v28, %v4985_v4  ;;  %v1300_v26 = vpop.f32.mrb[33].mxu1  ;;  %v1778_v15 = vadd.f32 1.0, %v3755_v55  ;;  %v5252_v0 = vmul.f32 0.044715, %v1471_v37 }
 0x3d9   : > { %v3757_v38 = vpop.eup %3756  ;;  %v1472_v58 = vmul.f32 %v1408_v30, %v5229_v50  ;;  %v1960_v62 = vpack.c.bf16 %v1904_v25, %v1902_v35  ;;  %v5256_v8 = vadd.f32 %v1300_v26, %v4988_v33  ;;  %v1302_v39 = vpop.f32.mrb[34].mxu1  ;;  %v1585_v25 = vadd.f32 %v5134_v48, %v5110_v63 }
 0x3da   : > { %6658 = vst [vmem:[#allocation32_spill] sm:$0xff] %v5250_v24  ;;  %v1903_v51 = vmul.f32 %v1839_v40, %v5084_v44  ;;  %v1409_v18 = vmul.f32 %v5250_v24, %v5250_v24  ;;  %v5262_v32 = vadd.f32 %v1302_v39, %v4985_v4  ;;  %v1304_v16 = vpop.f32.mrb[35].mxu1  ;;  %v1780_v55 = vadd.f32 1.0, %v3757_v38 }
 0x3db   : > { %6659 = vst [vmem:[#allocation33_spill] sm:$0xff] %v5256_v8  ;;  %2257 = vmatprep.mubr.bf16.mxu0 %v1960_v62  ;;  %v1410_v37 = vmul.f32 %v5256_v8, %v5256_v8  ;;  %v5267_v30 = vadd.f32 %v1304_v16, %v4988_v33  ;;  %v1842_v35 = vmul.f32 0.5, %v1778_v15  ;;  %v1901_v40 = vmul.f32 %v1837_v13, %v5073_v3 }
 0x3dc   : > { %6660 = vst [vmem:[#allocation34_spill] sm:$0xff] %v5262_v32  ;;  %v1473_v28 = vmul.f32 %v1409_v18, %v5250_v24  ;;  %v1411_v26 = vmul.f32 %v5262_v32, %v5262_v32  ;;  %v1844_v39 = vmul.f32 0.5, %v1780_v55  ;;  %v1536_v38 = vmul.f32 0.044715, %v1472_v58 }
 0x3dd   : > { %6661 = vst [vmem:[#allocation35_spill] sm:$0xff] %v5267_v30  ;;  %v1474_v62 = vmul.f32 %v1410_v37, %v5256_v8  ;;  %v1412_v27 = vmul.f32 %v5267_v30, %v5267_v30  ;;  %v1587_v15 = vadd.f32 %v5139_v23, %v5118_v22  ;;  %v1959_v16 = vpack.c.bf16 %v1903_v51, %v1901_v40 }
 0x3de   : > { %v1906_v48 = vmul.f32 %v1842_v35, %v5113_v34  ;;  %v1908_v13 = vmul.f32 %v1844_v39, %v5123_v19  ;;  %v1649_v44 = vmul.f32 0.7978846, %v1585_v25  ;;  %v5282_v18 = vmul.f32 0.044715, %v1473_v28 }
 0x3df   : > { %v1475_v56 = vmul.f32 %v1411_v26, %v5262_v32  ;;  %v1651_v55 = vmul.f32 0.7978846, %v1587_v15  ;;  %v1308_v58 = vpop.f32.mrb[36].mxu1  ;;  %v1590_v37 = vadd.f32 %v5175_v59, %v5145_v42  ;;  %v1538_v3 = vmul.f32 0.044715, %v1474_v62 }
 0x3e0   : > { %2258 = vmatmul.mubr.bf16.gmra.mrb[44].mxu0 %v1959_v16  ;;  %v1962_v14 = vpack.c.bf16 %v1908_v13, %v1906_v48  ;;  %3758 = vtanh.f32 %v1649_v44  ;;  %v5288_v23 = vadd.f32 %v1308_v58, %v4985_v4  ;;  %v1310_v51 = vpop.f32.mrb[37].mxu1  ;;  %v1476_v35 = vmul.f32 %v1412_v27, %v5267_v30 }
 0x3e1   : > { %3760 = vtanh.f32 %v1651_v55  ;;  %v5292_v25 = vadd.f32 %v1310_v51, %v4988_v33  ;;  %v1312_v40 = vpop.f32.mrb[38].mxu1  ;;  %v1592_v28 = vadd.f32 %v5204_v17, %v5160_v5  ;;  %v1654_v39 = vmul.f32 0.7978846, %v1590_v37 }
 0x3e2   : > { %6662 = vst [vmem:[#allocation36_spill] sm:$0xff] %v5288_v23  ;;  %2267 = vmatprep.mubr.bf16.mxu0 %v1962_v14  ;;  %v1413_v59 = vmul.f32 %v5288_v23, %v5288_v23  ;;  %v5299_v44 = vadd.f32 %v1312_v40, %v4985_v4  ;;  %v1314_v26 = vpop.f32.mrb[39].mxu1  ;;  %v1589_v27 = vadd.f32 %v5170_v61, %v5142_v46  ;;  %v1539_v17 = vmul.f32 0.044715, %v1475_v56 }
 0x3e3   : > { %6663 = vst [vmem:[#allocation37_spill] sm:$0xff] %v5292_v25  ;;  %v1414_v62 = vmul.f32 %v5292_v25, %v5292_v25  ;;  %v5306_v15 = vadd.f32 %v1314_v26, %v4988_v33  ;;  %v1656_v16 = vmul.f32 0.7978846, %v1592_v28  ;;  %v1591_v14 = vadd.f32 %v5182_v2, %v5153_v43 }
 0x3e4   : > { %6664 = vst [vmem:[#allocation38_spill] sm:$0xff] %v5299_v44  ;;  %v1415_v48 = vmul.f32 %v5299_v44, %v5299_v44  ;;  %3762 = vtanh.f32 %v1654_v39  ;;  %v1653_v13 = vmul.f32 0.7978846, %v1589_v27  ;;  %v1540_v37 = vmul.f32 0.044715, %v1476_v35 }
 0x3e5   : > { %6665 = vst [vmem:[#allocation39_spill] sm:$0xff] %v5306_v15  ;;  %v1478_v55 = vmul.f32 %v1414_v62, %v5292_v25  ;;  %v1416_v61 = vmul.f32 %v5306_v15, %v5306_v15  ;;  %3764 = vtanh.f32 %v1656_v16  ;;  %v1655_v58 = vmul.f32 0.7978846, %v1591_v14 }
 0x3e6   : > { %v5316_v51 = vmul.f32 %v1413_v59, %v5288_v23  ;;  %3766 = vtanh.f32 %v1653_v13  ;;  %v1594_v56 = vadd.f32 %v5211_v47, %v5185_v29  ;;  %v5321_v2 = vmul.f32 %v1415_v48, %v5299_v44 }
 0x3e7   : > { %v1480_v40 = vmul.f32 %v1416_v61, %v5306_v15  ;;  %3768 = vtanh.f32 %v1655_v58  ;;  %v1596_v28 = vadd.f32 %v5240_v36, %v5196_v41  ;;  %v1542_v26 = vmul.f32 0.044715, %v1478_v55 }
 0x3e8   : > { %v1658_v39 = vmul.f32 0.7978846, %v1594_v56  ;;  %v1593_v35 = vadd.f32 %v5206_v20, %v5179_v49  ;;  %v1595_v59 = vadd.f32 %v5235_v10, %v5191_v7  ;;  %v1598_v47 = vadd.f32 %v5245_v53, %v5218_v11 }
 0x3e9   : > { %v1544_v27 = vmul.f32 0.044715, %v1480_v40  ;;  %v1660_v62 = vmul.f32 0.7978846, %v1596_v28  ;;  %v1600_v16 = vadd.f32 %v1536_v38, %v5229_v50  ;;  %v1597_v36 = vadd.f32 %v5243_v45, %v5214_v6 }
 0x3ea   : > { %v3759_v14 = vpop.eup %3758  ;;  %3770 = vtanh.f32 %v1658_v39  ;;  %v1657_v48 = vmul.f32 0.7978846, %v1593_v35  ;;  %v1659_v13 = vmul.f32 0.7978846, %v1595_v59  ;;  %v1662_v20 = vmul.f32 0.7978846, %v1598_v47 }
 0x3eb   : > { %v3761_v55 = vpop.eup %3760  ;;  %v1777_v61 = vadd.f32 1.0, %v3759_v14  ;;  %3772 = vtanh.f32 %v1660_v62  ;;  %v1664_v58 = vmul.f32 0.7978846, %v1600_v16  ;;  %v1599_v56 = vadd.f32 %v5252_v0, %v5224_v1 }
 0x3ec   : > { %v1779_v10 = vadd.f32 1.0, %v3761_v55  ;;  %3774 = vtanh.f32 %v1657_v48  ;;  %v1661_v53 = vmul.f32 0.7978846, %v1597_v36  ;;  %v1602_v38 = vadd.f32 %v1538_v3, %v5256_v8 }
 0x3ed   : > { %v1841_v40 = vmul.f32 0.5, %v1777_v61  ;;  %3776 = vtanh.f32 %v1659_v13  ;;  %v1604_v28 = vadd.f32 %v1540_v37, %v5267_v30  ;;  %v1663_v45 = vmul.f32 0.7978846, %v1599_v56 }
 0x3ee   : > { %v3763_v39 = vpop.eup %3762  ;;  %v1843_v35 = vmul.f32 0.5, %v1779_v10  ;;  %3778 = vtanh.f32 %v1662_v20  ;;  %v1601_v59 = vadd.f32 %v5282_v18, %v5250_v24  ;;  %v1666_v0 = vmul.f32 0.7978846, %v1602_v38 }
 0x3ef   : > { %v3765_v62 = vpop.eup %3764  ;;  %v1905_v47 = vmul.f32 %v1841_v40, %v5110_v63  ;;  %v1782_v16 = vadd.f32 1.0, %v3763_v39  ;;  %3780 = vtanh.f32 %v1664_v58  ;;  %v1668_v3 = vmul.f32 0.7978846, %v1604_v28 }
 0x3f0   : > { %v3767_v14 = vpop.eup %3766  ;;  %v1907_v48 = vmul.f32 %v1843_v35, %v5118_v22  ;;  %v1784_v13 = vadd.f32 1.0, %v3765_v62  ;;  %3782 = vtanh.f32 %v1661_v53  ;;  %v1603_v61 = vadd.f32 %v1539_v17, %v5262_v32 }
 0x3f1   : > { %v3769_v37 = vpop.eup %3768  ;;  %v1846_v36 = vmul.f32 0.5, %v1782_v16  ;;  %v1781_v55 = vadd.f32 1.0, %v3767_v14  ;;  %3784 = vtanh.f32 %v1663_v45  ;;  %v1606_v39 = vadd.f32 %v1542_v26, %v5292_v25 }
 0x3f2   : > { %v1961_v20 = vpack.c.bf16 %v1907_v48, %v1905_v47  ;;  %v1848_v18 = vmul.f32 0.5, %v1784_v13  ;;  %v1783_v10 = vadd.f32 1.0, %v3769_v37  ;;  %3786 = vtanh.f32 %v1666_v0 }
 0x3f3   : > { %v1910_v56 = vmul.f32 %v1846_v36, %v5145_v42  ;;  %v1845_v58 = vmul.f32 0.5, %v1781_v55  ;;  %3788 = vtanh.f32 %v1668_v3  ;;  %v1667_v28 = vmul.f32 0.7978846, %v1603_v61 }
 0x3f4   : > { %v3771_v40 = vpop.eup %3770  ;;  %2268 = vmatmul.mubr.bf16.gmra.mrb[48].mxu0 %v1961_v20  ;;  %v1912_v38 = vmul.f32 %v1848_v18, %v5160_v5  ;;  %v1847_v53 = vmul.f32 0.5, %v1783_v10  ;;  %v1541_v45 = vmul.f32 0.044715, %v5316_v51  ;;  %v1543_v17 = vmul.f32 0.044715, %v5321_v2 }
 0x3f5   : > { %v3773_v35 = vpop.eup %3772  ;;  %v1786_v62 = vadd.f32 1.0, %v3771_v40  ;;  %v1608_v47 = vadd.f32 %v1544_v27, %v5306_v15  ;;  %v1665_v13 = vmul.f32 0.7978846, %v1601_v59  ;;  %v1909_v37 = vmul.f32 %v1845_v58, %v5142_v46 }
 0x3f6   : > { %v3775_v16 = vpop.eup %3774  ;;  %v1964_v0 = vpack.c.bf16 %v1912_v38, %v1910_v56  ;;  %v1911_v14 = vmul.f32 %v1847_v53, %v5153_v43  ;;  %v1788_v48 = vadd.f32 1.0, %v3773_v35  ;;  %v1670_v55 = vmul.f32 0.7978846, %v1606_v39 }
 0x3f7   : > { %v3777_v3 = vpop.eup %3776  ;;  %v1850_v36 = vmul.f32 0.5, %v1786_v62  ;;  %v1672_v26 = vmul.f32 0.7978846, %v1608_v47  ;;  %v1785_v20 = vadd.f32 1.0, %v3775_v16  ;;  %3790 = vtanh.f32 %v1667_v28 }
 0x3f8   : > { %v3779_v61 = vpop.eup %3778  ;;  %2277 = vmatprep.mubr.bf16.mxu0 %v1964_v0  ;;  %v1852_v51 = vmul.f32 0.5, %v1788_v48  ;;  %v1787_v2 = vadd.f32 1.0, %v3777_v3  ;;  %v1963_v27 = vpack.c.bf16 %v1911_v14, %v1909_v37  ;;  %3792 = vtanh.f32 %v1670_v55 }
 0x3f9   : > { %v3781_v18 = vpop.eup %3780  ;;  %v1914_v10 = vmul.f32 %v1850_v36, %v5185_v29  ;;  %v1790_v56 = vadd.f32 1.0, %v3779_v61  ;;  %3794 = vtanh.f32 %v1672_v26  ;;  %v1605_v35 = vadd.f32 %v1541_v45, %v5288_v23 }
 0x3fa   : > { %v3783_v40 = vpop.eup %3782  ;;  %v1916_v59 = vmul.f32 %v1852_v51, %v5196_v41  ;;  %v1851_v38 = vmul.f32 0.5, %v1787_v2  ;;  %v1792_v58 = vadd.f32 1.0, %v3781_v18  ;;  %3796 = vtanh.f32 %v1665_v13 }
 0x3fb   : > { %v3785_v53 = vpop.eup %3784  ;;  %v1854_v39 = vmul.f32 0.5, %v1790_v56  ;;  %v1607_v62 = vadd.f32 %v1543_v17, %v5299_v44  ;;  %v1849_v16 = vmul.f32 0.5, %v1785_v20  ;;  %v1669_v26 = vmul.f32 0.7978846, %v1605_v35 }
 0x3fc   : > { %v3787_v28 = vpop.eup %3786  ;;  %2278 = vmatmul.mubr.bf16.gmra.mrb[52].mxu0 %v1963_v27  ;;  %v1966_v47 = vpack.c.bf16 %v1916_v59, %v1914_v10  ;;  %v1856_v0 = vmul.f32 0.5, %v1792_v58  ;;  %v1915_v48 = vmul.f32 %v1851_v38, %v5191_v7  ;;  %v1791_v37 = vadd.f32 1.0, %v3785_v53 }
 0x3fd   : > { %v3789_v14 = vpop.eup %3788  ;;  %v1918_v55 = vmul.f32 %v1854_v39, %v5218_v11  ;;  %v1794_v13 = vadd.f32 1.0, %v3787_v28  ;;  %v1671_v45 = vmul.f32 0.7978846, %v1607_v62  ;;  %v1913_v17 = vmul.f32 %v1849_v16, %v5179_v49 }
 0x3fe   : > { %2287 = vmatprep.mubr.bf16.mxu0 %v1966_v47  ;;  %v1920_v3 = vmul.f32 %v1856_v0, %v5229_v50  ;;  %v1796_v36 = vadd.f32 1.0, %v3789_v14  ;;  %v1789_v61 = vadd.f32 1.0, %v3783_v40  ;;  %v1855_v27 = vmul.f32 0.5, %v1791_v37 }
 0x3ff   : > { %3798 = vtanh.f32 %v1671_v45  ;;  %v1965_v18 = vpack.c.bf16 %v1915_v48, %v1913_v17  ;;  %v1858_v56 = vmul.f32 0.5, %v1794_v13 }
 0x400   : > { %v1968_v51 = vpack.c.bf16 %v1920_v3, %v1918_v55  ;;  %v1860_v2 = vmul.f32 0.5, %v1796_v36  ;;  %3800 = vtanh.f32 %v1669_v26  ;;  %v1853_v38 = vmul.f32 0.5, %v1789_v61 }
 0x401   : > { %v3791_v20 = vpop.eup %3790  ;;  %v1919_v35 = vmul.f32 %v1855_v27, %v5224_v1  ;;  %v1922_v62 = vmul.f32 %v1858_v56, %v5256_v8 }
 0x402   : > { %v3793_v10 = vpop.eup %3792  ;;  %v1924_v53 = vmul.f32 %v1860_v2, %v5267_v30  ;;  %v1795_v40 = vadd.f32 1.0, %v3791_v20  ;;  %v1917_v47 = vmul.f32 %v1853_v38, %v5214_v6 }
 0x403   : > { %v3795_v59 = vpop.eup %3794  ;;  %v1798_v28 = vadd.f32 1.0, %v3793_v10 }
 0x404   : > { %2288 = vmatmul.mubr.bf16.gmra.mrb[56].mxu0 %v1965_v18  ;;  %v3797_v58 = vpop.eup %3796  ;;  %v1800_v39 = vadd.f32 1.0, %v3795_v59  ;;  %v1970_v0 = vpack.c.bf16 %v1924_v53, %v1922_v62  ;;  %v1967_v48 = vpack.c.bf16 %v1919_v35, %v1917_v47  ;;  %v1859_v3 = vmul.f32 0.5, %v1795_v40 }
 0x405   : > { %2297 = vmatprep.mubr.bf16.mxu0 %v1968_v51  ;;  %v1793_v16 = vadd.f32 1.0, %v3797_v58  ;;  %v1862_v36 = vmul.f32 0.5, %v1798_v28 }
 0x406   : > { %v1864_v14 = vmul.f32 0.5, %v1800_v39  ;;  %v1923_v45 = vmul.f32 %v1859_v3, %v5262_v32 }
 0x407   : > { %v1857_v55 = vmul.f32 0.5, %v1793_v16  ;;  %v1926_v61 = vmul.f32 %v1862_v36, %v5292_v25 }
 0x408   : > { %v1928_v26 = vmul.f32 %v1864_v14, %v5306_v15 }
 0x409   : > { %v3799_v37 = vpop.eup %3798  ;;  %v1921_v51 = vmul.f32 %v1857_v55, %v5250_v24 }
 0x40a   : > { %v3801_v13 = vpop.eup %3800  ;;  %v1799_v17 = vadd.f32 1.0, %v3799_v37  ;;  %v1972_v20 = vpack.c.bf16 %v1928_v26, %v1926_v61 }
 0x40b   : > { %v1797_v2 = vadd.f32 1.0, %v3801_v13  ;;  %v1969_v18 = vpack.c.bf16 %v1923_v45, %v1921_v51 }
 0x40c   : > { %2298 = vmatmul.mubr.bf16.gmra.mrb[60].mxu0 %v1967_v48  ;;  %v1863_v27 = vmul.f32 0.5, %v1799_v17 }
 0x40d   : > { %2307 = vmatprep.mubr.bf16.mxu0 %v1970_v0  ;;  %v1861_v10 = vmul.f32 0.5, %v1797_v2 }
 0x40e   : > { %v1927_v56 = vmul.f32 %v1863_v27, %v5299_v44 }
 0x40f   : > { %v1925_v59 = vmul.f32 %v1861_v10, %v5288_v23 }
 0x411   : > { %v1971_v38 = vpack.c.bf16 %v1927_v56, %v1925_v59 }
 0x414   : > { %2308 = vmatmul.mubr.bf16.gmra.mrb[64].mxu0 %v1969_v18 }
 0x415   : > { %2317 = vmatprep.mubr.bf16.mxu0 %v1972_v20 }
 0x41c   : > { %2318 = vmatmul.mubr.bf16.gmra.mrb[68].mxu0 %v1971_v38 }
 0x42f   : > { %v1318_v58 = vpop.f32.mrb[40].mxu1 }
 0x430   : > { %v5371_v53 = vadd.f32 %v1318_v58, %v4985_v4  ;;  %v1320_v39 = vpop.f32.mrb[41].mxu1 }
 0x431   : > { %v5374_v35 = vadd.f32 %v1320_v39, %v4988_v33  ;;  %v1322_v40 = vpop.f32.mrb[42].mxu1 }
 0x432   : > { %v1417_v62 = vmul.f32 %v5371_v53, %v5371_v53  ;;  %v5379_v28 = vadd.f32 %v1322_v40, %v4985_v4  ;;  %v1324_v47 = vpop.f32.mrb[43].mxu1 }
 0x433   : > { %6666 = vst [vmem:[#allocation40_spill] sm:$0xff] %v5374_v35  ;;  %v1418_v16 = vmul.f32 %v5374_v35, %v5374_v35  ;;  %v5384_v0 = vadd.f32 %v1324_v47, %v4988_v33 }
 0x434   : > { %6667 = vst [vmem:[#allocation41_spill] sm:$0xff] %v5379_v28  ;;  %v1481_v14 = vmul.f32 %v1417_v62, %v5371_v53  ;;  %v1419_v48 = vmul.f32 %v5379_v28, %v5379_v28 }
 0x435   : > { %6668 = vst [vmem:[#allocation42_spill] sm:$0xff] %v5384_v0  ;;  %v1482_v3 = vmul.f32 %v1418_v16, %v5374_v35  ;;  %v1420_v37 = vmul.f32 %v5384_v0, %v5384_v0 }
 0x436   : > { %v1545_v36 = vmul.f32 0.044715, %v1481_v14  ;;  %v1483_v55 = vmul.f32 %v1419_v48, %v5379_v28 }
 0x437   : > { %v1546_v13 = vmul.f32 0.044715, %v1482_v3  ;;  %v1484_v26 = vmul.f32 %v1420_v37, %v5384_v0  ;;  %v1328_v45 = vpop.f32.mrb[44].mxu1 }
 0x438   : > { %v1547_v17 = vmul.f32 0.044715, %v1483_v55  ;;  %v5395_v61 = vadd.f32 %v1328_v45, %v4985_v4  ;;  %v1330_v51 = vpop.f32.mrb[45].mxu1  ;;  %v1609_v2 = vadd.f32 %v1545_v36, %v5371_v53 }
 0x439   : > { %v1548_v20 = vmul.f32 0.044715, %v1484_v26  ;;  %v5399_v18 = vadd.f32 %v1330_v51, %v4988_v33  ;;  %v1332_v27 = vpop.f32.mrb[46].mxu1  ;;  %v1610_v10 = vadd.f32 %v1546_v13, %v5374_v35 }
 0x43a   : > { %6669 = vst [vmem:[#allocation43_spill] sm:$0xff] %v5395_v61  ;;  %v1421_v56 = vmul.f32 %v5395_v61, %v5395_v61  ;;  %v5405_v59 = vadd.f32 %v1332_v27, %v4985_v4  ;;  %v1334_v38 = vpop.f32.mrb[47].mxu1  ;;  %v1611_v58 = vadd.f32 %v1547_v17, %v5379_v28  ;;  %v1673_v39 = vmul.f32 0.7978846, %v1609_v2 }
 0x43b   : > { %6670 = vst [vmem:[#allocation44_spill] sm:$0xff] %v5399_v18  ;;  %v1422_v40 = vmul.f32 %v5399_v18, %v5399_v18  ;;  %v5411_v62 = vadd.f32 %v1334_v38, %v4988_v33  ;;  %v1612_v47 = vadd.f32 %v1548_v20, %v5384_v0  ;;  %v1674_v16 = vmul.f32 0.7978846, %v1610_v10 }
 0x43c   : > { %6671 = vst [vmem:[#allocation45_spill] sm:$0xff] %v5405_v59  ;;  %v1485_v14 = vmul.f32 %v1421_v56, %v5395_v61  ;;  %v1423_v48 = vmul.f32 %v5405_v59, %v5405_v59  ;;  %v1675_v3 = vmul.f32 0.7978846, %v1611_v58  ;;  %3802 = vtanh.f32 %v1673_v39 }
 0x43d   : > { %6672 = vst [vmem:[#allocation46_spill] sm:$0xff] %v5411_v62  ;;  %v1486_v37 = vmul.f32 %v1422_v40, %v5399_v18  ;;  %v1424_v36 = vmul.f32 %v5411_v62, %v5411_v62  ;;  %v1676_v55 = vmul.f32 0.7978846, %v1612_v47  ;;  %3804 = vtanh.f32 %v1674_v16 }
 0x43e   : > { %v1549_v13 = vmul.f32 0.044715, %v1485_v14  ;;  %v1487_v26 = vmul.f32 %v1423_v48, %v5405_v59  ;;  %3806 = vtanh.f32 %v1675_v3 }
 0x43f   : > { %v1550_v45 = vmul.f32 0.044715, %v1486_v37  ;;  %v1488_v17 = vmul.f32 %v1424_v36, %v5411_v62  ;;  %v1338_v51 = vpop.f32.mrb[48].mxu1  ;;  %3808 = vtanh.f32 %v1676_v55 }
 0x440   : > { %v1551_v2 = vmul.f32 0.044715, %v1487_v26  ;;  %v5423_v20 = vadd.f32 %v1338_v51, %v4985_v4  ;;  %v1340_v27 = vpop.f32.mrb[49].mxu1  ;;  %v1613_v10 = vadd.f32 %v1549_v13, %v5395_v61 }
 0x441   : > { %v1552_v56 = vmul.f32 0.044715, %v1488_v17  ;;  %v5427_v38 = vadd.f32 %v1340_v27, %v4988_v33  ;;  %v1342_v58 = vpop.f32.mrb[50].mxu1  ;;  %v1614_v39 = vadd.f32 %v1550_v45, %v5399_v18 }
 0x442   : > { %v1425_v40 = vmul.f32 %v5423_v20, %v5423_v20  ;;  %v5433_v47 = vadd.f32 %v1342_v58, %v4985_v4  ;;  %v1344_v16 = vpop.f32.mrb[51].mxu1  ;;  %v1615_v14 = vadd.f32 %v1551_v2, %v5405_v59  ;;  %v1677_v48 = vmul.f32 0.7978846, %v1613_v10 }
 0x443   : > { %v1616_v3 = vadd.f32 %v1552_v56, %v5411_v62  ;;  %v1678_v37 = vmul.f32 0.7978846, %v1614_v39  ;;  %v1426_v26 = vmul.f32 %v5427_v38, %v5427_v38  ;;  %v5443_v45 = vadd.f32 %v1344_v16, %v4988_v33 }
 0x444   : > { %v1489_v36 = vmul.f32 %v1425_v40, %v5423_v20  ;;  %v1427_v55 = vmul.f32 %v5433_v47, %v5433_v47  ;;  %v1679_v13 = vmul.f32 0.7978846, %v1615_v14  ;;  %3810 = vtanh.f32 %v1677_v48 }
 0x445   : > { %v1680_v17 = vmul.f32 0.7978846, %v1616_v3  ;;  %3812 = vtanh.f32 %v1678_v37  ;;  %v1490_v37 = vmul.f32 %v1426_v26, %v5427_v38 }
 0x446   : > { %v3803_v51 = vpop.eup %3802  ;;  %v1553_v2 = vmul.f32 0.044715, %v1489_v36  ;;  %v1491_v27 = vmul.f32 %v1427_v55, %v5433_v47  ;;  %3814 = vtanh.f32 %v1679_v13  ;;  %v1428_v36 = vmul.f32 %v5443_v45, %v5443_v45 }
 0x447   : > { %v3805_v10 = vpop.eup %3804  ;;  %v1348_v56 = vpop.f32.mrb[52].mxu1  ;;  %3816 = vtanh.f32 %v1680_v17  ;;  %v1801_v15 = vadd.f32 1.0, %v3803_v51  ;;  %v1554_v23 = vmul.f32 0.044715, %v1490_v37 }
 0x448   : > { %v3807_v58 = vpop.eup %3806  ;;  %v1555_v39 = vmul.f32 0.044715, %v1491_v27  ;;  %v5447_v40 = vadd.f32 %v1348_v56, %v4985_v4  ;;  %v1350_v14 = vpop.f32.mrb[53].mxu1  ;;  %v1802_v48 = vadd.f32 1.0, %v3805_v10  ;;  %v1617_v3 = vadd.f32 %v1553_v2, %v5423_v20 }
 0x449   : > { %v3809_v16 = vpop.eup %3808  ;;  %v5454_v55 = vadd.f32 %v1350_v14, %v4988_v33  ;;  %v1352_v13 = vpop.f32.mrb[54].mxu1  ;;  %v1803_v56 = vadd.f32 1.0, %v3807_v58  ;;  %v1865_v25 = vmul.f32 0.5, %v1801_v15 }
 0x44a   : > { %v1619_v17 = vadd.f32 %v1555_v39, %v5433_v47  ;;  %v1429_v27 = vmul.f32 %v5447_v40, %v5447_v40  ;;  %v5460_v10 = vadd.f32 %v1352_v13, %v4985_v4  ;;  %v1354_v51 = vpop.f32.mrb[55].mxu1  ;;  %v1804_v44 = vadd.f32 1.0, %v3809_v16 }
 0x44b   : > { %v1430_v26 = vmul.f32 %v5454_v55, %v5454_v55  ;;  %v5465_v2 = vadd.f32 %v1354_v51, %v4988_v33  ;;  %v1866_v14 = vmul.f32 0.5, %v1802_v48  ;;  %v1492_v39 = vmul.f32 %v1428_v36, %v5443_v45 }
 0x44c   : > { %v1683_v30 = vmul.f32 0.7978846, %v1619_v17  ;;  %v1868_v32 = vmul.f32 0.5, %v1804_v44  ;;  %v1681_v24 = vmul.f32 0.7978846, %v1617_v3  ;;  %v1493_v13 = vmul.f32 %v1429_v27, %v5447_v40 }
 0x44d   : > { %v1431_v58 = vmul.f32 %v5460_v10, %v5460_v10  ;;  %v1867_v50 = vmul.f32 0.5, %v1803_v56  ;;  %v1494_v51 = vmul.f32 %v1430_v26, %v5454_v55  ;;  %v1432_v48 = vmul.f32 %v5465_v2, %v5465_v2 }
 0x44e   : > { %v3811_v8 = vpop.eup %3810  ;;  %v1930_v16 = vmul.f32 %v1866_v14, %v5374_v35  ;;  %v1932_v37 = vmul.f32 %v1868_v32, %v5384_v0  ;;  %v1929_v17 = vmul.f32 %v1865_v25, %v5371_v53  ;;  %3818 = vtanh.f32 %v1683_v30 }
 0x44f   : > { %v3813_v1 = vpop.eup %3812  ;;  %v1358_v15 = vpop.f32.mrb[56].mxu1  ;;  %v1931_v27 = vmul.f32 %v1867_v50, %v5379_v28  ;;  %v1805_v14 = vadd.f32 1.0, %v3811_v8  ;;  %3820 = vtanh.f32 %v1681_v24  ;;  %v1556_v8 = vmul.f32 0.044715, %v1492_v39 }
 0x450   : > { %v3815_v44 = vpop.eup %3814  ;;  %v5477_v3 = vadd.f32 %v1358_v15, %v4985_v4  ;;  %v1360_v36 = vpop.f32.mrb[57].mxu1  ;;  %v1806_v56 = vadd.f32 1.0, %v3813_v1  ;;  %v1974_v41 = vpack.c.bf16 %v1932_v37, %v1930_v16  ;;  %v1496_v28 = vmul.f32 %v1432_v48, %v5465_v2 }
 0x451   : > { %v3817_v11 = vpop.eup %3816  ;;  %v5482_v26 = vadd.f32 %v1360_v36, %v4988_v33  ;;  %v1362_v6 = vpop.f32.mrb[58].mxu1  ;;  %v1973_v35 = vpack.c.bf16 %v1931_v27, %v1929_v17  ;;  %v1807_v36 = vadd.f32 1.0, %v3815_v44  ;;  %v1869_v37 = vmul.f32 0.5, %v1805_v14 }
 0x452   : > { %v1433_v32 = vmul.f32 %v5477_v3, %v5477_v3  ;;  %v5487_v15 = vadd.f32 %v1362_v6, %v4985_v4  ;;  %v1364_v0 = vpop.f32.mrb[59].mxu1  ;;  %v1808_v25 = vadd.f32 1.0, %v3817_v11  ;;  %2327 = vmatprep.mubr.bf16.mxu0 %v1974_v41  ;;  %v1870_v30 = vmul.f32 0.5, %v1806_v56 }
 0x453   : > { %v1434_v1 = vmul.f32 %v5482_v26, %v5482_v26  ;;  %v5492_v50 = vadd.f32 %v1364_v0, %v4988_v33  ;;  %2328 = vmatmul.mubr.bf16.gmra.mrb[72].mxu0 %v1973_v35  ;;  %v1495_v6 = vmul.f32 %v1431_v58, %v5460_v10  ;;  %v1871_v17 = vmul.f32 0.5, %v1807_v36 }
 0x454   : > { %v1872_v16 = vmul.f32 0.5, %v1808_v25  ;;  %v1557_v27 = vmul.f32 0.044715, %v1493_v13  ;;  %v1435_v0 = vmul.f32 %v5487_v15, %v5487_v15  ;;  %v1934_v41 = vmul.f32 %v1870_v30, %v5399_v18 }
 0x455   : > { %v1436_v11 = vmul.f32 %v5492_v50, %v5492_v50  ;;  %v1558_v39 = vmul.f32 0.044715, %v1494_v51  ;;  %v1497_v35 = vmul.f32 %v1433_v32, %v5477_v3  ;;  %v1498_v44 = vmul.f32 %v1434_v1, %v5482_v26 }
 0x456   : > { %v1936_v24 = vmul.f32 %v1872_v16, %v5411_v62  ;;  %v1935_v48 = vmul.f32 %v1871_v17, %v5405_v59  ;;  %v1933_v25 = vmul.f32 %v1869_v37, %v5395_v61  ;;  %v1618_v36 = vadd.f32 %v1554_v23, %v5427_v38 }
 0x457   : > { %v1368_v58 = vpop.f32.mrb[60].mxu1  ;;  %v1559_v30 = vmul.f32 0.044715, %v1495_v6  ;;  %v1560_v18 = vmul.f32 0.044715, %v1496_v28  ;;  %v1500_v51 = vmul.f32 %v1436_v11, %v5492_v50  ;;  %v1499_v16 = vmul.f32 %v1435_v0, %v5487_v15 }
 0x458   : > { %v5506_v56 = vadd.f32 %v1368_v58, %v4985_v4  ;;  %v1370_v14 = vpop.f32.mrb[61].mxu1  ;;  %v1976_v13 = vpack.c.bf16 %v1936_v24, %v1934_v41  ;;  %v1975_v41 = vpack.c.bf16 %v1935_v48, %v1933_v25  ;;  %v1620_v37 = vadd.f32 %v1556_v8, %v5443_v45  ;;  %v3819_v24 = vpop.eup %3818 }
 0x459   : > { %v5512_v32 = vadd.f32 %v1370_v14, %v4988_v33  ;;  %v1372_v1 = vpop.f32.mrb[62].mxu1  ;;  %v1561_v23 = vmul.f32 0.044715, %v1497_v35  ;;  %v1562_v0 = vmul.f32 0.044715, %v1498_v44  ;;  %v1622_v25 = vadd.f32 %v1558_v39, %v5454_v55 }
 0x45a   : > { %v5516_v17 = vadd.f32 %v1372_v1, %v4985_v4  ;;  %v1374_v58 = vpop.f32.mrb[63].mxu1  ;;  %2337 = vmatprep.mubr.bf16.mxu0 %v1976_v13  ;;  %v1437_v28 = vmul.f32 %v5506_v56, %v5506_v56  ;;  %v1682_v14 = vmul.f32 0.7978846, %v1618_v36  ;;  %v1684_v48 = vmul.f32 0.7978846, %v1620_v37  ;;  %v3821_v1 = vpop.eup %3820 }
 0x45b   : > { %v1438_v6 = vmul.f32 %v5512_v32, %v5512_v32  ;;  %v5524_v11 = vadd.f32 %v1374_v58, %v4988_v33  ;;  %2338 = vmatmul.mubr.bf16.gmra.mrb[76].mxu0 %v1975_v41  ;;  %v1564_v13 = vmul.f32 0.044715, %v1500_v51  ;;  %v1811_v62 = vadd.f32 1.0, %v3819_v24 }
 0x45c   : > { %v1439_v4 = vmul.f32 %v5516_v17, %v5516_v17  ;;  %v1563_v59 = vmul.f32 0.044715, %v1499_v16  ;;  %3822 = vtanh.f32 %v1682_v14  ;;  %v1624_v33 = vadd.f32 %v1560_v18, %v5465_v2 }
 0x45d   : > { %v1502_v8 = vmul.f32 %v1438_v6, %v5512_v32  ;;  %v1440_v35 = vmul.f32 %v5524_v11, %v5524_v11  ;;  %v1501_v44 = vmul.f32 %v1437_v28, %v5506_v56  ;;  %3824 = vtanh.f32 %v1684_v48 }
 0x45e   : > { %v1503_v58 = vmul.f32 %v1439_v4, %v5516_v17  ;;  %v1686_v41 = vmul.f32 0.7978846, %v1622_v25  ;;  %v1688_v37 = vmul.f32 0.7978846, %v1624_v33  ;;  %v1621_v6 = vadd.f32 %v1557_v27, %v5447_v40 }
 0x45f   : > { %v1504_v36 = vmul.f32 %v1440_v35, %v5524_v11  ;;  %v1566_v51 = vmul.f32 0.044715, %v1502_v8  ;;  %v1623_v39 = vadd.f32 %v1559_v30, %v5460_v10  ;;  %v1626_v16 = vadd.f32 %v1562_v0, %v5482_v26 }
 0x460   : > { %v1628_v24 = vadd.f32 %v1564_v13, %v5492_v50  ;;  %3826 = vtanh.f32 %v1686_v41  ;;  %v1685_v18 = vmul.f32 0.7978846, %v1621_v6  ;;  %v1625_v28 = vadd.f32 %v1561_v23, %v5477_v3 }
 0x461   : > { %v1568_v61 = vmul.f32 0.044715, %v1504_v36  ;;  %v1627_v4 = vadd.f32 %v1563_v59, %v5487_v15  ;;  %3828 = vtanh.f32 %v1688_v37  ;;  %v1687_v14 = vmul.f32 0.7978846, %v1623_v39 }
 0x462   : > { %v1690_v48 = vmul.f32 0.7978846, %v1626_v16  ;;  %v1692_v8 = vmul.f32 0.7978846, %v1628_v24  ;;  %v1567_v35 = vmul.f32 0.044715, %v1503_v58  ;;  %3830 = vtanh.f32 %v1685_v18 }
 0x463   : > { %v1689_v27 = vmul.f32 0.7978846, %v1625_v28  ;;  %v1630_v25 = vadd.f32 %v1566_v51, %v5512_v32  ;;  %v1565_v30 = vmul.f32 0.044715, %v1501_v44  ;;  %3832 = vtanh.f32 %v1687_v14 }
 0x464   : > { %v1691_v0 = vmul.f32 0.7978846, %v1627_v4  ;;  %v1632_v13 = vadd.f32 %v1568_v61, %v5524_v11  ;;  %3834 = vtanh.f32 %v1690_v48  ;;  %v1809_v36 = vadd.f32 1.0, %v3821_v1 }
 0x465   : > { %v1694_v33 = vmul.f32 0.7978846, %v1630_v25  ;;  %3836 = vtanh.f32 %v1692_v8  ;;  %v1631_v41 = vadd.f32 %v1567_v35, %v5516_v17  ;;  %v1875_v58 = vmul.f32 0.5, %v1811_v62 }
 0x466   : > { %v1696_v23 = vmul.f32 0.7978846, %v1632_v13  ;;  %v3823_v59 = vpop.eup %3822  ;;  %3838 = vtanh.f32 %v1689_v27  ;;  %v1629_v51 = vadd.f32 %v1565_v30, %v5506_v56  ;;  %v1873_v39 = vmul.f32 0.5, %v1809_v36 }
 0x467   : > { %v3825_v37 = vpop.eup %3824  ;;  %v1810_v6 = vadd.f32 1.0, %v3823_v59  ;;  %3840 = vtanh.f32 %v1691_v0  ;;  %v1695_v1 = vmul.f32 0.7978846, %v1631_v41  ;;  %v1939_v28 = vmul.f32 %v1875_v58, %v5433_v47 }
 0x468   : > { %v1812_v44 = vadd.f32 1.0, %v3825_v37  ;;  %3842 = vtanh.f32 %v1694_v33  ;;  %v1693_v14 = vmul.f32 0.7978846, %v1629_v51  ;;  %v1937_v25 = vmul.f32 %v1873_v39, %v5423_v20 }
 0x469   : > { %v1874_v16 = vmul.f32 0.5, %v1810_v6  ;;  %3844 = vtanh.f32 %v1696_v23 }
 0x46a   : > { %v3827_v61 = vpop.eup %3826  ;;  %v1876_v24 = vmul.f32 0.5, %v1812_v44  ;;  %3846 = vtanh.f32 %v1695_v1  ;;  %v1977_v41 = vpack.c.bf16 %v1939_v28, %v1937_v25 }
 0x46b   : > { %v3829_v18 = vpop.eup %3828  ;;  %v1814_v4 = vadd.f32 1.0, %v3827_v61  ;;  %v1938_v62 = vmul.f32 %v1874_v16, %v5427_v38  ;;  %3848 = vtanh.f32 %v1693_v14 }
 0x46c   : > { %v3831_v48 = vpop.eup %3830  ;;  %v1940_v8 = vmul.f32 %v1876_v24, %v5443_v45  ;;  %v1816_v35 = vadd.f32 1.0, %v3829_v18 }
 0x46d   : > { %v3833_v27 = vpop.eup %3832  ;;  %v1878_v30 = vmul.f32 0.5, %v1814_v4  ;;  %v1813_v0 = vadd.f32 1.0, %v3831_v48 }
 0x46e   : > { %v3835_v13 = vpop.eup %3834  ;;  %v1978_v33 = vpack.c.bf16 %v1940_v8, %v1938_v62  ;;  %v1880_v36 = vmul.f32 0.5, %v1816_v35  ;;  %v1815_v23 = vadd.f32 1.0, %v3833_v27 }
 0x46f   : > { %v3837_v59 = vpop.eup %3836  ;;  %v1818_v37 = vadd.f32 1.0, %v3835_v13  ;;  %v1942_v6 = vmul.f32 %v1878_v30, %v5454_v55  ;;  %v1877_v61 = vmul.f32 0.5, %v1813_v0 }
 0x470   : > { %v3839_v58 = vpop.eup %3838  ;;  %2347 = vmatprep.mubr.bf16.mxu1 %v1978_v33  ;;  %v1944_v51 = vmul.f32 %v1880_v36, %v5465_v2  ;;  %v1879_v44 = vmul.f32 0.5, %v1815_v23  ;;  %v1820_v16 = vadd.f32 1.0, %v3837_v59 }
 0x471   : > { %v3841_v39 = vpop.eup %3840  ;;  %2348 = vmatmul.mubr.bf16.vlgmr.msra.gmra.mrb[64].mxu1 %v1977_v41  ;;  %v1882_v24 = vmul.f32 0.5, %v1818_v37  ;;  %v1941_v25 = vmul.f32 %v1877_v61, %v5447_v40  ;;  %v1817_v30 = vadd.f32 1.0, %v3839_v58 }
 0x472   : > { %v3843_v18 = vpop.eup %3842  ;;  %v1980_v4 = vpack.c.bf16 %v1944_v51, %v1942_v6  ;;  %v1884_v48 = vmul.f32 0.5, %v1820_v16  ;;  %v1943_v28 = vmul.f32 %v1879_v44, %v5460_v10  ;;  %v1819_v62 = vadd.f32 1.0, %v3841_v39 }
 0x473   : > { %v3845_v1 = vpop.eup %3844  ;;  %v1946_v14 = vmul.f32 %v1882_v24, %v5482_v26  ;;  %v1822_v35 = vadd.f32 1.0, %v3843_v18  ;;  %v1881_v37 = vmul.f32 0.5, %v1817_v30 }
 0x474   : > { %2357 = vmatprep.mubr.bf16.mxu1 %v1980_v4  ;;  %v1948_v8 = vmul.f32 %v1884_v48, %v5492_v50  ;;  %v1824_v27 = vadd.f32 1.0, %v3845_v1  ;;  %v1979_v33 = vpack.c.bf16 %v1943_v28, %v1941_v25  ;;  %v1883_v36 = vmul.f32 0.5, %v1819_v62  ;;  %v3847_v23 = vpop.eup %3846  ;;  %v3914_v62 = vld [vmem:[%s6545_s5] sm:$0xff] }
 0x475   : > { %v1886_v59 = vmul.f32 0.5, %v1822_v35  ;;  %v3849_v41 = vpop.eup %3848  ;;  %v1823_v44 = vadd.f32 1.0, %v3847_v23  ;;  %v1945_v39 = vmul.f32 %v1881_v37, %v5477_v3  ;;  %v2023_v48 = vsub.s32 5, %v4498_v57 }
 0x476   : > { %v1982_v13 = vpack.c.bf16 %v1948_v8, %v1946_v14  ;;  %v1888_v0 = vmul.f32 0.5, %v1824_v27  ;;  %v1947_v51 = vmul.f32 %v1883_v36, %v5487_v15  ;;  %v1821_v58 = vadd.f32 1.0, %v3849_v41 }
 0x477   : > { %v1950_v16 = vmul.f32 %v1886_v59, %v5512_v32  ;;  %v1887_v18 = vmul.f32 0.5, %v1823_v44  ;;  %v2020_v14 = vrot.slane %v3914_v62, %v4803_v9  ;;  %v2024_v8 = vrot.slane %v3914_v62, %v2023_v48  ;;  %v6673_v48 = vld [vmem:[#allocation17_spill] sm:$0xff] }
 0x478   : > { %v1952_v6 = vmul.f32 %v1888_v0, %v5524_v11  ;;  %v1981_v24 = vpack.c.bf16 %v1947_v51, %v1945_v39  ;;  %v1885_v4 = vmul.f32 0.5, %v1821_v58 }
 0x479   : > { %2358 = vmatmul.mubr.bf16.gmra.mrb[68].mxu1 %v1979_v33  ;;  %v1951_v1 = vmul.f32 %v1887_v18, %v5516_v17  ;;  %v5568_v27 = vrot.slane %v2020_v14, %v4803_v9  ;;  %v5571_v25 = vrot.slane %v2024_v8, %v4803_v9 }
 0x47a   : > { %2367 = vmatprep.mubr.bf16.mxu1 %v1982_v13  ;;  %v1984_v61 = vpack.c.bf16 %v1952_v6, %v1950_v16  ;;  %v1949_v28 = vmul.f32 %v1885_v4, %v5506_v56 }
 0x47c   : > { %v1983_v35 = vpack.c.bf16 %v1951_v1, %v1949_v28  ;;  %v6674_v28 = vld [vmem:[#allocation18_spill] sm:$0xff] }
 0x481   : > { %2368 = vmatmul.mubr.bf16.gmra.mrb[72].mxu1 %v1981_v24 }
 0x482   : > { %2377 = vmatprep.mubr.bf16.mxu1 %v1984_v61 }
 0x489   : > { %2378 = vmatmul.mubr.bf16.gmra.mrb[76].mxu1 %v1983_v35 }
 0x48e   : > { %v2229_v30 = vpop.f32.mrb[32].mxu0 }
 0x48f   : > { %v2230_v13 = vadd.f32 %v2229_v30, %v5568_v27  ;;  %v2231_v0 = vpop.f32.mrb[33].mxu0 }
 0x490   : > { %v2232_v33 = vadd.f32 %v2231_v0, %v5571_v25  ;;  %v2233_v36 = vpop.f32.mrb[34].mxu0  ;;  %v6675_v0 = vld [vmem:[#allocation19_spill] sm:$0xff] }
 0x491   : > { %v5576_v23 = vadd.f32 %v2230_v13, %v4991_v12  ;;  %v2234_v59 = vadd.f32 %v2233_v36, %v5568_v27  ;;  %v2235_v41 = vpop.f32.mrb[35].mxu0 }
 0x492   : > { %v5580_v37 = vadd.f32 %v2232_v33, %v4994_v52  ;;  %v2236_v6 = vadd.f32 %v2235_v41, %v5571_v25  ;;  %v6676_v41 = vld [vmem:[#allocation20_spill] sm:$0xff] }
 0x493   : > { %v5584_v9 = vadd.f32 %v2234_v59, %v4999_v31 }
 0x494   : > { %v5587_v51 = vadd.f32 %v2236_v6, %v5004_v60  ;;  %v2452_v44 = vadd.f32 %v5580_v37, %v5576_v23 }
 0x496   : > { %v2239_v16 = vpop.f32.mrb[36].mxu0  ;;  %2453 = vadd.xlane.f32.xlu0 %v2452_v44  ;;  %v2455_v12 = vadd.f32 %v5587_v51, %v5584_v9 }
 0x497   : > { %v2240_v39 = vadd.f32 %v2239_v16, %v5568_v27  ;;  %v2241_v52 = vpop.f32.mrb[37].mxu0  ;;  %v6677_v16 = vld [vmem:[#allocation21_spill] sm:$0xff] }
 0x498   : > { %v2242_v58 = vadd.f32 %v2241_v52, %v5571_v25  ;;  %2456 = vadd.xlane.f32.xlu1 %v2455_v12  ;;  %v2243_v61 = vpop.f32.mrb[38].mxu0 }
 0x499   : > { %v5596_v31 = vadd.f32 %v2240_v39, %v5016_v21  ;;  %v2244_v60 = vadd.f32 %v2243_v61, %v5568_v27  ;;  %v2245_v24 = vpop.f32.mrb[39].mxu0  ;;  %v6678_v39 = vld [vmem:[#allocation22_spill] sm:$0xff] }
 0x49a   : > { %v5600_v18 = vadd.f32 %v2242_v58, %v5019_v54  ;;  %v2246_v4 = vadd.f32 %v2245_v24, %v5571_v25 }
 0x49b   : > { %v5604_v1 = vadd.f32 %v2244_v60, %v6673_v48 }
 0x49c   : > { %v5607_v62 = vadd.f32 %v2246_v4, %v6674_v28  ;;  %v2458_v14 = vadd.f32 %v5600_v18, %v5596_v31 }
 0x49e   : > { %2459 = vadd.xlane.f32.xlu0 %v2458_v14  ;;  %v2461_v21 = vadd.f32 %v5607_v62, %v5604_v1  ;;  %v6679_v14 = vld [vmem:[#allocation23_spill] sm:$0xff] }
 0x4a0   : > { %2462 = vadd.xlane.f32.xlu1 %v2461_v21 }
 0x4ab   : > { %v2249_v8 = vpop.f32.mrb[40].mxu0 }
 0x4ac   : > { %v2250_v54 = vadd.f32 %v2249_v8, %v5568_v27  ;;  %v2251_v35 = vpop.f32.mrb[41].mxu0 }
 0x4ad   : > { %v2252_v30 = vadd.f32 %v2251_v35, %v5571_v25  ;;  %v2253_v13 = vpop.f32.mrb[42].mxu0  ;;  %v6680_v35 = vld [vmem:[#allocation24_spill] sm:$0xff] }
 0x4ae   : > { %v5616_v33 = vadd.f32 %v2250_v54, %v6675_v0  ;;  %v2254_v36 = vadd.f32 %v2253_v13, %v5568_v27  ;;  %v2255_v59 = vpop.f32.mrb[43].mxu0  ;;  %v6681_v0 = vld [vmem:[#allocation25_spill] sm:$0xff] }
 0x4af   : > { %v5620_v6 = vadd.f32 %v2252_v30, %v6676_v41  ;;  %v2256_v44 = vadd.f32 %v2255_v59, %v5571_v25  ;;  %v6682_v59 = vld [vmem:[#allocation26_spill] sm:$0xff] }
 0x4b0   : > { %v5624_v12 = vadd.f32 %v2254_v36, %v6677_v16 }
 0x4b1   : > { %v5627_v52 = vadd.f32 %v2256_v44, %v6678_v39  ;;  %v2464_v58 = vadd.f32 %v5620_v6, %v5616_v33 }
 0x4b3   : > { %v2259_v61 = vpop.f32.mrb[44].mxu0  ;;  %2465 = vadd.xlane.f32.xlu0 %v2464_v58  ;;  %v2467_v60 = vadd.f32 %v5627_v52, %v5624_v12 }
 0x4b4   : > { %v2260_v24 = vadd.f32 %v2259_v61, %v5568_v27  ;;  %v2261_v4 = vpop.f32.mrb[45].mxu0 }
 0x4b5   : > { %v2262_v48 = vadd.f32 %v2261_v4, %v5571_v25  ;;  %2468 = vadd.xlane.f32.xlu1 %v2467_v60  ;;  %v2263_v28 = vpop.f32.mrb[46].mxu0 }
 0x4b6   : > { %v5636_v21 = vadd.f32 %v2260_v24, %v6679_v14  ;;  %v2264_v8 = vadd.f32 %v2263_v28, %v5568_v27  ;;  %v2265_v54 = vpop.f32.mrb[47].mxu0 }
 0x4b7   : > { %v5640_v30 = vadd.f32 %v2262_v48, %v6680_v35  ;;  %v2266_v13 = vadd.f32 %v2265_v54, %v5571_v25 }
 0x4b8   : > { %v5644_v36 = vadd.f32 %v2264_v8, %v6681_v0 }
 0x4b9   : > { %v5647_v41 = vadd.f32 %v2266_v13, %v6682_v59  ;;  %v2470_v44 = vadd.f32 %v5640_v30, %v5636_v21 }
 0x4bb   : > { %2471 = vadd.xlane.f32.xlu0 %v2470_v44  ;;  %v2473_v16 = vadd.f32 %v5647_v41, %v5644_v36 }
 0x4bd   : > { %2474 = vadd.xlane.f32.xlu1 %v2473_v16 }
 0x4c7   : > { %v2269_v39 = vpop.f32.mrb[48].mxu0 }
 0x4c8   : > { %v2270_v58 = vadd.f32 %v2269_v39, %v5568_v27  ;;  %v2271_v61 = vpop.f32.mrb[49].mxu0 }
 0x4c9   : > { %v2272_v60 = vadd.f32 %v2271_v61, %v5571_v25  ;;  %v2273_v24 = vpop.f32.mrb[50].mxu0 }
 0x4ca   : > { %v5656_v4 = vadd.f32 %v2270_v58, %v5110_v63  ;;  %v2274_v48 = vadd.f32 %v2273_v24, %v5568_v27  ;;  %v2275_v28 = vpop.f32.mrb[51].mxu0 }
 0x4cb   : > { %v5660_v14 = vadd.f32 %v2272_v60, %v5113_v34  ;;  %v2276_v8 = vadd.f32 %v2275_v28, %v5571_v25 }
 0x4cc   : > { %v5664_v54 = vadd.f32 %v2274_v48, %v5118_v22 }
 0x4cd   : > { %v5667_v35 = vadd.f32 %v2276_v8, %v5123_v19  ;;  %v2476_v13 = vadd.f32 %v5660_v14, %v5656_v4 }
 0x4cf   : > { %v2279_v0 = vpop.f32.mrb[52].mxu0  ;;  %2477 = vadd.xlane.f32.xlu0 %v2476_v13  ;;  %v2479_v63 = vadd.f32 %v5667_v35, %v5664_v54 }
 0x4d0   : > { %v2280_v59 = vadd.f32 %v2279_v0, %v5568_v27  ;;  %v2281_v34 = vpop.f32.mrb[53].mxu0 }
 0x4d1   : > { %v2282_v44 = vadd.f32 %v2281_v34, %v5571_v25  ;;  %2480 = vadd.xlane.f32.xlu1 %v2479_v63  ;;  %v2283_v16 = vpop.f32.mrb[54].mxu0 }
 0x4d2   : > { %v5676_v22 = vadd.f32 %v2280_v59, %v5142_v46  ;;  %v2284_v19 = vadd.f32 %v2283_v16, %v5568_v27  ;;  %v2285_v39 = vpop.f32.mrb[55].mxu0  ;;  %v6683_v16 = vld [vmem:[#allocation27_spill] sm:$0xff] }
 0x4d3   : > { %v5680_v58 = vadd.f32 %v2282_v44, %v5145_v42  ;;  %v2286_v61 = vadd.f32 %v2285_v39, %v5571_v25 }
 0x4d4   : > { %v5684_v60 = vadd.f32 %v2284_v19, %v5153_v43 }
 0x4d5   : > { %v5687_v24 = vadd.f32 %v2286_v61, %v5160_v5  ;;  %v2482_v48 = vadd.f32 %v5680_v58, %v5676_v22 }
 0x4d7   : > { %2483 = vadd.xlane.f32.xlu0 %v2482_v48  ;;  %v2289_v46 = vpop.f32.mrb[56].mxu0  ;;  %v2485_v28 = vadd.f32 %v5687_v24, %v5684_v60 }
 0x4d8   : > { %v2290_v8 = vadd.f32 %v2289_v46, %v5568_v27  ;;  %v2291_v42 = vpop.f32.mrb[57].mxu0 }
 0x4d9   : > { %v2292_v13 = vadd.f32 %v2291_v42, %v5571_v25  ;;  %2486 = vadd.xlane.f32.xlu1 %v2485_v28  ;;  %v2293_v0 = vpop.f32.mrb[58].mxu0 }
 0x4da   : > { %v5696_v43 = vadd.f32 %v2290_v8, %v5179_v49  ;;  %v2294_v5 = vadd.f32 %v2293_v0, %v5568_v27  ;;  %v2295_v63 = vpop.f32.mrb[59].mxu0  ;;  %v6685_v0 = vld [vmem:[#allocation29_spill] sm:$0xff] }
 0x4db   : > { %v5700_v59 = vadd.f32 %v2292_v13, %v5185_v29  ;;  %v2296_v34 = vadd.f32 %v2295_v63, %v5571_v25 }
 0x4dc   : > { %v5704_v44 = vadd.f32 %v2294_v5, %v5191_v7  ;;  %v6684_v7 = vld [vmem:[#allocation28_spill] sm:$0xff] }
 0x4dd   : > { %v5707_v19 = vadd.f32 %v2296_v34, %v6683_v16  ;;  %v2488_v39 = vadd.f32 %v5700_v59, %v5696_v43  ;;  %v6687_v34 = vld [vmem:[#allocation30_spill] sm:$0xff] }
 0x4df   : > { %2489 = vadd.xlane.f32.xlu0 %v2488_v39  ;;  %v2299_v49 = vpop.f32.mrb[60].mxu0  ;;  %v2491_v61 = vadd.f32 %v5707_v19, %v5704_v44  ;;  %v6689_v39 = vld [vmem:[#allocation31_spill] sm:$0xff] }
 0x4e0   : > { %v2300_v48 = vadd.f32 %v2299_v49, %v5568_v27  ;;  %v2301_v29 = vpop.f32.mrb[61].mxu0 }
 0x4e1   : > { %v2302_v46 = vadd.f32 %v2301_v29, %v5571_v25  ;;  %2492 = vadd.xlane.f32.xlu1 %v2491_v61  ;;  %v2303_v28 = vpop.f32.mrb[62].mxu0 }
 0x4e2   : > { %v5716_v8 = vadd.f32 %v2300_v48, %v6684_v7  ;;  %v2304_v42 = vadd.f32 %v2303_v28, %v5568_v27  ;;  %v2305_v13 = vpop.f32.mrb[63].mxu0 }
 0x4e3   : > { %v5720_v5 = vadd.f32 %v2302_v46, %v6685_v0  ;;  %v2306_v63 = vadd.f32 %v2305_v13, %v5571_v25 }
 0x4e4   : > { %v5724_v16 = vadd.f32 %v2304_v42, %v6687_v34  ;;  %v6691_v42 = vld [vmem:[#allocation32_spill] sm:$0xff] }
 0x4e5   : > { %6686 = vst [vmem:[#allocation17_spill] sm:$0xff] %v5720_v5  ;;  %v5727_v49 = vadd.f32 %v2306_v63, %v6689_v39  ;;  %v2494_v61 = vadd.f32 %v5720_v5, %v5716_v8  ;;  %v6693_v39 = vld [vmem:[#allocation33_spill] sm:$0xff]  ;;  %v6695_v5 = vld [vmem:[#allocation34_spill] sm:$0xff] }
 0x4e6   : > { %6688 = vst [vmem:[#allocation18_spill] sm:$0xff] %v5724_v16 }
 0x4e7   : > { %6690 = vst [vmem:[#allocation19_spill] sm:$0xff] %v5727_v49  ;;  %2495 = vadd.xlane.f32.xlu0 %v2494_v61  ;;  %v2309_v48 = vpop.f32.mrb[64].mxu0  ;;  %v2497_v29 = vadd.f32 %v5727_v49, %v5724_v16 }
 0x4e8   : > { %v2310_v28 = vadd.f32 %v2309_v48, %v5568_v27  ;;  %v2311_v46 = vpop.f32.mrb[65].mxu0  ;;  %v6697_v48 = vld [vmem:[#allocation35_spill] sm:$0xff] }
 0x4e9   : > { %v2312_v7 = vadd.f32 %v2311_v46, %v5571_v25  ;;  %2498 = vadd.xlane.f32.xlu1 %v2497_v29  ;;  %v2313_v13 = vpop.f32.mrb[66].mxu0 }
 0x4ea   : > { %v5736_v0 = vadd.f32 %v2310_v28, %v6691_v42  ;;  %v2314_v63 = vadd.f32 %v2313_v13, %v5568_v27  ;;  %v2315_v34 = vpop.f32.mrb[67].mxu0 }
 0x4eb   : > { %v5740_v57 = vadd.f32 %v2312_v7, %v6693_v39  ;;  %v2316_v61 = vadd.f32 %v2315_v34, %v5571_v25 }
 0x4ec   : > { %6692 = vst [vmem:[#allocation20_spill] sm:$0xff] %v5736_v0  ;;  %v5744_v49 = vadd.f32 %v2314_v63, %v6695_v5  ;;  %v6699_v5 = vld [vmem:[#allocation36_spill] sm:$0xff] }
 0x4ed   : > { %6694 = vst [vmem:[#allocation21_spill] sm:$0xff] %v5740_v57  ;;  %v5747_v16 = vadd.f32 %v2316_v61, %v6697_v48  ;;  %v2500_v29 = vadd.f32 %v5740_v57, %v5736_v0  ;;  %v6700_v48 = vld [vmem:[#allocation37_spill] sm:$0xff]  ;;  %v6702_v0 = vld [vmem:[#allocation38_spill] sm:$0xff] }
 0x4ee   : > { %6696 = vst [vmem:[#allocation22_spill] sm:$0xff] %v5744_v49 }
 0x4ef   : > { %6698 = vst [vmem:[#allocation23_spill] sm:$0xff] %v5747_v16  ;;  %2501 = vadd.xlane.f32.xlu0 %v2500_v29  ;;  %v2319_v28 = vpop.f32.mrb[68].mxu0  ;;  %v2503_v46 = vadd.f32 %v5747_v16, %v5744_v49 }
 0x4f0   : > { %v2320_v13 = vadd.f32 %v2319_v28, %v5568_v27  ;;  %v2321_v7 = vpop.f32.mrb[69].mxu0  ;;  %v6704_v28 = vld [vmem:[#allocation39_spill] sm:$0xff] }
 0x4f1   : > { %v2322_v42 = vadd.f32 %v2321_v7, %v5571_v25  ;;  %2504 = vadd.xlane.f32.xlu1 %v2503_v46  ;;  %v2323_v34 = vpop.f32.mrb[70].mxu0 }
 0x4f2   : > { %v5756_v63 = vadd.f32 %v2320_v13, %v6699_v5  ;;  %v2324_v39 = vadd.f32 %v2323_v34, %v5568_v27  ;;  %v2325_v61 = vpop.f32.mrb[71].mxu0 }
 0x4f3   : > { %v5760_v57 = vadd.f32 %v2322_v42, %v6700_v48  ;;  %v2326_v29 = vadd.f32 %v2325_v61, %v5571_v25 }
 0x4f4   : > { %v5764_v16 = vadd.f32 %v2324_v39, %v6702_v0 }
 0x4f5   : > { %6701 = vst [vmem:[#allocation24_spill] sm:$0xff] %v5760_v57  ;;  %v5767_v49 = vadd.f32 %v2326_v29, %v6704_v28  ;;  %v2506_v46 = vadd.f32 %v5760_v57, %v5756_v63  ;;  %v6707_v29 = vld [vmem:[#allocation40_spill] sm:$0xff] }
 0x4f6   : > { %6703 = vst [vmem:[#allocation25_spill] sm:$0xff] %v5764_v16  ;;  %v6714_v57 = vld [vmem:[#allocation44_spill] sm:$0xff] }
 0x4f7   : > { %6705 = vst [vmem:[#allocation26_spill] sm:$0xff] %v5767_v49  ;;  %2507 = vadd.xlane.f32.xlu0 %v2506_v46  ;;  %v2509_v13 = vadd.f32 %v5767_v49, %v5764_v16  ;;  %v6709_v49 = vld [vmem:[#allocation41_spill] sm:$0xff]  ;;  %v6711_v16 = vld [vmem:[#allocation42_spill] sm:$0xff] }
 0x4f9   : > { %2510 = vadd.xlane.f32.xlu1 %v2509_v13 }
 0x526   : > { %v2329_v7 = vpop.f32.mrb[72].mxu0 }
 0x527   : > { %v2330_v42 = vadd.f32 %v2329_v7, %v5568_v27  ;;  %v2331_v34 = vpop.f32.mrb[73].mxu0 }
 0x528   : > { %v2332_v5 = vadd.f32 %v2331_v34, %v5571_v25  ;;  %v2333_v61 = vpop.f32.mrb[74].mxu0 }
 0x529   : > { %v5776_v0 = vadd.f32 %v2330_v42, %v5371_v53  ;;  %v2334_v39 = vadd.f32 %v2333_v61, %v5568_v27  ;;  %v2335_v48 = vpop.f32.mrb[75].mxu0 }
 0x52a   : > { %v5780_v28 = vadd.f32 %v2332_v5, %v6707_v29  ;;  %v2336_v46 = vadd.f32 %v2335_v48, %v5571_v25 }
 0x52b   : > { %6706 = vst [vmem:[#allocation27_spill] sm:$0xff] %v5776_v0  ;;  %v5784_v13 = vadd.f32 %v2334_v39, %v6709_v49 }
 0x52c   : > { %6708 = vst [vmem:[#allocation28_spill] sm:$0xff] %v5780_v28  ;;  %v5787_v7 = vadd.f32 %v2336_v46, %v6711_v16  ;;  %v2512_v34 = vadd.f32 %v5780_v28, %v5776_v0  ;;  %v6713_v16 = vld [vmem:[#allocation43_spill] sm:$0xff]  ;;  %v6715_v0 = vld [vmem:[#allocation45_spill] sm:$0xff] }
 0x52d   : > { %6710 = vst [vmem:[#allocation29_spill] sm:$0xff] %v5784_v13 }
 0x52e   : > { %6712 = vst [vmem:[#allocation30_spill] sm:$0xff] %v5787_v7  ;;  %2513 = vadd.xlane.f32.xlu0 %v2512_v34  ;;  %v2339_v53 = vpop.f32.mrb[76].mxu0  ;;  %v2515_v42 = vadd.f32 %v5787_v7, %v5784_v13  ;;  %v6716_v13 = vld [vmem:[#allocation46_spill] sm:$0xff] }
 0x52f   : > { %v2341_v61 = vpop.f32.mrb[77].mxu0  ;;  %v2340_v5 = vadd.f32 %v2339_v53, %v5568_v27 }
 0x530   : > { %v2342_v29 = vadd.f32 %v2341_v61, %v5571_v25  ;;  %2516 = vadd.xlane.f32.xlu1 %v2515_v42  ;;  %v2343_v48 = vpop.f32.mrb[78].mxu0 }
 0x531   : > { %v2344_v49 = vadd.f32 %v2343_v48, %v5568_v27  ;;  %v2345_v39 = vpop.f32.mrb[79].mxu0  ;;  %v5797_v46 = vadd.f32 %v2340_v5, %v6713_v16 }
 0x532   : > { %v5800_v28 = vadd.f32 %v2342_v29, %v6714_v57  ;;  %v2346_v34 = vadd.f32 %v2345_v39, %v5571_v25 }
 0x533   : > { %v5804_v7 = vadd.f32 %v2344_v49, %v6715_v0 }
 0x534   : > { %v5807_v53 = vadd.f32 %v2346_v34, %v6716_v13  ;;  %v2518_v42 = vadd.f32 %v5800_v28, %v5797_v46 }
 0x536   : > { %2519 = vadd.xlane.f32.xlu0 %v2518_v42  ;;  %v2521_v61 = vadd.f32 %v5807_v53, %v5804_v7 }
 0x538   : > { %2522 = vadd.xlane.f32.xlu1 %v2521_v61 }
 0x544   : > { %v2349_v5 = vpop.f32.mrb[64].mxu1 }
 0x545   : > { %v2350_v57 = vadd.f32 %v2349_v5, %v5568_v27  ;;  %v2351_v29 = vpop.f32.mrb[65].mxu1 }
 0x546   : > { %v2352_v48 = vadd.f32 %v2351_v29, %v5571_v25  ;;  %v2353_v39 = vpop.f32.mrb[66].mxu1 }
 0x547   : > { %v5816_v0 = vadd.f32 %v2350_v57, %v5423_v20  ;;  %v2354_v13 = vadd.f32 %v2353_v39, %v5568_v27  ;;  %v2355_v49 = vpop.f32.mrb[67].mxu1 }
 0x548   : > { %v5820_v16 = vadd.f32 %v2352_v48, %v5427_v38  ;;  %v2356_v34 = vadd.f32 %v2355_v49, %v5571_v25 }
 0x549   : > { %v5824_v42 = vadd.f32 %v2354_v13, %v5433_v47 }
 0x54a   : > { %v5827_v61 = vadd.f32 %v2356_v34, %v5443_v45  ;;  %v2524_v5 = vadd.f32 %v5820_v16, %v5816_v0 }
 0x54c   : > { %v2359_v29 = vpop.f32.mrb[68].mxu1  ;;  %2525 = vadd.xlane.f32.xlu0 %v2524_v5  ;;  %v2527_v20 = vadd.f32 %v5827_v61, %v5824_v42 }
 0x54d   : > { %v2360_v57 = vadd.f32 %v2359_v29, %v5568_v27  ;;  %v2361_v38 = vpop.f32.mrb[69].mxu1 }
 0x54e   : > { %v2362_v48 = vadd.f32 %v2361_v38, %v5571_v25  ;;  %v2363_v39 = vpop.f32.mrb[70].mxu1  ;;  %2528 = vadd.xlane.f32.xlu1 %v2527_v20 }
 0x54f   : > { %v5836_v47 = vadd.f32 %v2360_v57, %v5447_v40  ;;  %v2364_v45 = vadd.f32 %v2363_v39, %v5568_v27  ;;  %v2365_v13 = vpop.f32.mrb[71].mxu1 }
 0x550   : > { %v5840_v49 = vadd.f32 %v2362_v48, %v5454_v55  ;;  %v2366_v34 = vadd.f32 %v2365_v13, %v5571_v25  ;;  %v2454_v48 = vpop.xlane.xlu0 %2453 }
 0x551   : > { %v5844_v5 = vadd.f32 %v2364_v45, %v5460_v10 }
 0x552   : > { %6717 = vst [vmem:[#allocation31_spill] sm:$0xff] %v5840_v49  ;;  %v5847_v29 = vadd.f32 %v2366_v34, %v5465_v2  ;;  %v2530_v20 = vadd.f32 %v5840_v49, %v5836_v47  ;;  %v2457_v34 = vpop.xlane.xlu1 %2456 }
 0x553   : > { %6718 = vst [vmem:[#allocation32_spill] sm:$0xff] %v5844_v5 }
 0x554   : > { %6719 = vst [vmem:[#allocation33_spill] sm:$0xff] %v5847_v29  ;;  %v2369_v38 = vpop.f32.mrb[72].mxu1  ;;  %2531 = vadd.xlane.f32.xlu0 %v2530_v20  ;;  %v2533_v40 = vadd.f32 %v5847_v29, %v5844_v5  ;;  %v2549_v5 = vmul.f32 0.00390625, %v2454_v48  ;;  %v2460_v49 = vpop.xlane.xlu0 %2459 }
 0x555   : > { %v2370_v57 = vadd.f32 %v2369_v38, %v5568_v27  ;;  %v2371_v55 = vpop.f32.mrb[73].mxu1  ;;  %v2551_v48 = vmul.f32 0.00390625, %v2460_v49 }
 0x556   : > { %v2372_v39 = vadd.f32 %v2371_v55, %v5571_v25  ;;  %v2373_v13 = vpop.f32.mrb[74].mxu1  ;;  %2534 = vadd.xlane.f32.xlu1 %v2533_v40  ;;  %v2550_v40 = vmul.f32 0.00390625, %v2457_v34 }
 0x557   : > { %v5856_v10 = vadd.f32 %v2370_v57, %v5477_v3  ;;  %v2374_v2 = vadd.f32 %v2373_v13, %v5568_v27  ;;  %v2375_v45 = vpop.f32.mrb[75].mxu1  ;;  %v2463_v57 = vpop.xlane.xlu1 %2462 }
 0x558   : > { %v5860_v20 = vadd.f32 %v2372_v39, %v5482_v26  ;;  %v2376_v29 = vadd.f32 %v2375_v45, %v5571_v25  ;;  %v5874_v39 = vsub.f32 %v5576_v23, %v2549_v5  ;;  %v2552_v23 = vmul.f32 0.00390625, %v2463_v57 }
 0x559   : > { %v5864_v38 = vadd.f32 %v2374_v2, %v5487_v15  ;;  %v5877_v15 = vsub.f32 %v5580_v37, %v2549_v5  ;;  %v2466_v2 = vpop.xlane.xlu0 %2465 }
 0x55a   : > { %6720 = vst [vmem:[#allocation34_spill] sm:$0xff] %v5860_v20  ;;  %v5867_v55 = vadd.f32 %v2376_v29, %v5492_v50  ;;  %v2536_v3 = vadd.f32 %v5860_v20, %v5856_v10 }
 0x55b   : > { %6721 = vst [vmem:[#allocation35_spill] sm:$0xff] %v5864_v38  ;;  %v2469_v20 = vpop.xlane.xlu1 %2468 }
 0x55c   : > { %6722 = vst [vmem:[#allocation36_spill] sm:$0xff] %v5867_v55  ;;  %2537 = vadd.xlane.f32.xlu0 %v2536_v3  ;;  %v2379_v13 = vpop.f32.mrb[76].mxu1  ;;  %v2539_v26 = vadd.f32 %v5867_v55, %v5864_v38  ;;  %v5882_v3 = vsub.f32 %v5584_v9, %v2550_v40  ;;  %v5885_v55 = vsub.f32 %v5587_v51, %v2550_v40  ;;  %v2553_v40 = vmul.f32 0.00390625, %v2466_v2 }
 0x55d   : > { %v2380_v50 = vadd.f32 %v2379_v13, %v5568_v27  ;;  %v2381_v29 = vpop.f32.mrb[77].mxu1  ;;  %v5899_v9 = vsub.f32 %v5600_v18, %v2551_v48  ;;  %v2645_v51 = vmul.f32 %v5874_v39, %v5874_v39  ;;  %v2472_v57 = vpop.xlane.xlu0 %2471 }
 0x55e   : > { %v2382_v45 = vadd.f32 %v2381_v29, %v5571_v25  ;;  %2540 = vadd.xlane.f32.xlu1 %v2539_v26  ;;  %v2383_v34 = vpop.f32.mrb[78].mxu1  ;;  %v5896_v26 = vsub.f32 %v5596_v31, %v2551_v48  ;;  %v2647_v31 = vmul.f32 %v5882_v3, %v5882_v3  ;;  %v2648_v18 = vmul.f32 %v5885_v55, %v5885_v55 }
 0x55f   : > { %v2385_v38 = vpop.f32.mrb[79].mxu1  ;;  %v5888_v37 = vadd.f32 %v2380_v50, %v5506_v56  ;;  %v2384_v5 = vadd.f32 %v2383_v34, %v5568_v27  ;;  %v2646_v56 = vmul.f32 %v5877_v15, %v5877_v15  ;;  %v5921_v48 = vsub.f32 %v5607_v62, %v2552_v23  ;;  %v2475_v50 = vpop.xlane.xlu1 %2474 }
 0x560   : > { %v5891_v49 = vadd.f32 %v2382_v45, %v5512_v32  ;;  %v2386_v13 = vadd.f32 %v2385_v38, %v5571_v25  ;;  %v5918_v38 = vsub.f32 %v5604_v1, %v2552_v23  ;;  %v2555_v29 = vmul.f32 0.00390625, %v2472_v57 }
 0x561   : > { %v5906_v32 = vadd.f32 %v2384_v5, %v5516_v17  ;;  %v2554_v17 = vmul.f32 0.00390625, %v2469_v20  ;;  %v2709_v2 = vadd.f32 %v2646_v56, %v2645_v51  ;;  %v2649_v45 = vmul.f32 %v5896_v26, %v5896_v26  ;;  %v2478_v20 = vpop.xlane.xlu0 %2477 }
 0x562   : > { %v5909_v27 = vadd.f32 %v2386_v13, %v5524_v11  ;;  %v2542_v25 = vadd.f32 %v5891_v49, %v5888_v37  ;;  %v2650_v34 = vmul.f32 %v5899_v9, %v5899_v9  ;;  %v5930_v1 = vsub.f32 %v5616_v33, %v2553_v40 }
 0x563   : > { %v5933_v62 = vsub.f32 %v5620_v6, %v2553_v40  ;;  %v2556_v23 = vmul.f32 0.00390625, %v2475_v50  ;;  %v2712_v5 = vadd.f32 %v2648_v18, %v2647_v31  ;;  %v2651_v13 = vmul.f32 %v5918_v38, %v5918_v38  ;;  %v2481_v33 = vpop.xlane.xlu1 %2480 }
 0x564   : > { %2543 = vadd.xlane.f32.xlu0 %v2542_v25  ;;  %v2545_v11 = vadd.f32 %v5909_v27, %v5906_v32  ;;  %v2652_v51 = vmul.f32 %v5921_v48, %v5921_v48  ;;  %v5940_v56 = vsub.f32 %v5624_v12, %v2554_v17  ;;  %v5943_v57 = vsub.f32 %v5627_v52, %v2554_v17 }
 0x565   : > { %v5946_v6 = vsub.f32 %v5636_v21, %v2555_v29  ;;  %v5949_v40 = vsub.f32 %v5640_v30, %v2555_v29  ;;  %v2653_v25 = vmul.f32 %v5930_v1, %v5930_v1  ;;  %v2654_v31 = vmul.f32 %v5933_v62, %v5933_v62  ;;  %v2484_v12 = vpop.xlane.xlu0 %2483 }
 0x566   : > { %2546 = vadd.xlane.f32.xlu1 %v2545_v11  ;;  %v2557_v18 = vmul.f32 0.00390625, %v2478_v20  ;;  %v2715_v50 = vadd.f32 %v2650_v34, %v2649_v45  ;;  %v5956_v52 = vsub.f32 %v5644_v36, %v2556_v23  ;;  %v5959_v17 = vsub.f32 %v5647_v41, %v2556_v23 }
 0x567   : > { %6723 = vst [vmem:[#allocation37_spill] sm:$0xff] %v5949_v40  ;;  %v2655_v21 = vmul.f32 %v5940_v56, %v5940_v56  ;;  %v2656_v30 = vmul.f32 %v5943_v57, %v5943_v57  ;;  %v2558_v11 = vmul.f32 0.00390625, %v2481_v33  ;;  %v2487_v29 = vpop.xlane.xlu1 %2486  ;;  %v2657_v20 = vmul.f32 %v5946_v6, %v5946_v6 }
 0x568   : > { %2710 = vadd.xlane.f32.xlu0 %v2709_v2  ;;  %v2718_v2 = vadd.f32 %v2652_v51, %v2651_v13  ;;  %v2658_v36 = vmul.f32 %v5949_v40, %v5949_v40  ;;  %v5970_v45 = vsub.f32 %v5656_v4, %v2557_v18  ;;  %v5973_v41 = vsub.f32 %v5660_v14, %v2557_v18 }
 0x569   : > { %v2559_v34 = vmul.f32 0.00390625, %v2484_v12  ;;  %v2659_v33 = vmul.f32 %v5956_v52, %v5956_v52  ;;  %v2660_v13 = vmul.f32 %v5959_v17, %v5959_v17  ;;  %v5980_v51 = vsub.f32 %v5664_v54, %v2558_v11 }
 0x56a   : > { %2713 = vadd.xlane.f32.xlu1 %v2712_v5  ;;  %v2721_v5 = vadd.f32 %v2654_v31, %v2653_v25  ;;  %v2560_v4 = vmul.f32 0.00390625, %v2487_v29  ;;  %v2724_v14 = vadd.f32 %v2656_v30, %v2655_v21  ;;  %v2727_v12 = vadd.f32 %v2658_v36, %v2657_v20 }
 0x56b   : > { %v2661_v25 = vmul.f32 %v5970_v45, %v5970_v45  ;;  %v2662_v31 = vmul.f32 %v5973_v41, %v5973_v41  ;;  %v5993_v54 = vsub.f32 %v5680_v58, %v2559_v34  ;;  %v2730_v29 = vadd.f32 %v2660_v13, %v2659_v33 }
 0x56c   : > { %2716 = vadd.xlane.f32.xlu0 %v2715_v50  ;;  %v2490_v23 = vpop.xlane.xlu0 %2489  ;;  %v5983_v50 = vsub.f32 %v5667_v35, %v2558_v11  ;;  %v2663_v21 = vmul.f32 %v5980_v51, %v5980_v51  ;;  %v6000_v20 = vsub.f32 %v5684_v60, %v2560_v4  ;;  %v6003_v36 = vsub.f32 %v5687_v24, %v2560_v4 }
 0x56d   : > { %v2561_v18 = vmul.f32 0.00390625, %v2490_v23  ;;  %v2666_v23 = vmul.f32 %v5993_v54, %v5993_v54  ;;  %v2733_v60 = vadd.f32 %v2662_v31, %v2661_v25 }
 0x56e   : > { %2719 = vadd.xlane.f32.xlu1 %v2718_v2  ;;  %v2493_v40 = vpop.xlane.xlu1 %2492  ;;  %v5990_v2 = vsub.f32 %v5676_v22, %v2559_v34  ;;  %v2664_v30 = vmul.f32 %v5983_v50, %v5983_v50 }
 0x56f   : > { %v2562_v35 = vmul.f32 0.00390625, %v2493_v40  ;;  %v6006_v22 = vsub.f32 %v5696_v43, %v2561_v18  ;;  %v6009_v58 = vsub.f32 %v5700_v59, %v2561_v18  ;;  %v2667_v43 = vmul.f32 %v6000_v20, %v6000_v20 }
 0x570   : > { %2722 = vadd.xlane.f32.xlu0 %v2721_v5  ;;  %v2665_v34 = vmul.f32 %v5990_v2, %v5990_v2  ;;  %v2668_v59 = vmul.f32 %v6003_v36, %v6003_v36  ;;  %v2736_v4 = vadd.f32 %v2664_v30, %v2663_v21  ;;  %v6727_v21 = vld [vmem:[#allocation18_spill] sm:$0xff] }
 0x571   : > { %6724 = vst [vmem:[#allocation38_spill] sm:$0xff] %v6009_v58  ;;  %v6016_v24 = vsub.f32 %v5704_v44, %v2562_v35  ;;  %v6019_v33 = vsub.f32 %v5707_v19, %v2562_v35  ;;  %v2670_v18 = vmul.f32 %v6009_v58, %v6009_v58  ;;  %v6726_v19 = vld [vmem:[#allocation17_spill] sm:$0xff] }
 0x572   : > { %2725 = vadd.xlane.f32.xlu1 %v2724_v14  ;;  %v2669_v14 = vmul.f32 %v6006_v22, %v6006_v22  ;;  %v2739_v31 = vadd.f32 %v2666_v23, %v2665_v34 }
 0x573   : > { %6725 = vst [vmem:[#allocation39_spill] sm:$0xff] %v6019_v33  ;;  %v2671_v35 = vmul.f32 %v6016_v24, %v6016_v24 }
 0x574   : > { %v2496_v11 = vpop.xlane.xlu0 %2495  ;;  %2728 = vadd.xlane.f32.xlu0 %v2727_v12  ;;  %v2745_v58 = vadd.f32 %v2670_v18, %v2669_v14  ;;  %v6734_v18 = vld [vmem:[#allocation23_spill] sm:$0xff] }
 0x575   : > { %v2563_v5 = vmul.f32 0.00390625, %v2496_v11  ;;  %v2672_v11 = vmul.f32 %v6019_v33, %v6019_v33 }
 0x576   : > { %v2499_v40 = vpop.xlane.xlu1 %2498  ;;  %2731 = vadd.xlane.f32.xlu1 %v2730_v29 }
 0x577   : > { %v2564_v13 = vmul.f32 0.00390625, %v2499_v40  ;;  %v6030_v44 = vsub.f32 %v5716_v8, %v2563_v5  ;;  %v6033_v12 = vsub.f32 %v6726_v19, %v2563_v5  ;;  %v6728_v40 = vld [vmem:[#allocation19_spill] sm:$0xff]  ;;  %v2742_v5 = vadd.f32 %v2668_v59, %v2667_v43  ;;  %v6733_v59 = vld [vmem:[#allocation22_spill] sm:$0xff] }
 0x578   : > { %2734 = vadd.xlane.f32.xlu0 %v2733_v60 }
 0x579   : > { %v6040_v30 = vsub.f32 %v6727_v21, %v2564_v13  ;;  %v6043_v60 = vsub.f32 %v6728_v40, %v2564_v13  ;;  %v2673_v34 = vmul.f32 %v6030_v44, %v6030_v44  ;;  %v2674_v23 = vmul.f32 %v6033_v12, %v6033_v12 }
 0x57a   : > { %2737 = vadd.xlane.f32.xlu1 %v2736_v4  ;;  %v6729_v4 = vld [vmem:[#allocation20_spill] sm:$0xff]  ;;  %v2748_v13 = vadd.f32 %v2672_v11, %v2671_v35 }
 0x57b   : > { %v2676_v43 = vmul.f32 %v6043_v60, %v6043_v60  ;;  %v2751_v11 = vadd.f32 %v2674_v23, %v2673_v34 }
 0x57c   : > { %v2502_v25 = vpop.xlane.xlu0 %2501  ;;  %2740 = vadd.xlane.f32.xlu0 %v2739_v31  ;;  %v2675_v31 = vmul.f32 %v6040_v30, %v6040_v30 }
 0x57d   : > { %v2565_v29 = vmul.f32 0.00390625, %v2502_v25  ;;  %v6731_v25 = vld [vmem:[#allocation21_spill] sm:$0xff] }
 0x57e   : > { %v2505_v8 = vpop.xlane.xlu1 %2504  ;;  %2743 = vadd.xlane.f32.xlu1 %v2742_v5 }
 0x57f   : > { %v2566_v19 = vmul.f32 0.00390625, %v2505_v8  ;;  %v6050_v33 = vsub.f32 %v6729_v4, %v2565_v29  ;;  %v6053_v21 = vsub.f32 %v6731_v25, %v2565_v29 }
 0x580   : > { %2746 = vadd.xlane.f32.xlu0 %v2745_v58 }
 0x581   : > { %6730 = vst [vmem:[#allocation40_spill] sm:$0xff] %v6050_v33  ;;  %6732 = vst [vmem:[#allocation41_spill] sm:$0xff] %v6053_v21  ;;  %v6060_v14 = vsub.f32 %v6733_v59, %v2566_v19  ;;  %v6063_v40 = vsub.f32 %v6734_v18, %v2566_v19  ;;  %v2677_v8 = vmul.f32 %v6050_v33, %v6050_v33  ;;  %v6736_v18 = vld [vmem:[#allocation24_spill] sm:$0xff] }
 0x582   : > { %v2678_v29 = vmul.f32 %v6053_v21, %v6053_v21  ;;  %2749 = vadd.xlane.f32.xlu1 %v2748_v13  ;;  %v2754_v19 = vadd.f32 %v2676_v43, %v2675_v31 }
 0x583   : > { %6735 = vst [vmem:[#allocation42_spill] sm:$0xff] %v6063_v40  ;;  %v2679_v4 = vmul.f32 %v6060_v14, %v6060_v14  ;;  %v2680_v25 = vmul.f32 %v6063_v40, %v6063_v40 }
 0x584   : > { %v2508_v35 = vpop.xlane.xlu0 %2507  ;;  %2752 = vadd.xlane.f32.xlu0 %v2751_v11  ;;  %v2757_v13 = vadd.f32 %v2678_v29, %v2677_v8  ;;  %v6739_v11 = vld [vmem:[#allocation26_spill] sm:$0xff] }
 0x585   : > { %v2567_v5 = vmul.f32 0.00390625, %v2508_v35  ;;  %v6738_v35 = vld [vmem:[#allocation25_spill] sm:$0xff] }
 0x586   : > { %v2511_v59 = vpop.xlane.xlu1 %2510  ;;  %2755 = vadd.xlane.f32.xlu1 %v2754_v19 }
 0x587   : > { %v6074_v58 = vsub.f32 %v5756_v63, %v2567_v5  ;;  %v6077_v33 = vsub.f32 %v6736_v18, %v2567_v5  ;;  %v2568_v21 = vmul.f32 0.00390625, %v2511_v59  ;;  %v2760_v63 = vadd.f32 %v2680_v25, %v2679_v4 }
 0x588   : > { %2758 = vadd.xlane.f32.xlu0 %v2757_v13 }
 0x589   : > { %6737 = vst [vmem:[#allocation43_spill] sm:$0xff] %v6077_v33  ;;  %v2681_v34 = vmul.f32 %v6074_v58, %v6074_v58  ;;  %v2682_v23 = vmul.f32 %v6077_v33, %v6077_v33  ;;  %v6084_v40 = vsub.f32 %v6738_v35, %v2568_v21  ;;  %v6087_v31 = vsub.f32 %v6739_v11, %v2568_v21  ;;  %v6740_v35 = vld [vmem:[#allocation27_spill] sm:$0xff]  ;;  %v6741_v21 = vld [vmem:[#allocation28_spill] sm:$0xff] }
 0x58a   : > { %2761 = vadd.xlane.f32.xlu1 %v2760_v63  ;;  %v6743_v63 = vld [vmem:[#allocation30_spill] sm:$0xff] }
 0x58b   : > { %v2683_v43 = vmul.f32 %v6084_v40, %v6084_v40  ;;  %v2684_v8 = vmul.f32 %v6087_v31, %v6087_v31  ;;  %v2763_v29 = vadd.f32 %v2682_v23, %v2681_v34  ;;  %v6742_v34 = vld [vmem:[#allocation29_spill] sm:$0xff] }
 0x58d   : > { %2764 = vadd.xlane.f32.xlu0 %v2763_v29  ;;  %v2766_v5 = vadd.f32 %v2684_v8, %v2683_v43 }
 0x58f   : > { %2767 = vadd.xlane.f32.xlu1 %v2766_v5 }
 0x5bb   : > { %v2514_v59 = vpop.xlane.xlu0 %2513 }
 0x5bc   : > { %v2569_v19 = vmul.f32 0.00390625, %v2514_v59 }
 0x5bd   : > { %v2517_v18 = vpop.xlane.xlu1 %2516 }
 0x5be   : > { %v6094_v33 = vsub.f32 %v6740_v35, %v2569_v19  ;;  %v6097_v13 = vsub.f32 %v6741_v21, %v2569_v19  ;;  %v2570_v4 = vmul.f32 0.00390625, %v2517_v18 }
 0x5c0   : > { %v2685_v25 = vmul.f32 %v6094_v33, %v6094_v33  ;;  %v2686_v11 = vmul.f32 %v6097_v13, %v6097_v13  ;;  %v6104_v23 = vsub.f32 %v6742_v34, %v2570_v4  ;;  %v6107_v43 = vsub.f32 %v6743_v63, %v2570_v4 }
 0x5c2   : > { %6744 = vst [vmem:[#allocation44_spill] sm:$0xff] %v6107_v43  ;;  %v2687_v8 = vmul.f32 %v6104_v23, %v6104_v23  ;;  %v2688_v29 = vmul.f32 %v6107_v43, %v6107_v43  ;;  %v2769_v5 = vadd.f32 %v2686_v11, %v2685_v25 }
 0x5c3   : > { %v2520_v59 = vpop.xlane.xlu0 %2519 }
 0x5c4   : > { %v2571_v19 = vmul.f32 0.00390625, %v2520_v59  ;;  %2770 = vadd.xlane.f32.xlu0 %v2769_v5  ;;  %v2772_v18 = vadd.f32 %v2688_v29, %v2687_v8 }
 0x5c5   : > { %v2523_v35 = vpop.xlane.xlu1 %2522 }
 0x5c6   : > { %v6114_v21 = vsub.f32 %v5797_v46, %v2571_v19  ;;  %v6117_v34 = vsub.f32 %v5800_v28, %v2571_v19  ;;  %v2572_v4 = vmul.f32 0.00390625, %v2523_v35  ;;  %2773 = vadd.xlane.f32.xlu1 %v2772_v18 }
 0x5c8   : > { %v2689_v63 = vmul.f32 %v6114_v21, %v6114_v21  ;;  %v2690_v43 = vmul.f32 %v6117_v34, %v6117_v34  ;;  %v6124_v25 = vsub.f32 %v5804_v7, %v2572_v4  ;;  %v6127_v11 = vsub.f32 %v5807_v53, %v2572_v4 }
 0x5ca   : > { %v2691_v46 = vmul.f32 %v6124_v25, %v6124_v25  ;;  %v2692_v28 = vmul.f32 %v6127_v11, %v6127_v11  ;;  %v2775_v8 = vadd.f32 %v2690_v43, %v2689_v63 }
 0x5cc   : > { %2776 = vadd.xlane.f32.xlu0 %v2775_v8  ;;  %v2778_v29 = vadd.f32 %v2692_v28, %v2691_v46 }
 0x5ce   : > { %2779 = vadd.xlane.f32.xlu1 %v2778_v29 }
 0x5d9   : > { %v2526_v5 = vpop.xlane.xlu0 %2525 }
 0x5da   : > { %v2573_v59 = vmul.f32 0.00390625, %v2526_v5 }
 0x5db   : > { %v2529_v19 = vpop.xlane.xlu1 %2528 }
 0x5dc   : > { %v6134_v18 = vsub.f32 %v5816_v0, %v2573_v59  ;;  %v6137_v7 = vsub.f32 %v5820_v16, %v2573_v59  ;;  %v2574_v53 = vmul.f32 0.00390625, %v2529_v19 }
 0x5de   : > { %v2693_v35 = vmul.f32 %v6134_v18, %v6134_v18  ;;  %v2694_v4 = vmul.f32 %v6137_v7, %v6137_v7  ;;  %v6144_v43 = vsub.f32 %v5824_v42, %v2574_v53  ;;  %v6147_v63 = vsub.f32 %v5827_v61, %v2574_v53  ;;  %v6747_v42 = vld [vmem:[#allocation31_spill] sm:$0xff] }
 0x5e0   : > { %6745 = vst [vmem:[#allocation45_spill] sm:$0xff] %v6147_v63  ;;  %v2695_v0 = vmul.f32 %v6144_v43, %v6144_v43  ;;  %v2696_v16 = vmul.f32 %v6147_v63, %v6147_v63  ;;  %v2781_v46 = vadd.f32 %v2694_v4, %v2693_v35  ;;  %v6749_v35 = vld [vmem:[#allocation32_spill] sm:$0xff] }
 0x5e1   : > { %v2532_v28 = vpop.xlane.xlu0 %2531 }
 0x5e2   : > { %v2575_v8 = vmul.f32 0.00390625, %v2532_v28  ;;  %2782 = vadd.xlane.f32.xlu0 %v2781_v46  ;;  %v2784_v29 = vadd.f32 %v2696_v16, %v2695_v0  ;;  %v6751_v46 = vld [vmem:[#allocation33_spill] sm:$0xff] }
 0x5e3   : > { %v2535_v5 = vpop.xlane.xlu1 %2534 }
 0x5e4   : > { %v6154_v59 = vsub.f32 %v5836_v47, %v2575_v8  ;;  %v6157_v19 = vsub.f32 %v6747_v42, %v2575_v8  ;;  %v2576_v61 = vmul.f32 0.00390625, %v2535_v5  ;;  %2785 = vadd.xlane.f32.xlu1 %v2784_v29 }
 0x5e6   : > { %6746 = vst [vmem:[#allocation46_spill] sm:$0xff] %v6154_v59  ;;  %6748 = vst [vmem:[#allocation17_spill] sm:$0xff] %v6157_v19  ;;  %v2697_v53 = vmul.f32 %v6154_v59, %v6154_v59  ;;  %v2698_v63 = vmul.f32 %v6157_v19, %v6157_v19  ;;  %v6164_v4 = vsub.f32 %v6749_v35, %v2576_v61  ;;  %v6754_v35 = vld [vmem:[#allocation34_spill] sm:$0xff] }
 0x5e7   : > { %v6167_v0 = vsub.f32 %v6751_v46, %v2576_v61 }
 0x5e8   : > { %6750 = vst [vmem:[#allocation18_spill] sm:$0xff] %v6164_v4  ;;  %v2699_v47 = vmul.f32 %v6164_v4, %v6164_v4  ;;  %v2787_v28 = vadd.f32 %v2698_v63, %v2697_v53  ;;  %v6756_v63 = vld [vmem:[#allocation35_spill] sm:$0xff] }
 0x5e9   : > { %6752 = vst [vmem:[#allocation19_spill] sm:$0xff] %v6167_v0  ;;  %v2700_v16 = vmul.f32 %v6167_v0, %v6167_v0  ;;  %v2538_v8 = vpop.xlane.xlu0 %2537 }
 0x5ea   : > { %v2577_v29 = vmul.f32 0.00390625, %v2538_v8  ;;  %2788 = vadd.xlane.f32.xlu0 %v2787_v28  ;;  %v6758_v28 = vld [vmem:[#allocation36_spill] sm:$0xff] }
 0x5eb   : > { %v2790_v5 = vadd.f32 %v2700_v16, %v2699_v47  ;;  %v2541_v42 = vpop.xlane.xlu1 %2540 }
 0x5ec   : > { %v6174_v19 = vsub.f32 %v5856_v10, %v2577_v29  ;;  %v6177_v59 = vsub.f32 %v6754_v35, %v2577_v29  ;;  %v2578_v61 = vmul.f32 0.00390625, %v2541_v42 }
 0x5ed   : > { %2791 = vadd.xlane.f32.xlu1 %v2790_v5 }
 0x5ee   : > { %6753 = vst [vmem:[#allocation20_spill] sm:$0xff] %v6174_v19  ;;  %6755 = vst [vmem:[#allocation21_spill] sm:$0xff] %v6177_v59  ;;  %v2701_v46 = vmul.f32 %v6174_v19, %v6174_v19  ;;  %v2702_v0 = vmul.f32 %v6177_v59, %v6177_v59  ;;  %v6184_v53 = vsub.f32 %v6756_v63, %v2578_v61 }
 0x5ef   : > { %v6187_v47 = vsub.f32 %v6758_v28, %v2578_v61 }
 0x5f0   : > { %6757 = vst [vmem:[#allocation22_spill] sm:$0xff] %v6184_v53  ;;  %v2703_v10 = vmul.f32 %v6184_v53, %v6184_v53  ;;  %v2793_v8 = vadd.f32 %v2702_v0, %v2701_v46 }
 0x5f1   : > { %6759 = vst [vmem:[#allocation23_spill] sm:$0xff] %v6187_v47  ;;  %v2704_v16 = vmul.f32 %v6187_v47, %v6187_v47  ;;  %v2544_v29 = vpop.xlane.xlu0 %2543 }
 0x5f2   : > { %v2579_v5 = vmul.f32 0.00390625, %v2544_v29  ;;  %2794 = vadd.xlane.f32.xlu0 %v2793_v8 }
 0x5f3   : > { %v2796_v42 = vadd.f32 %v2704_v16, %v2703_v10  ;;  %v2547_v35 = vpop.xlane.xlu1 %2546 }
 0x5f4   : > { %v6194_v59 = vsub.f32 %v5888_v37, %v2579_v5  ;;  %v6197_v63 = vsub.f32 %v5891_v49, %v2579_v5  ;;  %v2580_v61 = vmul.f32 0.00390625, %v2547_v35 }
 0x5f5   : > { %2797 = vadd.xlane.f32.xlu1 %v2796_v42  ;;  %v2711_v28 = vpop.xlane.xlu0 %2710 }
 0x5f6   : > { %6760 = vst [vmem:[#allocation24_spill] sm:$0xff] %v6194_v59  ;;  %6761 = vst [vmem:[#allocation25_spill] sm:$0xff] %v6197_v63  ;;  %v2705_v53 = vmul.f32 %v6194_v59, %v6194_v59  ;;  %v2706_v0 = vmul.f32 %v6197_v63, %v6197_v63  ;;  %v6204_v46 = vsub.f32 %v5906_v32, %v2580_v61  ;;  %v2805_v37 = vmul.f32 0.00390625, %v2711_v28 }
 0x5f7   : > { %v6207_v10 = vsub.f32 %v5909_v27, %v2580_v61  ;;  %v2714_v16 = vpop.xlane.xlu1 %2713  ;;  %v6764_v27 = vld [vmem:[#allocation15_spill] sm:$0xff] }
 0x5f8   : > { %6762 = vst [vmem:[#allocation26_spill] sm:$0xff] %v6204_v46  ;;  %v2707_v49 = vmul.f32 %v6204_v46, %v6204_v46  ;;  %v2806_v29 = vmul.f32 0.00390625, %v2714_v16  ;;  %v2799_v5 = vadd.f32 %v2706_v0, %v2705_v53  ;;  %v2837_v42 = vadd.f32 1e-05, %v2805_v37  ;;  %v3915_v37 = vld [vmem:[%s6545_s5] sm:$0xff] }
 0x5f9   : > { %6763 = vst [vmem:[#allocation27_spill] sm:$0xff] %v6207_v10  ;;  %v2708_v8 = vmul.f32 %v6207_v10, %v6207_v10  ;;  %v2717_v35 = vpop.xlane.xlu0 %2716  ;;  %v2971_v61 = vsub.s32 6, %v6764_v27  ;;  %v3049_v46 = vsub.s32 3, %v6764_v27  ;;  %v3053_v10 = vsub.s32 7, %v6764_v27 }
 0x5fa   : > { %v2838_v59 = vadd.f32 1e-05, %v2806_v29  ;;  %v2807_v63 = vmul.f32 0.00390625, %v2717_v35  ;;  %2800 = vadd.xlane.f32.xlu0 %v2799_v5  ;;  %3850 = vrsqrt.f32 %v2837_v42 }
 0x5fb   : > { %v2802_v32 = vadd.f32 %v2708_v8, %v2707_v49  ;;  %v2720_v47 = vpop.xlane.xlu1 %2719  ;;  %v6765_v49 = vld [vmem:[#allocation16_spill] sm:$0xff]  ;;  %v2972_v5 = vrot.slane %v3915_v37, %v2971_v61  ;;  %v3054_v42 = vrot.slane %v3915_v37, %v3053_v10 }
 0x5fc   : > { %3852 = vrsqrt.f32 %v2838_v59  ;;  %v2839_v28 = vadd.f32 1e-05, %v2807_v63  ;;  %v2808_v19 = vmul.f32 0.00390625, %v2720_v47  ;;  %v2968_v8 = vrot.slane %v3915_v37, %v6765_v49 }
 0x5fd   : > { %2803 = vadd.xlane.f32.xlu1 %v2802_v32  ;;  %v2723_v16 = vpop.xlane.xlu0 %2722  ;;  %v3050_v63 = vrot.slane %v3915_v37, %v3049_v46 }
 0x5fe   : > { %3854 = vrsqrt.f32 %v2839_v28  ;;  %v2840_v53 = vadd.f32 1e-05, %v2808_v19  ;;  %v2809_v0 = vmul.f32 0.00390625, %v2723_v16  ;;  %v6221_v19 = vrot.slane %v2968_v8, %v6765_v49 }
 0x5ff   : > { %v2726_v29 = vpop.xlane.xlu1 %2725  ;;  %v6224_v16 = vrot.slane %v2972_v5, %v6765_v49 }
 0x600   : > { %3856 = vrsqrt.f32 %v2840_v53  ;;  %v2841_v59 = vadd.f32 1e-05, %v2809_v0  ;;  %v2810_v47 = vmul.f32 0.00390625, %v2726_v29  ;;  %v6226_v0 = vrot.slane %v3050_v63, %v3049_v46 }
 0x601   : > { %v2729_v35 = vpop.xlane.xlu0 %2728  ;;  %v6228_v29 = vrot.slane %v3054_v42, %v3049_v46 }
 0x602   : > { %3858 = vrsqrt.f32 %v2841_v59  ;;  %v2842_v32 = vadd.f32 1e-05, %v2810_v47  ;;  %v2811_v27 = vmul.f32 0.00390625, %v2729_v35 }
 0x603   : > { %v2732_v28 = vpop.xlane.xlu1 %2731 }
 0x604   : > { %3860 = vrsqrt.f32 %v2842_v32  ;;  %v2843_v4 = vadd.f32 1e-05, %v2811_v27  ;;  %v2812_v61 = vmul.f32 0.00390625, %v2732_v28  ;;  %v3851_v53 = vpop.eup %3850 }
 0x605   : > { %v2735_v10 = vpop.xlane.xlu0 %2734  ;;  %v2901_v59 = vmul.f32 %v3851_v53, %v5874_v39  ;;  %v2902_v8 = vmul.f32 %v3851_v53, %v5877_v15 }
 0x606   : > { %v3853_v37 = vpop.eup %3852  ;;  %3862 = vrsqrt.f32 %v2843_v4  ;;  %v2844_v47 = vadd.f32 1e-05, %v2812_v61  ;;  %v2813_v35 = vmul.f32 0.00390625, %v2735_v10 }
 0x607   : > { %v2903_v49 = vmul.f32 %v3853_v37, %v5882_v3  ;;  %v2904_v5 = vmul.f32 %v3853_v37, %v5885_v55  ;;  %v2738_v32 = vpop.xlane.xlu1 %2737  ;;  %v2983_v63 = vmul.f32 %v6221_v19, %v2901_v59  ;;  %v2984_v46 = vmul.f32 %v6224_v16, %v2902_v8 }
 0x608   : > { %v3855_v27 = vpop.eup %3854  ;;  %3864 = vrsqrt.f32 %v2844_v47  ;;  %v2814_v42 = vmul.f32 0.00390625, %v2738_v32  ;;  %v2845_v10 = vadd.f32 1e-05, %v2813_v35 }
 0x609   : > { %v2985_v28 = vmul.f32 %v6221_v19, %v2903_v49  ;;  %v2986_v39 = vmul.f32 %v6224_v16, %v2904_v5  ;;  %v2905_v15 = vmul.f32 %v3855_v27, %v5896_v26  ;;  %v2906_v4 = vmul.f32 %v3855_v27, %v5899_v9  ;;  %v2741_v3 = vpop.xlane.xlu0 %2740 }
 0x60a   : > { %v3857_v61 = vpop.eup %3856  ;;  %v3065_v55 = vadd.f32 %v6226_v0, %v2983_v63  ;;  %v3066_v53 = vadd.f32 %v6228_v29, %v2984_v46  ;;  %v2846_v37 = vadd.f32 1e-05, %v2814_v42  ;;  %3866 = vrsqrt.f32 %v2845_v10 }
 0x60b   : > { %v3067_v59 = vadd.f32 %v6226_v0, %v2985_v28  ;;  %v3068_v8 = vadd.f32 %v6228_v29, %v2986_v39  ;;  %v2987_v47 = vmul.f32 %v6221_v19, %v2905_v15  ;;  %v2988_v49 = vmul.f32 %v6224_v16, %v2906_v4  ;;  %v2744_v5 = vpop.xlane.xlu1 %2743 }
 0x60c   : > { %v3859_v26 = vpop.eup %3858  ;;  %3129 = vst [vmem:[%s6247_s7] sm:$0xff] %v3065_v55  ;;  %3130 = vst [vmem:[%s6247_s7 + $0x8] sm:$0xff] %v3066_v53  ;;  %v2907_v9 = vmul.f32 %v3857_v61, %v5918_v38  ;;  %v2908_v35 = vmul.f32 %v3857_v61, %v5921_v48  ;;  %v2815_v32 = vmul.f32 0.00390625, %v2741_v3  ;;  %3868 = vrsqrt.f32 %v2846_v37 }
 0x60d   : > { %3131 = vst [vmem:[%s6247_s7 + $0x10] sm:$0xff] %v3067_v59  ;;  %3132 = vst [vmem:[%s6247_s7 + $0x18] sm:$0xff] %v3068_v8  ;;  %v3069_v27 = vadd.f32 %v6226_v0, %v2987_v47  ;;  %v3070_v63 = vadd.f32 %v6228_v29, %v2988_v49  ;;  %v2909_v46 = vmul.f32 %v3859_v26, %v5930_v1  ;;  %v2747_v28 = vpop.xlane.xlu0 %2746  ;;  %v2816_v37 = vmul.f32 0.00390625, %v2744_v5 }
 0x60e   : > { %v2910_v42 = vmul.f32 %v3859_v26, %v5933_v62  ;;  %v3861_v39 = vpop.eup %3860  ;;  %v2989_v38 = vmul.f32 %v6221_v19, %v2907_v9  ;;  %v2990_v15 = vmul.f32 %v6224_v16, %v2908_v35  ;;  %v2847_v48 = vadd.f32 1e-05, %v2815_v32  ;;  %v6766_v9 = vld [vmem:[#allocation37_spill] sm:$0xff] }
 0x60f   : > { %3133 = vst [vmem:[%s6247_s7 + $0x20] sm:$0xff] %v3069_v27  ;;  %3134 = vst [vmem:[%s6247_s7 + $0x28] sm:$0xff] %v3070_v63  ;;  %v2991_v4 = vmul.f32 %v6221_v19, %v2909_v46  ;;  %v2911_v1 = vmul.f32 %v3861_v39, %v5940_v56  ;;  %v2912_v62 = vmul.f32 %v3861_v39, %v5943_v57  ;;  %v2750_v61 = vpop.xlane.xlu1 %2749  ;;  %v2848_v32 = vadd.f32 1e-05, %v2816_v37 }
 0x610   : > { %v2992_v3 = vmul.f32 %v6224_v16, %v2910_v42  ;;  %v3863_v55 = vpop.eup %3862  ;;  %v3071_v53 = vadd.f32 %v6226_v0, %v2989_v38  ;;  %v3072_v10 = vadd.f32 %v6228_v29, %v2990_v15  ;;  %3870 = vrsqrt.f32 %v2847_v48 }
 0x611   : > { %v3073_v59 = vadd.f32 %v6226_v0, %v2991_v4  ;;  %v2993_v47 = vmul.f32 %v6221_v19, %v2911_v1  ;;  %v2994_v56 = vmul.f32 %v6224_v16, %v2912_v62  ;;  %v2753_v49 = vpop.xlane.xlu0 %2752  ;;  %v2913_v26 = vmul.f32 %v3863_v55, %v5946_v6 }
 0x612   : > { %v3074_v8 = vadd.f32 %v6228_v29, %v2992_v3  ;;  %v3865_v57 = vpop.eup %3864  ;;  %3135 = vst [vmem:[%s6247_s7 + $0x30] sm:$0xff] %v3071_v53  ;;  %3136 = vst [vmem:[%s6247_s7 + $0x38] sm:$0xff] %v3072_v10  ;;  %v2914_v35 = vmul.f32 %v3863_v55, %v6766_v9  ;;  %v2817_v5 = vmul.f32 0.00390625, %v2747_v28  ;;  %3872 = vrsqrt.f32 %v2848_v32 }
 0x613   : > { %3137 = vst [vmem:[%s6247_s7 + $0x40] sm:$0xff] %v3073_v59  ;;  %v3075_v27 = vadd.f32 %v6226_v0, %v2993_v47  ;;  %v3076_v63 = vadd.f32 %v6228_v29, %v2994_v56  ;;  %v2915_v46 = vmul.f32 %v3865_v57, %v5956_v52  ;;  %v2916_v42 = vmul.f32 %v3865_v57, %v5959_v17  ;;  %v2756_v39 = vpop.xlane.xlu1 %2755 }
 0x614   : > { %3138 = vst [vmem:[%s6247_s7 + $0x48] sm:$0xff] %v3074_v8  ;;  %v2995_v38 = vmul.f32 %v6221_v19, %v2913_v26  ;;  %v2996_v6 = vmul.f32 %v6224_v16, %v2914_v35  ;;  %v2849_v15 = vadd.f32 1e-05, %v2817_v5  ;;  %v2818_v4 = vmul.f32 0.00390625, %v2750_v61  ;;  %v3867_v1 = vpop.eup %3866 }
 0x615   : > { %3139 = vst [vmem:[%s6247_s7 + $0x50] sm:$0xff] %v3075_v27  ;;  %3140 = vst [vmem:[%s6247_s7 + $0x58] sm:$0xff] %v3076_v63  ;;  %v2997_v28 = vmul.f32 %v6221_v19, %v2915_v46  ;;  %v2998_v48 = vmul.f32 %v6224_v16, %v2916_v42  ;;  %v2819_v3 = vmul.f32 0.00390625, %v2753_v49  ;;  %v2759_v52 = vpop.xlane.xlu0 %2758  ;;  %v2820_v55 = vmul.f32 0.00390625, %v2756_v39 }
 0x616   : > { %v3077_v17 = vadd.f32 %v6226_v0, %v2995_v38  ;;  %v3078_v62 = vadd.f32 %v6228_v29, %v2996_v6  ;;  %3874 = vrsqrt.f32 %v2849_v15  ;;  %v2917_v37 = vmul.f32 %v3867_v1, %v5970_v45  ;;  %v3869_v8 = vpop.eup %3868 }
 0x617   : > { %v3079_v53 = vadd.f32 %v6226_v0, %v2997_v28  ;;  %v3080_v10 = vadd.f32 %v6228_v29, %v2998_v48  ;;  %v2918_v59 = vmul.f32 %v3867_v1, %v5973_v41  ;;  %v2762_v61 = vpop.xlane.xlu1 %2761  ;;  %v2850_v47 = vadd.f32 1e-05, %v2818_v4 }
 0x618   : > { %3141 = vst [vmem:[%s6247_s7 + $0x60] sm:$0xff] %v3077_v17  ;;  %3142 = vst [vmem:[%s6247_s7 + $0x68] sm:$0xff] %v3078_v62  ;;  %v2851_v56 = vadd.f32 1e-05, %v2819_v3  ;;  %v2852_v49 = vadd.f32 1e-05, %v2820_v55  ;;  %v2999_v57 = vmul.f32 %v6221_v19, %v2917_v37  ;;  %v2919_v9 = vmul.f32 %v3869_v8, %v5980_v51 }
 0x619   : > { %3143 = vst [vmem:[%s6247_s7 + $0x70] sm:$0xff] %v3079_v53  ;;  %3144 = vst [vmem:[%s6247_s7 + $0x78] sm:$0xff] %v3080_v10  ;;  %v3000_v26 = vmul.f32 %v6224_v16, %v2918_v59  ;;  %v2920_v35 = vmul.f32 %v3869_v8, %v5983_v50  ;;  %3876 = vrsqrt.f32 %v2850_v47  ;;  %v2821_v32 = vmul.f32 0.00390625, %v2759_v52 }
 0x61a   : > { %v2765_v45 = vpop.xlane.xlu0 %2764  ;;  %v3871_v41 = vpop.eup %3870  ;;  %v2822_v5 = vmul.f32 0.00390625, %v2762_v61  ;;  %v3081_v63 = vadd.f32 %v6226_v0, %v2999_v57  ;;  %v3001_v42 = vmul.f32 %v6221_v19, %v2919_v9  ;;  %3878 = vrsqrt.f32 %v2851_v56  ;;  %v6767_v61 = vld [vmem:[#allocation38_spill] sm:$0xff] }
 0x61b   : > { %v2823_v27 = vmul.f32 0.00390625, %v2765_v45  ;;  %v3082_v46 = vadd.f32 %v6228_v29, %v3000_v26  ;;  %v3002_v39 = vmul.f32 %v6224_v16, %v2920_v35  ;;  %v2921_v51 = vmul.f32 %v3871_v41, %v5990_v2  ;;  %v6768_v35 = vld [vmem:[#allocation39_spill] sm:$0xff] }
 0x61c   : > { %v2922_v50 = vmul.f32 %v3871_v41, %v5993_v54  ;;  %v2853_v38 = vadd.f32 1e-05, %v2821_v32  ;;  %v2768_v6 = vpop.xlane.xlu1 %2767  ;;  %3145 = vst [vmem:[%s6247_s7 + $0x80] sm:$0xff] %v3081_v63  ;;  %v3083_v15 = vadd.f32 %v6226_v0, %v3001_v42  ;;  %3880 = vrsqrt.f32 %v2852_v49  ;;  %v3873_v4 = vpop.eup %3872 }
 0x61d   : > { %3146 = vst [vmem:[%s6247_s7 + $0x88] sm:$0xff] %v3082_v46  ;;  %v3084_v28 = vadd.f32 %v6228_v29, %v3002_v39  ;;  %v2854_v48 = vadd.f32 1e-05, %v2822_v5  ;;  %v3003_v3 = vmul.f32 %v6221_v19, %v2921_v51  ;;  %v2855_v54 = vadd.f32 1e-05, %v2823_v27 }
 0x61e   : > { %v3004_v2 = vmul.f32 %v6224_v16, %v2922_v50  ;;  %3882 = vrsqrt.f32 %v2853_v38  ;;  %3147 = vst [vmem:[%s6247_s7 + $0x90] sm:$0xff] %v3083_v15  ;;  %v2923_v52 = vmul.f32 %v3873_v4, %v6000_v20  ;;  %v2924_v1 = vmul.f32 %v3873_v4, %v6003_v36  ;;  %v6770_v4 = vld [vmem:[#allocation41_spill] sm:$0xff] }
 0x61f   : > { %3148 = vst [vmem:[%s6247_s7 + $0x98] sm:$0xff] %v3084_v28  ;;  %3884 = vrsqrt.f32 %v2854_v48  ;;  %v2824_v17 = vmul.f32 0.00390625, %v2768_v6  ;;  %v3085_v55 = vadd.f32 %v6226_v0, %v3003_v3  ;;  %v6769_v48 = vld [vmem:[#allocation40_spill] sm:$0xff] }
 0x620   : > { %v3875_v62 = vpop.eup %3874  ;;  %v3086_v53 = vadd.f32 %v6228_v29, %v3004_v2  ;;  %3886 = vrsqrt.f32 %v2855_v54  ;;  %v3005_v10 = vmul.f32 %v6221_v19, %v2923_v52  ;;  %v3006_v37 = vmul.f32 %v6224_v16, %v2924_v1  ;;  %v6771_v52 = vld [vmem:[#allocation42_spill] sm:$0xff] }
 0x621   : > { %v2925_v59 = vmul.f32 %v3875_v62, %v6006_v22  ;;  %v2926_v20 = vmul.f32 %v3875_v62, %v6767_v61  ;;  %3149 = vst [vmem:[%s6247_s7 + $0xa0] sm:$0xff] %v3085_v55  ;;  %v2856_v36 = vadd.f32 1e-05, %v2824_v17 }
 0x622   : > { %3150 = vst [vmem:[%s6247_s7 + $0xa8] sm:$0xff] %v3086_v53  ;;  %v3087_v8 = vadd.f32 %v6226_v0, %v3005_v10  ;;  %v3088_v47 = vadd.f32 %v6228_v29, %v3006_v37 }
 0x623   : > { %v3007_v56 = vmul.f32 %v6221_v19, %v2925_v59  ;;  %v3008_v49 = vmul.f32 %v6224_v16, %v2926_v20  ;;  %v3877_v57 = vpop.eup %3876  ;;  %3888 = vrsqrt.f32 %v2856_v36  ;;  %v6772_v59 = vld [vmem:[#allocation43_spill] sm:$0xff] }
 0x624   : > { %3151 = vst [vmem:[%s6247_s7 + $0xb0] sm:$0xff] %v3087_v8  ;;  %3152 = vst [vmem:[%s6247_s7 + $0xb8] sm:$0xff] %v3088_v47  ;;  %v2927_v9 = vmul.f32 %v3877_v57, %v6016_v24  ;;  %v2928_v45 = vmul.f32 %v3877_v57, %v6768_v35  ;;  %v3879_v41 = vpop.eup %3878 }
 0x625   : > { %v3089_v22 = vadd.f32 %v6226_v0, %v3007_v56  ;;  %v3090_v26 = vadd.f32 %v6228_v29, %v3008_v49  ;;  %v2929_v63 = vmul.f32 %v3879_v41, %v6030_v44  ;;  %v2930_v46 = vmul.f32 %v3879_v41, %v6033_v12 }
 0x626   : > { %v3881_v32 = vpop.eup %3880  ;;  %v3009_v5 = vmul.f32 %v6221_v19, %v2927_v9  ;;  %v3010_v27 = vmul.f32 %v6224_v16, %v2928_v45 }
 0x627   : > { %3153 = vst [vmem:[%s6247_s7 + $0xc0] sm:$0xff] %v3089_v22  ;;  %3154 = vst [vmem:[%s6247_s7 + $0xc8] sm:$0xff] %v3090_v26  ;;  %v2931_v39 = vmul.f32 %v3881_v32, %v6040_v30  ;;  %v2932_v24 = vmul.f32 %v3881_v32, %v6043_v60  ;;  %v3011_v6 = vmul.f32 %v6221_v19, %v2929_v63 }
 0x628   : > { %v3883_v42 = vpop.eup %3882  ;;  %v3091_v50 = vadd.f32 %v6226_v0, %v3009_v5  ;;  %v3092_v38 = vadd.f32 %v6228_v29, %v3010_v27  ;;  %v3012_v15 = vmul.f32 %v6224_v16, %v2930_v46 }
 0x629   : > { %v3885_v51 = vpop.eup %3884  ;;  %v3013_v44 = vmul.f32 %v6221_v19, %v2931_v39  ;;  %v3014_v12 = vmul.f32 %v6224_v16, %v2932_v24  ;;  %v2933_v30 = vmul.f32 %v3883_v42, %v6769_v48  ;;  %v2934_v60 = vmul.f32 %v3883_v42, %v6770_v4  ;;  %v6773_v4 = vld [vmem:[#allocation44_spill] sm:$0xff] }
 0x62a   : > { %v3887_v28 = vpop.eup %3886  ;;  %3155 = vst [vmem:[%s6247_s7 + $0xd0] sm:$0xff] %v3091_v50  ;;  %3156 = vst [vmem:[%s6247_s7 + $0xd8] sm:$0xff] %v3092_v38  ;;  %v3093_v3 = vadd.f32 %v6226_v0, %v3011_v6  ;;  %v3094_v2 = vadd.f32 %v6228_v29, %v3012_v15  ;;  %v2935_v54 = vmul.f32 %v3885_v51, %v6060_v14 }
 0x62b   : > { %v2936_v1 = vmul.f32 %v3885_v51, %v6771_v52  ;;  %v3095_v17 = vadd.f32 %v6226_v0, %v3013_v44  ;;  %v3096_v62 = vadd.f32 %v6228_v29, %v3014_v12  ;;  %v3015_v55 = vmul.f32 %v6221_v19, %v2933_v30 }
 0x62c   : > { %v3016_v53 = vmul.f32 %v6224_v16, %v2934_v60  ;;  %3157 = vst [vmem:[%s6247_s7 + $0xe0] sm:$0xff] %v3093_v3  ;;  %3158 = vst [vmem:[%s6247_s7 + $0xe8] sm:$0xff] %v3094_v2  ;;  %v3017_v10 = vmul.f32 %v6221_v19, %v2935_v54  ;;  %v2937_v14 = vmul.f32 %v3887_v28, %v6074_v58 }
 0x62d   : > { %v3018_v37 = vmul.f32 %v6224_v16, %v2936_v1  ;;  %v2938_v61 = vmul.f32 %v3887_v28, %v6772_v59  ;;  %v3889_v20 = vpop.eup %3888  ;;  %3159 = vst [vmem:[%s6247_s7 + $0xf0] sm:$0xff] %v3095_v17  ;;  %3160 = vst [vmem:[%s6247_s7 + $0xf8] sm:$0xff] %v3096_v62  ;;  %v3097_v36 = vadd.f32 %v6226_v0, %v3015_v55 }
 0x62e   : > { %v3098_v8 = vadd.f32 %v6228_v29, %v3016_v53  ;;  %v3099_v47 = vadd.f32 %v6226_v0, %v3017_v10  ;;  %v3019_v49 = vmul.f32 %v6221_v19, %v2937_v14  ;;  %v2939_v57 = vmul.f32 %v3889_v20, %v6084_v40 }
 0x62f   : > { %v3100_v56 = vadd.f32 %v6228_v29, %v3018_v37  ;;  %v3020_v58 = vmul.f32 %v6224_v16, %v2938_v61  ;;  %3161 = vst [vmem:[%s6247_s7 + $0x100] sm:$0xff] %v3097_v36  ;;  %v2940_v22 = vmul.f32 %v3889_v20, %v6087_v31 }
 0x630   : > { %3162 = vst [vmem:[%s6247_s7 + $0x108] sm:$0xff] %v3098_v8  ;;  %3163 = vst [vmem:[%s6247_s7 + $0x110] sm:$0xff] %v3099_v47  ;;  %v3101_v26 = vadd.f32 %v6226_v0, %v3019_v49  ;;  %v3021_v35 = vmul.f32 %v6221_v19, %v2939_v57 }
 0x631   : > { %3164 = vst [vmem:[%s6247_s7 + $0x118] sm:$0xff] %v3100_v56  ;;  %v3102_v9 = vadd.f32 %v6228_v29, %v3020_v58  ;;  %v3022_v45 = vmul.f32 %v6224_v16, %v2940_v22 }
 0x632   : > { %3165 = vst [vmem:[%s6247_s7 + $0x120] sm:$0xff] %v3101_v26  ;;  %v3103_v41 = vadd.f32 %v6226_v0, %v3021_v35 }
 0x633   : > { %3166 = vst [vmem:[%s6247_s7 + $0x128] sm:$0xff] %v3102_v9  ;;  %v3104_v32 = vadd.f32 %v6228_v29, %v3022_v45 }
 0x634   : > { %3167 = vst [vmem:[%s6247_s7 + $0x130] sm:$0xff] %v3103_v41 }
 0x635   : > { %3168 = vst [vmem:[%s6247_s7 + $0x138] sm:$0xff] %v3104_v32 }
 0x651   : > { %v2771_v40 = vpop.xlane.xlu0 %2770 }
 0x652   : > { %v2825_v31 = vmul.f32 0.00390625, %v2771_v40 }
 0x653   : > { %v2774_v5 = vpop.xlane.xlu1 %2773 }
 0x654   : > { %v2857_v27 = vadd.f32 1e-05, %v2825_v31  ;;  %v2826_v63 = vmul.f32 0.00390625, %v2774_v5 }
 0x656   : > { %3890 = vrsqrt.f32 %v2857_v27  ;;  %v2858_v46 = vadd.f32 1e-05, %v2826_v63 }
 0x658   : > { %3892 = vrsqrt.f32 %v2858_v46  ;;  %v6774_v46 = vld [vmem:[#allocation45_spill] sm:$0xff] }
 0x659   : > { %v2777_v42 = vpop.xlane.xlu0 %2776 }
 0x65a   : > { %v2827_v39 = vmul.f32 0.00390625, %v2777_v42 }
 0x65b   : > { %v2780_v24 = vpop.xlane.xlu1 %2779 }
 0x65c   : > { %v2859_v51 = vadd.f32 1e-05, %v2827_v39  ;;  %v2828_v50 = vmul.f32 0.00390625, %v2780_v24 }
 0x65e   : > { %3894 = vrsqrt.f32 %v2859_v51  ;;  %v2860_v38 = vadd.f32 1e-05, %v2828_v50 }
 0x660   : > { %v3891_v6 = vpop.eup %3890  ;;  %3896 = vrsqrt.f32 %v2860_v38 }
 0x661   : > { %v2941_v15 = vmul.f32 %v3891_v6, %v6094_v33  ;;  %v2942_v28 = vmul.f32 %v3891_v6, %v6097_v13 }
 0x662   : > { %v3893_v44 = vpop.eup %3892 }
 0x663   : > { %v3023_v12 = vmul.f32 %v6221_v19, %v2941_v15  ;;  %v3024_v48 = vmul.f32 %v6224_v16, %v2942_v28  ;;  %v2943_v30 = vmul.f32 %v3893_v44, %v6104_v23  ;;  %v2944_v60 = vmul.f32 %v3893_v44, %v6773_v4  ;;  %v6775_v44 = vld [vmem:[#allocation46_spill] sm:$0xff] }
 0x665   : > { %v3105_v3 = vadd.f32 %v6226_v0, %v3023_v12  ;;  %v3106_v2 = vadd.f32 %v6228_v29, %v3024_v48  ;;  %v3025_v54 = vmul.f32 %v6221_v19, %v2943_v30  ;;  %v3026_v33 = vmul.f32 %v6224_v16, %v2944_v60  ;;  %v6776_v48 = vld [vmem:[#allocation17_spill] sm:$0xff] }
 0x667   : > { %3169 = vst [vmem:[%s6247_s7 + $0x140] sm:$0xff] %v3105_v3  ;;  %3170 = vst [vmem:[%s6247_s7 + $0x148] sm:$0xff] %v3106_v2  ;;  %v3107_v13 = vadd.f32 %v6226_v0, %v3025_v54  ;;  %v3108_v52 = vadd.f32 %v6228_v29, %v3026_v33  ;;  %v6777_v33 = vld [vmem:[#allocation18_spill] sm:$0xff] }
 0x668   : > { %v3895_v1 = vpop.eup %3894 }
 0x669   : > { %3171 = vst [vmem:[%s6247_s7 + $0x150] sm:$0xff] %v3107_v13  ;;  %3172 = vst [vmem:[%s6247_s7 + $0x158] sm:$0xff] %v3108_v52  ;;  %v2945_v23 = vmul.f32 %v3895_v1, %v6114_v21  ;;  %v2946_v17 = vmul.f32 %v3895_v1, %v6117_v34  ;;  %v6778_v52 = vld [vmem:[#allocation19_spill] sm:$0xff] }
 0x66a   : > { %v3897_v62 = vpop.eup %3896 }
 0x66b   : > { %v3027_v55 = vmul.f32 %v6221_v19, %v2945_v23  ;;  %v3028_v53 = vmul.f32 %v6224_v16, %v2946_v17  ;;  %v2947_v10 = vmul.f32 %v3897_v62, %v6124_v25  ;;  %v2948_v37 = vmul.f32 %v3897_v62, %v6127_v11 }
 0x66d   : > { %v3109_v14 = vadd.f32 %v6226_v0, %v3027_v55  ;;  %v3110_v59 = vadd.f32 %v6228_v29, %v3028_v53  ;;  %v3029_v61 = vmul.f32 %v6221_v19, %v2947_v10  ;;  %v3030_v21 = vmul.f32 %v6224_v16, %v2948_v37 }
 0x66f   : > { %3173 = vst [vmem:[%s6247_s7 + $0x160] sm:$0xff] %v3109_v14  ;;  %3174 = vst [vmem:[%s6247_s7 + $0x168] sm:$0xff] %v3110_v59  ;;  %v3111_v34 = vadd.f32 %v6226_v0, %v3029_v61  ;;  %v3112_v20 = vadd.f32 %v6228_v29, %v3030_v21  ;;  %v2783_v36 = vpop.xlane.xlu0 %2782 }
 0x670   : > { %v2829_v25 = vmul.f32 0.00390625, %v2783_v36  ;;  %v6780_v36 = vld [vmem:[#allocation21_spill] sm:$0xff] }
 0x671   : > { %3175 = vst [vmem:[%s6247_s7 + $0x170] sm:$0xff] %v3111_v34  ;;  %3176 = vst [vmem:[%s6247_s7 + $0x178] sm:$0xff] %v3112_v20  ;;  %v2786_v8 = vpop.xlane.xlu1 %2785  ;;  %v6779_v34 = vld [vmem:[#allocation20_spill] sm:$0xff] }
 0x672   : > { %v2861_v11 = vadd.f32 1e-05, %v2829_v25  ;;  %v2830_v47 = vmul.f32 0.00390625, %v2786_v8 }
 0x674   : > { %3898 = vrsqrt.f32 %v2861_v11  ;;  %v2862_v56 = vadd.f32 1e-05, %v2830_v47 }
 0x676   : > { %3900 = vrsqrt.f32 %v2862_v56  ;;  %v6781_v56 = vld [vmem:[#allocation22_spill] sm:$0xff] }
 0x677   : > { %v2789_v49 = vpop.xlane.xlu0 %2788 }
 0x678   : > { %v2831_v58 = vmul.f32 0.00390625, %v2789_v49 }
 0x67a   : > { %v2792_v57 = vpop.xlane.xlu1 %2791  ;;  %v2863_v22 = vadd.f32 1e-05, %v2831_v58  ;;  %v6782_v58 = vld [vmem:[#allocation23_spill] sm:$0xff] }
 0x67b   : > { %v2832_v26 = vmul.f32 0.00390625, %v2792_v57 }
 0x67c   : > { %3902 = vrsqrt.f32 %v2863_v22 }
 0x67d   : > { %v2864_v9 = vadd.f32 1e-05, %v2832_v26 }
 0x67e   : > { %v3899_v35 = vpop.eup %3898 }
 0x67f   : > { %3904 = vrsqrt.f32 %v2864_v9  ;;  %v2949_v45 = vmul.f32 %v3899_v35, %v6134_v18  ;;  %v2950_v41 = vmul.f32 %v3899_v35, %v6137_v7  ;;  %v2795_v32 = vpop.xlane.xlu0 %2794 }
 0x680   : > { %v3901_v40 = vpop.eup %3900  ;;  %v2833_v31 = vmul.f32 0.00390625, %v2795_v32 }
 0x681   : > { %v3031_v5 = vmul.f32 %v6221_v19, %v2949_v45  ;;  %v3032_v27 = vmul.f32 %v6224_v16, %v2950_v41  ;;  %v2951_v63 = vmul.f32 %v3901_v40, %v6144_v43  ;;  %v2952_v42 = vmul.f32 %v3901_v40, %v6774_v46  ;;  %v6783_v40 = vld [vmem:[#allocation24_spill] sm:$0xff] }
 0x682   : > { %v2798_v39 = vpop.xlane.xlu1 %2797  ;;  %v2865_v24 = vadd.f32 1e-05, %v2833_v31 }
 0x683   : > { %v2834_v18 = vmul.f32 0.00390625, %v2798_v39  ;;  %v3113_v7 = vadd.f32 %v6226_v0, %v3031_v5  ;;  %v3114_v51 = vadd.f32 %v6228_v29, %v3032_v27  ;;  %v3033_v50 = vmul.f32 %v6221_v19, %v2951_v63  ;;  %v6784_v5 = vld [vmem:[#allocation25_spill] sm:$0xff]  ;;  %v6785_v39 = vld [vmem:[#allocation26_spill] sm:$0xff] }
 0x684   : > { %v3034_v38 = vmul.f32 %v6224_v16, %v2952_v42  ;;  %3906 = vrsqrt.f32 %v2865_v24 }
 0x685   : > { %v2866_v6 = vadd.f32 1e-05, %v2834_v18  ;;  %3177 = vst [vmem:[%s6247_s7 + $0x180] sm:$0xff] %v3113_v7  ;;  %3178 = vst [vmem:[%s6247_s7 + $0x188] sm:$0xff] %v3114_v51  ;;  %v3115_v43 = vadd.f32 %v6226_v0, %v3033_v50  ;;  %v6786_v18 = vld [vmem:[#allocation27_spill] sm:$0xff] }
 0x686   : > { %v3116_v15 = vadd.f32 %v6228_v29, %v3034_v38  ;;  %v3903_v28 = vpop.eup %3902 }
 0x687   : > { %3908 = vrsqrt.f32 %v2866_v6  ;;  %3179 = vst [vmem:[%s6247_s7 + $0x190] sm:$0xff] %v3115_v43  ;;  %v2953_v12 = vmul.f32 %v3903_v28, %v6775_v44  ;;  %v2954_v30 = vmul.f32 %v3903_v28, %v6776_v48  ;;  %v2801_v4 = vpop.xlane.xlu0 %2800 }
 0x688   : > { %3180 = vst [vmem:[%s6247_s7 + $0x198] sm:$0xff] %v3116_v15  ;;  %v2835_v3 = vmul.f32 0.00390625, %v2801_v4 }
 0x689   : > { %v3905_v60 = vpop.eup %3904  ;;  %v3035_v2 = vmul.f32 %v6221_v19, %v2953_v12  ;;  %v3036_v54 = vmul.f32 %v6224_v16, %v2954_v30 }
 0x68a   : > { %v2955_v13 = vmul.f32 %v3905_v60, %v6777_v33  ;;  %v2956_v1 = vmul.f32 %v3905_v60, %v6778_v52  ;;  %v2804_v23 = vpop.xlane.xlu1 %2803  ;;  %v2867_v17 = vadd.f32 1e-05, %v2835_v3 }
 0x68b   : > { %v2836_v62 = vmul.f32 0.00390625, %v2804_v23  ;;  %v3117_v55 = vadd.f32 %v6226_v0, %v3035_v2  ;;  %v3118_v53 = vadd.f32 %v6228_v29, %v3036_v54 }
 0x68c   : > { %v3037_v10 = vmul.f32 %v6221_v19, %v2955_v13  ;;  %v3038_v37 = vmul.f32 %v6224_v16, %v2956_v1  ;;  %3910 = vrsqrt.f32 %v2867_v17 }
 0x68d   : > { %v2868_v14 = vadd.f32 1e-05, %v2836_v62  ;;  %3181 = vst [vmem:[%s6247_s7 + $0x1a0] sm:$0xff] %v3117_v55  ;;  %3182 = vst [vmem:[%s6247_s7 + $0x1a8] sm:$0xff] %v3118_v53 }
 0x68e   : > { %v3119_v59 = vadd.f32 %v6226_v0, %v3037_v10  ;;  %v3120_v61 = vadd.f32 %v6228_v29, %v3038_v37  ;;  %v3907_v21 = vpop.eup %3906 }
 0x68f   : > { %3912 = vrsqrt.f32 %v2868_v14  ;;  %v2957_v20 = vmul.f32 %v3907_v21, %v6779_v34  ;;  %v2958_v25 = vmul.f32 %v3907_v21, %v6780_v36 }
 0x690   : > { %3183 = vst [vmem:[%s6247_s7 + $0x1b0] sm:$0xff] %v3119_v59  ;;  %3184 = vst [vmem:[%s6247_s7 + $0x1b8] sm:$0xff] %v3120_v61 }
 0x691   : > { %v3909_v8 = vpop.eup %3908  ;;  %v3039_v11 = vmul.f32 %v6221_v19, %v2957_v20  ;;  %v3040_v47 = vmul.f32 %v6224_v16, %v2958_v25 }
 0x692   : > { %v2959_v49 = vmul.f32 %v3909_v8, %v6781_v56  ;;  %v2960_v57 = vmul.f32 %v3909_v8, %v6782_v58 }
 0x693   : > { %v3121_v22 = vadd.f32 %v6226_v0, %v3039_v11  ;;  %v3122_v26 = vadd.f32 %v6228_v29, %v3040_v47 }
 0x694   : > { %v3041_v9 = vmul.f32 %v6221_v19, %v2959_v49  ;;  %v3042_v35 = vmul.f32 %v6224_v16, %v2960_v57 }
 0x695   : > { %3185 = vst [vmem:[%s6247_s7 + $0x1c0] sm:$0xff] %v3121_v22  ;;  %3186 = vst [vmem:[%s6247_s7 + $0x1c8] sm:$0xff] %v3122_v26 }
 0x696   : > { %v3123_v45 = vadd.f32 %v6226_v0, %v3041_v9  ;;  %v3124_v41 = vadd.f32 %v6228_v29, %v3042_v35  ;;  %v3911_v32 = vpop.eup %3910 }
 0x697   : > { %v2961_v31 = vmul.f32 %v3911_v32, %v6783_v40  ;;  %v2962_v27 = vmul.f32 %v3911_v32, %v6784_v5 }
 0x698   : > { %3187 = vst [vmem:[%s6247_s7 + $0x1d0] sm:$0xff] %v3123_v45  ;;  %3188 = vst [vmem:[%s6247_s7 + $0x1d8] sm:$0xff] %v3124_v41 }
 0x699   : > { %v3913_v63 = vpop.eup %3912  ;;  %v3043_v46 = vmul.f32 %v6221_v19, %v2961_v31  ;;  %v3044_v42 = vmul.f32 %v6224_v16, %v2962_v27 }
 0x69a   : > { %v2963_v24 = vmul.f32 %v3913_v63, %v6785_v39  ;;  %v2964_v7 = vmul.f32 %v3913_v63, %v6786_v18 }
 0x69b   : > { %v3125_v51 = vadd.f32 %v6226_v0, %v3043_v46  ;;  %v3126_v50 = vadd.f32 %v6228_v29, %v3044_v42 }
 0x69c   : > { %v3045_v38 = vmul.f32 %v6221_v19, %v2963_v24  ;;  %v3046_v6 = vmul.f32 %v6224_v16, %v2964_v7 }
 0x69d   : > { %3189 = vst [vmem:[%s6247_s7 + $0x1e0] sm:$0xff] %v3125_v51  ;;  %3190 = vst [vmem:[%s6247_s7 + $0x1e8] sm:$0xff] %v3126_v50 }
 0x69e   : > { %v3127_v43 = vadd.f32 %v6226_v0, %v3045_v38  ;;  %v3128_v15 = vadd.f32 %v6228_v29, %v3046_v6 }
 0x6a0   : > { %3191 = vst [vmem:[%s6247_s7 + $0x1f0] sm:$0xff] %v3127_v43  ;;  %3192 = vst [vmem:[%s6247_s7 + $0x1f8] sm:$0xff] %v3128_v15 }
 0x6a1   : > { %4043 = shalt.err (!%p4040_p4)
}
 0x6a2   : > { %s4044_s11 = scalar_lea.hbm %s6488_s18, 8192  ;;  %s4048_s26 = scalar_lea.hbm %s6546_s6, 16384 }
 0x6a3   : > { %p4045_p9 = scmp.ne.s32.totalorder %s6488_s18, %s4044_s11  ;;  %p4049_p8 = scmp.lt.u32.totalorder %s6488_s18, %s6546_s6 }
 0x6a4   : > { %p4050_p13 = scmp.lt.u32.totalorder %s4048_s26, %s4044_s11  ;;  %p4052_p10 = scmp.lt.u32.totalorder %s4044_s11, %s6488_s18 }
 0x6a5   : > { %p4046_p0 = pnand %p4045_p9, %p4301_p5 }
 0x6a6   : > { %p4051_p6 = por %p4050_p13, %p4049_p8 }
 0x6a7   : > { %p4047_p11 = pneg %p4046_p0 }
 0x6a8   : > { %p4053_p3 = por %p4052_p10, %p4051_p6 }
 0x6aa   : > { %p4054_p7 = pnand %p4053_p3, %p4047_p11 }
 0x6ac   : > { %4057 = shalt.err (!%p4054_p7)
}
 0x6ad   : > { %s4116_s8 = smov 256   ;;  %s4117_s15 = smov 16  }
 0x6ae   : > { %3508 = dma.vmem_to_hbm [thread:$0]  (%p4301_p5), %s6490_s14, 8192, %s6488_s18, %s3194_s25, %s4116_s8, %s4116_s8, %s4117_s15  }
 0x6af PF: > { %s3223_s17 = sand.u32 1, %s4092_s21   ;;  %p6787_p12 = scmp.ne.s32.totalorder %s6627_s28, 0 }
 0x6b0   : > { %p6788_p2 = scmp.ge.s32.totalorder %s4104_s24, 2  ;;  %s3224_s27 = scalar_lea.sflag [#allocation4], %s3223_s17 }
 0x6b2   : > { %p3525_p1 = pnand %p6788_p2, %p6787_p12 }
 0x6b4   : > { %4087 = dma.done.wait (!%p3525_p1), %s3224_s27, 8192  }
 0x6b5   : > { %4089 = vsyncadd (!%p3525_p1), %s3224_s27, 4294959104  ;;  %p21_p4 = scmp.ge.s32.totalorder %s4266_s12, 4   ;;  %s6789_s21 = smov %s4096_s22 }
 0x6b6   : > { %s6790_s22 = smov %s4100_s23  ;;  %s6791_s23 = smov %s4297_s30 }
 0x6b7   : > { %s6792_s24 = smov %s4266_s12  ;;  %23 = sbr.rel (!%p21_p4) target bundleno = 9 (0x9), region = 101 }
 0x6be   :  { %3229 = vsyncpa [#allocation3], 1 }
 0x6bf   :  { %3231 = vsyncpa [#allocation3 + $0x1], 1 }
 0x6c0   :  { %3232 = vsyncpa [#allocation6], 1 }
 0x6c1   :  { %3233 = vsyncpa [#allocation9], 1 }
 0x6c2   :  { %3234 = vsyncpa [#allocation4], 1 }
 0x6c3   :  { %3236 = vsyncpa [#allocation4 + $0x1], 1 }

</bundles_post_ra>
